<compile_context>
chip_gen: v6e
topology: v6e:2x2x1
jax: 0.10.0
libtpu: 0.0.40
codegen_flags: <defaults>
</compile_context>

<pallas_src>
import jax
import jax.numpy as jnp
from jax import lax
from jax.experimental import pallas as pl
from jax.experimental.pallas import tpu as pltpu


DIMS = [(256, 1024), (1024, 1024), (1024, 512), (512, 256)]
_TOTAL_MACS = sum(i * o for i, o in DIMS)          # 1_966_080
_WEIGHT_BYTES = sum(i * o for i, o in DIMS) * 2    # bf16 weights
_BIAS_BYTES = sum(o for _, o in DIMS) * 4          # f32 biases


def dec_kernel(x_ref,
               w1_ref, b1_ref,
               w2_ref, b2_ref,
               w3_ref, b3_ref,
               w4_ref, b4_ref,
               o_ref):
    """One batch tile of the MLP + L2 normalize. Weights are VMEM-resident."""
    def leaky_relu(h):
        # mul + max (2 VALU ops) instead of cmp + mul + select.
        return jnp.maximum(h, 0.2 * h)

    x = x_ref[...]                                   # f32 [TM, 256]

    h = jnp.dot(x.astype(jnp.bfloat16), w1_ref[...],
                preferred_element_type=jnp.float32) + b1_ref[...]
    h = leaky_relu(h)

    h = jnp.dot(h.astype(jnp.bfloat16), w2_ref[...],
                preferred_element_type=jnp.float32) + b2_ref[...]
    h = leaky_relu(h)

    h = jnp.dot(h.astype(jnp.bfloat16), w3_ref[...],
                preferred_element_type=jnp.float32) + b3_ref[...]
    h = leaky_relu(h)

    y = jnp.dot(h.astype(jnp.bfloat16), w4_ref[...],
                preferred_element_type=jnp.float32) + b4_ref[...]

    # F.normalize(y, p=2, dim=1): y / max(||y||_2, eps), eps = 1e-12.
    # Done in f32; rsqrt maps to the EUP (free slot vs a VPU divide).
    sq = jnp.sum(y * y, axis=1, keepdims=True)
    inv_norm = lax.rsqrt(jnp.maximum(sq, 1e-24))     # 1 / max(norm, 1e-12)
    o_ref[...] = (y * inv_norm).astype(o_ref.dtype)


def make_dec_params(key):
    """Deterministic init matching nn.Linear default: U(-1/sqrt(fan_in), +).

    Weights are returned in [in, out] layout as bfloat16; biases as f32 [1, out].
    """
    params = []
    for (fan_in, fan_out) in DIMS:
        key, kw, kb = jax.random.split(key, 3)
        bound = 1.0 / jnp.sqrt(fan_in)
        w = jax.random.uniform(kw, (fan_in, fan_out), jnp.float32, -bound, bound)
        b = jax.random.uniform(kb, (1, fan_out), jnp.float32, -bound, bound)
        params.append((w.astype(jnp.bfloat16), b))
    return params


def _tpu_limits():
    """(tm_max, vmem_limit_bytes) chosen per generation."""
    try:
        vmem_phys = pltpu.get_tpu_info().vmem_capacity_bytes
    except Exception:
        vmem_phys = 64 << 20  # conservative (v7x-sized) fallback
    if vmem_phys >= (100 << 20):        # v5e / v6e: 128 MiB physical
        return 1024, 64 << 20
    else:                               # v7x: 64 MiB physical
        return 512, 40 << 20


def _choose_tm(B, tm_max):
    """Batch tile: big tiles for large B, >=2 tiles for megacore, 8-row granule."""
    if B <= 256:
        # Single small tile; splitting would only duplicate per-step overhead.
        return max(8, ((B + 7) // 8) * 8)
    # Aim for at least 2 tiles so the "parallel" batch axis can split across
    # the two v7x TensorCores, but never exceed tm_max.
    half = -(-B // 2)
    half = ((half + 255) // 256) * 256
    return max(256, min(tm_max, half))


def dec_forward(x, params, tm=None):
    B = x.shape[0]
    (w1, b1), (w2, b2), (w3, b3), (w4, b4) = params

    tm_max, vmem_limit = _tpu_limits()
    if tm is None:
        tm = _choose_tm(B, tm_max)
    n_tiles = -(-B // tm)
    Bp = n_tiles * tm
    if Bp != B:
        x = jnp.pad(x, ((0, Bp - B), (0, 0)))

    # Weights/biases: full block, index_map pinned to (0, 0) -> loaded once,
    # resident in VMEM across all batch tiles. Buffered(1): no double buffer
    # for constant-index blocks (saves ~3.75 MiB VMEM).
    resident = lambda a: pl.BlockSpec(a.shape, lambda i: (0, 0),
                                      pipeline_mode=pl.Buffered(1))

    cost = pl.CostEstimate(
        flops=2 * Bp * _TOTAL_MACS,
        transcendentals=Bp,  # one rsqrt per row
        bytes_accessed=Bp * 256 * 4 * 2 + _WEIGHT_BYTES + _BIAS_BYTES,
    )

    out = pl.pallas_call(
        dec_kernel,
        out_shape=jax.ShapeDtypeStruct((Bp, 256), jnp.float32),
        grid=(n_tiles,),
        in_specs=[pl.BlockSpec((tm, 256), lambda i: (i, 0)),
                  resident(w1), resident(b1),
                  resident(w2), resident(b2),
                  resident(w3), resident(b3),
                  resident(w4), resident(b4)],
        out_specs=pl.BlockSpec((tm, 256), lambda i: (i, 0)),
        compiler_params=pltpu.CompilerParams(
            dimension_semantics=("parallel",),
            vmem_limit_bytes=vmem_limit,
        ),
        cost_estimate=cost,
    )(x, w1, b1, w2, b2, w3, b3, w4, b4)

    return out[:B]
    # TODO(synk): for small-B inference in production this kernel is bound by
    # the ~3.75 MiB weight DMA; persist weights in VMEM across calls via a
    # cross-pallas_call prefetch/future (P10) or batch multiple dec calls
    # into one pallas_call to amortize the weight load.


def dec_reference(x, params):
    """Pure-JAX reference mirroring the kernel's bf16-input / f32-accum math."""
    h = x
    for i, (w, b) in enumerate(params):
        h = jnp.dot(h.astype(jnp.bfloat16), w,
                    preferred_element_type=jnp.float32) + b
        if i < len(params) - 1:
            h = jnp.maximum(h, 0.2 * h)
    norm = jnp.sqrt(jnp.sum(h * h, axis=1, keepdims=True))
    return h / jnp.maximum(norm, 1e-12)


if __name__ == "__main__":
    key = jax.random.PRNGKey(0)
    k_x, k_p = jax.random.split(key)

    B = 8
    x = jax.random.normal(k_x, (B, 256), jnp.float32)
    params = make_dec_params(k_p)

    out = dec_forward(x, params)
    out = jax.block_until_ready(out)

    ref = dec_reference(x, params)
    assert out.shape == (B, 256)
    assert jnp.allclose(out, ref, atol=1e-2, rtol=1e-2), "mismatch vs reference"
    # output must be unit-L2-normalized along dim 1
    norms = jnp.linalg.norm(out, axis=1)
    assert jnp.allclose(norms, 1.0, atol=1e-4)

    # Also exercise a multi-tile (padded) batch to cover the grid>1 path.
    B2 = 300
    x2 = jax.random.normal(k_x, (B2, 256), jnp.float32)
    out2 = jax.block_until_ready(dec_forward(x2, params))
    ref2 = dec_reference(x2, params)
    assert out2.shape == (B2, 256)
    assert jnp.allclose(out2, ref2, atol=1e-2, rtol=1e-2), "mismatch (multi-tile)"

    print("KERNEL_OK")
</pallas_src>

<mosaic_0001>
module attributes {stable_mosaic.version = 11 : i64} {
  func.func @dec_kernel(%arg0: i32, %arg1: memref<8x256xf32, #tpu.memory_space<vmem>>, %arg2: memref<256x1024xbf16, #tpu.memory_space<vmem>>, %arg3: memref<1x1024xf32, #tpu.memory_space<vmem>>, %arg4: memref<1024x1024xbf16, #tpu.memory_space<vmem>>, %arg5: memref<1x1024xf32, #tpu.memory_space<vmem>>, %arg6: memref<1024x512xbf16, #tpu.memory_space<vmem>>, %arg7: memref<1x512xf32, #tpu.memory_space<vmem>>, %arg8: memref<512x256xbf16, #tpu.memory_space<vmem>>, %arg9: memref<1x256xf32, #tpu.memory_space<vmem>>, %arg10: memref<8x256xf32, #tpu.memory_space<vmem>>) attributes {dimension_semantics = [#tpu.dimension_semantics<parallel>], iteration_bounds = array<i64: 1>, scalar_prefetch = 0 : i64, scratch_operands = 0 : i64, tpu.core_type = #tpu.core_type<tc>, window_params = [{transform_indices = @transform_0, window_bounds = array<i64: 8, 256>}, {pipeline_mode = #tpu.pipeline_mode<synchronous>, transform_indices = @transform_1, window_bounds = array<i64: 256, 1024>}, {pipeline_mode = #tpu.pipeline_mode<synchronous>, transform_indices = @transform_2, window_bounds = array<i64: 1, 1024>}, {pipeline_mode = #tpu.pipeline_mode<synchronous>, transform_indices = @transform_3, window_bounds = array<i64: 1024, 1024>}, {pipeline_mode = #tpu.pipeline_mode<synchronous>, transform_indices = @transform_4, window_bounds = array<i64: 1, 1024>}, {pipeline_mode = #tpu.pipeline_mode<synchronous>, transform_indices = @transform_5, window_bounds = array<i64: 1024, 512>}, {pipeline_mode = #tpu.pipeline_mode<synchronous>, transform_indices = @transform_6, window_bounds = array<i64: 1, 512>}, {pipeline_mode = #tpu.pipeline_mode<synchronous>, transform_indices = @transform_7, window_bounds = array<i64: 512, 256>}, {pipeline_mode = #tpu.pipeline_mode<synchronous>, transform_indices = @transform_8, window_bounds = array<i64: 1, 256>}, {transform_indices = @transform_9, window_bounds = array<i64: 8, 256>}]} {
    %c0 = arith.constant 0 : index
    %c0_0 = arith.constant 0 : index
    %0 = vector.load %arg1[%c0, %c0_0] : memref<8x256xf32, #tpu.memory_space<vmem>>, vector<8x256xf32>
    %1 = arith.truncf %0 : vector<8x256xf32> to vector<8x256xbf16>
    %c0_1 = arith.constant 0 : index
    %c0_2 = arith.constant 0 : index
    %2 = vector.load %arg2[%c0_1, %c0_2] : memref<256x1024xbf16, #tpu.memory_space<vmem>>, vector<256x1024xbf16>
    %cst = arith.constant dense<0.000000e+00> : vector<8x1024xf32>
    %3 = tpu.matmul %1, %2, %cst {dimension_numbers = #tpu.dot_dimension_numbers<[1], [0], [0], [1], [0, 0, 1, 1], [], []>} : vector<8x256xbf16>, vector<256x1024xbf16>, vector<8x1024xf32> -> vector<8x1024xf32>
    %c0_3 = arith.constant 0 : index
    %c0_4 = arith.constant 0 : index
    %4 = vector.load %arg3[%c0_3, %c0_4] : memref<1x1024xf32, #tpu.memory_space<vmem>>, vector<1x1024xf32>
    %5 = vector.broadcast %4 : vector<1x1024xf32> to vector<8x1024xf32>
    %6 = arith.addf %3, %5 : vector<8x1024xf32>
    %cst_5 = arith.constant 2.000000e-01 : f32
    %7 = vector.broadcast %cst_5 : f32 to vector<8x1024xf32>
    %8 = arith.mulf %7, %6 : vector<8x1024xf32>
    %9 = arith.maximumf %6, %8 : vector<8x1024xf32>
    %10 = arith.truncf %9 : vector<8x1024xf32> to vector<8x1024xbf16>
    %c0_6 = arith.constant 0 : index
    %c0_7 = arith.constant 0 : index
    %11 = vector.load %arg4[%c0_6, %c0_7] : memref<1024x1024xbf16, #tpu.memory_space<vmem>>, vector<1024x1024xbf16>
    %cst_8 = arith.constant dense<0.000000e+00> : vector<8x1024xf32>
    %12 = tpu.matmul %10, %11, %cst_8 {dimension_numbers = #tpu.dot_dimension_numbers<[1], [0], [0], [1], [0, 0, 1, 1], [], []>} : vector<8x1024xbf16>, vector<1024x1024xbf16>, vector<8x1024xf32> -> vector<8x1024xf32>
    %c0_9 = arith.constant 0 : index
    %c0_10 = arith.constant 0 : index
    %13 = vector.load %arg5[%c0_9, %c0_10] : memref<1x1024xf32, #tpu.memory_space<vmem>>, vector<1x1024xf32>
    %14 = vector.broadcast %13 : vector<1x1024xf32> to vector<8x1024xf32>
    %15 = arith.addf %12, %14 : vector<8x1024xf32>
    %cst_11 = arith.constant 2.000000e-01 : f32
    %16 = vector.broadcast %cst_11 : f32 to vector<8x1024xf32>
    %17 = arith.mulf %16, %15 : vector<8x1024xf32>
    %18 = arith.maximumf %15, %17 : vector<8x1024xf32>
    %19 = arith.truncf %18 : vector<8x1024xf32> to vector<8x1024xbf16>
    %c0_12 = arith.constant 0 : index
    %c0_13 = arith.constant 0 : index
    %20 = vector.load %arg6[%c0_12, %c0_13] : memref<1024x512xbf16, #tpu.memory_space<vmem>>, vector<1024x512xbf16>
    %cst_14 = arith.constant dense<0.000000e+00> : vector<8x512xf32>
    %21 = tpu.matmul %19, %20, %cst_14 {dimension_numbers = #tpu.dot_dimension_numbers<[1], [0], [0], [1], [0, 0, 1, 1], [], []>} : vector<8x1024xbf16>, vector<1024x512xbf16>, vector<8x512xf32> -> vector<8x512xf32>
    %c0_15 = arith.constant 0 : index
    %c0_16 = arith.constant 0 : index
    %22 = vector.load %arg7[%c0_15, %c0_16] : memref<1x512xf32, #tpu.memory_space<vmem>>, vector<1x512xf32>
    %23 = vector.broadcast %22 : vector<1x512xf32> to vector<8x512xf32>
    %24 = arith.addf %21, %23 : vector<8x512xf32>
    %cst_17 = arith.constant 2.000000e-01 : f32
    %25 = vector.broadcast %cst_17 : f32 to vector<8x512xf32>
    %26 = arith.mulf %25, %24 : vector<8x512xf32>
    %27 = arith.maximumf %24, %26 : vector<8x512xf32>
    %28 = arith.truncf %27 : vector<8x512xf32> to vector<8x512xbf16>
    %c0_18 = arith.constant 0 : index
    %c0_19 = arith.constant 0 : index
    %29 = vector.load %arg8[%c0_18, %c0_19] : memref<512x256xbf16, #tpu.memory_space<vmem>>, vector<512x256xbf16>
    %cst_20 = arith.constant dense<0.000000e+00> : vector<8x256xf32>
    %30 = tpu.matmul %28, %29, %cst_20 {dimension_numbers = #tpu.dot_dimension_numbers<[1], [0], [0], [1], [0, 0, 1, 1], [], []>} : vector<8x512xbf16>, vector<512x256xbf16>, vector<8x256xf32> -> vector<8x256xf32>
    %c0_21 = arith.constant 0 : index
    %c0_22 = arith.constant 0 : index
    %31 = vector.load %arg9[%c0_21, %c0_22] : memref<1x256xf32, #tpu.memory_space<vmem>>, vector<1x256xf32>
    %32 = vector.broadcast %31 : vector<1x256xf32> to vector<8x256xf32>
    %33 = arith.addf %30, %32 : vector<8x256xf32>
    %34 = arith.mulf %33, %33 : vector<8x256xf32>
    %cst_23 = arith.constant dense<0.000000e+00> : vector<8xf32>
    %35 = vector.multi_reduction <add>, %34, %cst_23 [1] : vector<8x256xf32> to vector<8xf32>
    %36 = vector.shape_cast %35 : vector<8xf32> to vector<8x1xf32>
    %cst_24 = arith.constant 1.000000e-24 : f32
    %37 = vector.broadcast %cst_24 : f32 to vector<8x1xf32>
    %38 = arith.maximumf %36, %37 : vector<8x1xf32>
    %39 = math.rsqrt %38 : vector<8x1xf32>
    %40 = vector.broadcast %39 : vector<8x1xf32> to vector<8x256xf32>
    %41 = arith.mulf %33, %40 : vector<8x256xf32>
    %c0_25 = arith.constant 0 : index
    %c0_26 = arith.constant 0 : index
    %42 = vector.load %arg10[%c0_25, %c0_26] : memref<8x256xf32, #tpu.memory_space<vmem>>, vector<8x256xf32>
    tpu.vector_store %arg10[%c0_25, %c0_26], %41 {strides = array<i32>} : memref<8x256xf32, #tpu.memory_space<vmem>>, vector<8x256xf32>,
    return
  }
  func.func @transform_0(%arg0: i32) -> (i32, i32) {
    %c0_i32 = arith.constant 0 : i32
    %c0_i32_0 = arith.constant 0 : i32
    return %arg0, %c0_i32 : i32, i32
  }
  func.func @transform_1(%arg0: i32) -> (i32, i32) {
    %c0_i32 = arith.constant 0 : i32
    %c0_i32_0 = arith.constant 0 : i32
    %c0_i32_1 = arith.constant 0 : i32
    return %c0_i32, %c0_i32_0 : i32, i32
  }
  func.func @transform_2(%arg0: i32) -> (i32, i32) {
    %c0_i32 = arith.constant 0 : i32
    %c0_i32_0 = arith.constant 0 : i32
    %c0_i32_1 = arith.constant 0 : i32
    return %c0_i32, %c0_i32_0 : i32, i32
  }
  func.func @transform_3(%arg0: i32) -> (i32, i32) {
    %c0_i32 = arith.constant 0 : i32
    %c0_i32_0 = arith.constant 0 : i32
    %c0_i32_1 = arith.constant 0 : i32
    return %c0_i32, %c0_i32_0 : i32, i32
  }
  func.func @transform_4(%arg0: i32) -> (i32, i32) {
    %c0_i32 = arith.constant 0 : i32
    %c0_i32_0 = arith.constant 0 : i32
    %c0_i32_1 = arith.constant 0 : i32
    return %c0_i32, %c0_i32_0 : i32, i32
  }
  func.func @transform_5(%arg0: i32) -> (i32, i32) {
    %c0_i32 = arith.constant 0 : i32
    %c0_i32_0 = arith.constant 0 : i32
    %c0_i32_1 = arith.constant 0 : i32
    return %c0_i32, %c0_i32_0 : i32, i32
  }
  func.func @transform_6(%arg0: i32) -> (i32, i32) {
    %c0_i32 = arith.constant 0 : i32
    %c0_i32_0 = arith.constant 0 : i32
    %c0_i32_1 = arith.constant 0 : i32
    return %c0_i32, %c0_i32_0 : i32, i32
  }
  func.func @transform_7(%arg0: i32) -> (i32, i32) {
    %c0_i32 = arith.constant 0 : i32
    %c0_i32_0 = arith.constant 0 : i32
    %c0_i32_1 = arith.constant 0 : i32
    return %c0_i32, %c0_i32_0 : i32, i32
  }
  func.func @transform_8(%arg0: i32) -> (i32, i32) {
    %c0_i32 = arith.constant 0 : i32
    %c0_i32_0 = arith.constant 0 : i32
    %c0_i32_1 = arith.constant 0 : i32
    return %c0_i32, %c0_i32_0 : i32, i32
  }
  func.func @transform_9(%arg0: i32) -> (i32, i32) {
    %c0_i32 = arith.constant 0 : i32
    %c0_i32_0 = arith.constant 0 : i32
    return %arg0, %c0_i32 : i32, i32
  }
}

</mosaic_0001>

<bundles_post_ra>
// kernel: tpu_custom_call.1
= control target key start
LH: loop header
LB: loop body
LE: loop exit
PB: predicated region body
PF: predicated region fallthrough
CT: control target
= control target key end

     0   :  { %14 = vsyncpa [#allocation3], 0  ;;  %s9373_s0 = inlined_call_operand.hbm [shape: f32[8,256], index: 0, kind: input, shape index: {}]   ;;  %s9374_s1 = inlined_call_operand.hbm [shape: bf16[256,1024], index: 1, kind: input, shape index: {}]   ;;  %s9375_s2 = inlined_call_operand.hbm [shape: f32[1,1024], index: 2, kind: input, shape index: {}]   ;;  %s9376_s3 = inlined_call_operand.hbm [shape: bf16[1024,1024], index: 3, kind: input, shape index: {}]   ;;  %s9377_s4 = inlined_call_operand.hbm [shape: f32[1,1024], index: 4, kind: input, shape index: {}]   ;;  %s9378_s5 = inlined_call_operand.hbm [shape: bf16[1024,512], index: 5, kind: input, shape index: {}]   ;;  %s9379_s6 = inlined_call_operand.hbm [shape: f32[1,512], index: 6, kind: input, shape index: {}]   ;;  %s9380_s7 = inlined_call_operand.hbm [shape: bf16[512,256], index: 7, kind: input, shape index: {}]   ;;  %s9381_s8 = inlined_call_operand.hbm [shape: f32[1,256], index: 8, kind: input, shape index: {}]   ;;  %s9382_s9 = inlined_call_operand.hbm [shape: f32[8,256], index: 9, kind: output, shape index: {}]  }
   0x1   :  { %15 = vsyncpa [#allocation6], 0 }
   0x2   :  { %16 = vsyncpa [#allocation9], 0 }
   0x3   :  { %17 = vsyncpa [#allocation12], 0 }
   0x4   :  { %18 = vsyncpa [#allocation15], 0 }
   0x5   :  { %19 = vsyncpa [#allocation4], 0  ;;  %s9018_s30 = smov [#allocation5]  }
   0x6   :  { %s35_s10 = sshll.u32 %s9018_s30, 4  ;;  %s36_s10 = int_to_ptr.vmem [resolvable:$true] %s35_s10 }
   0x7   :  { %s8814_s11 = scalar_lea.vmem %s36_s10, 16384  ;;  %p8819_p1 = scmp.lt.s32.totalorder %s36_s10, %s36_s10 }
   0x8   :  { %p8815_p0 = scmp.ne.s32.totalorder %s36_s10, %s8814_s11  ;;  %p8820_p2 = scmp.lt.s32.totalorder %s8814_s11, %s8814_s11 }
   0xa   :  { %p8821_p3 = por %p8820_p2, %p8819_p1 }
   0xc   :  { %p8822_p4 = pnand %p8821_p3, %p8815_p0 }
   0xe   :  { %8825 = shalt.err (!%p8822_p4)
}
   0xf   :  { %s9019_s12 = smov 512   ;;  %s9020_s13 = smov 32  }
  0x10   :  { %41 = dma.hbm_to_vmem [thread:$0]  %s9374_s1, 16384, %s36_s10, [#allocation6], %s9019_s12, %s9019_s12, %s9020_s13  }
  0x11   :  { %s9021_s16 = smov [#allocation8]   ;;  %s9022_s18 = smov [#allocation11]  }
  0x12   :  { %s57_s17 = sshll.u32 %s9021_s16, 4  ;;  %s79_s19 = sshll.u32 %s9022_s18, 4  ;;  %s58_s17 = int_to_ptr.vmem [resolvable:$true] %s57_s17  ;;  %s80_s19 = int_to_ptr.vmem [resolvable:$true] %s79_s19 }
  0x13   :  { %s8834_s20 = scalar_lea.vmem %s58_s17, 65536  ;;  %p8839_p6 = scmp.lt.s32.totalorder %s58_s17, %s58_s17 }
  0x14   :  { %p8835_p5 = scmp.ne.s32.totalorder %s58_s17, %s8834_s20  ;;  %p8840_p7 = scmp.lt.s32.totalorder %s8834_s20, %s8834_s20 }
  0x16   :  { %p8841_p8 = por %p8840_p7, %p8839_p6 }
  0x18   :  { %p8842_p9 = pnand %p8841_p8, %p8835_p5 }
  0x1a   :  { %8845 = shalt.err (!%p8842_p9)
}
  0x1b   :  { %63 = dma.hbm_to_vmem [thread:$0]  %s9376_s3, 65536, %s58_s17, [#allocation9], %s9019_s12, %s9019_s12, %s9020_s13  }
  0x1c   :  { %s8854_s23 = scalar_lea.vmem %s80_s19, 32768  ;;  %p8859_p11 = scmp.lt.s32.totalorder %s80_s19, %s80_s19 }
  0x1d   :  { %p8855_p10 = scmp.ne.s32.totalorder %s80_s19, %s8854_s23  ;;  %p8860_p12 = scmp.lt.s32.totalorder %s8854_s23, %s8854_s23 }
  0x1f   :  { %p8861_p13 = por %p8860_p12, %p8859_p11 }
  0x21   :  { %p8862_p0 = pnand %p8861_p13, %p8855_p10 }
  0x23   :  { %8865 = shalt.err (!%p8862_p0)
}
  0x24   :  { %s9023_s1 = smov 256   ;;  %s9024_s24 = smov 16  }
  0x25   :  { %85 = dma.hbm_to_vmem [thread:$0]  %s9378_s5, 32768, %s80_s19, [#allocation12], %s9023_s1, %s9023_s1, %s9024_s24  }
  0x26   :  { %s9025_s27 = smov [#allocation14]  }
  0x27   :  { %s101_s28 = sshll.u32 %s9025_s27, 4  ;;  %s102_s28 = int_to_ptr.vmem [resolvable:$true] %s101_s28 }
  0x28   :  { %s8874_s29 = scalar_lea.vmem %s102_s28, 8192  ;;  %p8879_p2 = scmp.lt.s32.totalorder %s102_s28, %s102_s28 }
  0x29   :  { %p8875_p1 = scmp.ne.s32.totalorder %s102_s28, %s8874_s29  ;;  %p8880_p3 = scmp.lt.s32.totalorder %s8874_s29, %s8874_s29 }
  0x2b   :  { %p8881_p4 = por %p8880_p3, %p8879_p2 }
  0x2d   :  { %p8882_p5 = pnand %p8881_p4, %p8875_p1 }
  0x2f   :  { %8885 = shalt.err (!%p8882_p5)
}
  0x30   :  { %s9026_s3 = smov 128   ;;  %s9027_s30 = smov 8  }
  0x31   :  { %107 = dma.hbm_to_vmem [thread:$0]  %s9380_s7, 8192, %s102_s28, [#allocation15], %s9026_s3, %s9026_s3, %s9027_s30  }
  0x32   :  { %s9028_s12 = smov [#allocation2]   ;;  %s9029_s14 = smov [#allocation7]  }
  0x33   :  { %s26_s13 = sshll.u32 %s9028_s12, 4  ;;  %s48_s5 = sshll.u32 %s9029_s14, 4  ;;  %s27_s13 = int_to_ptr.vmem [resolvable:$true] %s26_s13  ;;  %s49_s5 = int_to_ptr.vmem [resolvable:$true] %s48_s5 }
  0x34   :  { %s8894_s15 = scalar_lea.vmem %s27_s13, 256  ;;  %p8899_p7 = scmp.lt.s32.totalorder %s27_s13, %s27_s13 }
  0x35   :  { %p8895_p6 = scmp.ne.s32.totalorder %s27_s13, %s8894_s15  ;;  %p8900_p8 = scmp.lt.s32.totalorder %s8894_s15, %s8894_s15 }
  0x37   :  { %p8901_p9 = por %p8900_p8, %p8899_p7 }
  0x39   :  { %p8902_p10 = pnand %p8901_p9, %p8895_p6 }
  0x3b   :  { %8905 = shalt.err (!%p8902_p10)
}
  0x3c   :  { %29 = dma.hbm_to_vmem [thread:$0]  %s9373_s0, 256, %s27_s13, [#allocation3]  }
  0x3d   :  { %s8914_s18 = scalar_lea.vmem %s49_s5, 128  ;;  %p8919_p12 = scmp.lt.s32.totalorder %s49_s5, %s49_s5 }
  0x3e   :  { %p8915_p11 = scmp.ne.s32.totalorder %s49_s5, %s8914_s18  ;;  %p8920_p13 = scmp.lt.s32.totalorder %s8914_s18, %s8914_s18 }
  0x40   :  { %p8921_p0 = por %p8920_p13, %p8919_p12 }
  0x42   :  { %p8922_p1 = pnand %p8921_p0, %p8915_p11 }
  0x44   :  { %8925 = shalt.err (!%p8922_p1)
}
  0x45   :  { %51 = dma.hbm_to_vmem [thread:$0]  %s9375_s2, 128, %s49_s5, [#allocation6]  }
  0x46   :  { %s9030_s20 = smov [#allocation10]   ;;  %s9031_s22 = smov [#allocation13]  }
  0x47   :  { %s70_s21 = sshll.u32 %s9030_s20, 4  ;;  %s92_s23 = sshll.u32 %s9031_s22, 4  ;;  %s71_s21 = int_to_ptr.vmem [resolvable:$true] %s70_s21  ;;  %s93_s23 = int_to_ptr.vmem [resolvable:$true] %s92_s23 }
  0x48   :  { %s8934_s1 = scalar_lea.vmem %s71_s21, 128  ;;  %p8939_p3 = scmp.lt.s32.totalorder %s71_s21, %s71_s21 }
  0x49   :  { %p8935_p2 = scmp.ne.s32.totalorder %s71_s21, %s8934_s1  ;;  %p8940_p4 = scmp.lt.s32.totalorder %s8934_s1, %s8934_s1 }
  0x4b   :  { %p8941_p5 = por %p8940_p4, %p8939_p3 }
  0x4d   :  { %p8942_p6 = pnand %p8941_p5, %p8935_p2 }
  0x4f   :  { %8945 = shalt.err (!%p8942_p6)
}
  0x50   :  { %73 = dma.hbm_to_vmem [thread:$0]  %s9377_s4, 128, %s71_s21, [#allocation9]  }
  0x51   :  { %s8954_s25 = scalar_lea.vmem %s93_s23, 64  ;;  %p8959_p8 = scmp.lt.s32.totalorder %s93_s23, %s93_s23 }
  0x52   :  { %p8955_p7 = scmp.ne.s32.totalorder %s93_s23, %s8954_s25  ;;  %p8960_p9 = scmp.lt.s32.totalorder %s8954_s25, %s8954_s25 }
  0x54   :  { %p8961_p10 = por %p8960_p9, %p8959_p8 }
  0x56   :  { %p8962_p11 = pnand %p8961_p10, %p8955_p7 }
  0x58   :  { %8965 = shalt.err (!%p8962_p11)
}
  0x59   :  { %95 = dma.hbm_to_vmem [thread:$0]  %s9379_s6, 64, %s93_s23, [#allocation12]  }
  0x5a   :  { %s9032_s27 = smov [#allocation16]  }
  0x5b   :  { %s114_s28 = sshll.u32 %s9032_s27, 4  ;;  %s115_s28 = int_to_ptr.vmem [resolvable:$true] %s114_s28 }
  0x5c   :  { %s8974_s29 = scalar_lea.vmem %s115_s28, 32  ;;  %p8979_p13 = scmp.lt.s32.totalorder %s115_s28, %s115_s28 }
  0x5d   :  { %p8975_p12 = scmp.ne.s32.totalorder %s115_s28, %s8974_s29  ;;  %p8980_p0 = scmp.lt.s32.totalorder %s8974_s29, %s8974_s29 }
  0x5f   :  { %p8981_p1 = por %p8980_p0, %p8979_p13 }
  0x61   :  { %p8982_p2 = pnand %p8981_p1, %p8975_p12 }
  0x63   :  { %8985 = shalt.err (!%p8982_p2)
}
  0x64   :  { %117 = dma.hbm_to_vmem [thread:$0]  %s9381_s8, 32, %s115_s28, [#allocation15]  }
  0x65   :  { %9006 = dma.done.wait [#allocation3], 256  }
  0x66   :  { %9007 = vsyncadd [#allocation3], 4294967040 }
  0x67   :  { %9008 = dma.done.wait [#allocation6], 16512  }
  0x68   :  { %9009 = vsyncadd [#allocation6], 4294950784 }
  0x69   :  { %9010 = dma.done.wait [#allocation9], 65664  }
  0x6a   :  { %9011 = vsyncadd [#allocation9], 4294901632 }
  0x6b   :  { %9012 = dma.done.wait [#allocation12], 32832  }
  0x6c   :  { %9013 = vsyncadd [#allocation12], 4294934464 }
  0x6d   :  { %9014 = dma.done.wait [#allocation15], 8224  }
  0x6e   :  { %9015 = vsyncadd [#allocation15], 4294959072  ;;  %v205_v0 = vld [vmem:[#allocation5 + $0x1c0] sm:$0xff]  ;;  %v206_v2 = vld [vmem:[#allocation5 + $0x1c8] sm:$0xff]  ;;  %s9033_s6 = smov [#allocation17]  }
  0x6f   :  { %v209_v1 = vld [vmem:[#allocation5 + $0x1e0] sm:$0xff]  ;;  %v210_v4 = vld [vmem:[#allocation5 + $0x1e8] sm:$0xff]  ;;  %v146_v53 = vld [vmem:[#allocation2 + $0x8] sm:$0xff]  ;;  %s7334_s8 = sshll.u32 %s9033_s6, 4  ;;  %s7335_s8 = int_to_ptr.vmem [resolvable:$true] %s7334_s8 }
  0x70   :  { %v7404_v3 = vcombine.high %v205_v0, %v209_v1  ;;  %v7403_v5 = vcombine.low %v205_v0, %v209_v1  ;;  %v197_v6 = vld [vmem:[#allocation5 + $0x180] sm:$0xff]  ;;  %v7406_v8 = vcombine.high %v206_v2, %v210_v4  ;;  %v7405_v9 = vcombine.low %v206_v2, %v210_v4  ;;  %v198_v11 = vld [vmem:[#allocation5 + $0x188] sm:$0xff]  ;;  %s8986_s30 = scalar_lea.vmem %s7335_s8, 256  ;;  %p8991_p4 = scmp.lt.s32.totalorder %s7335_s8, %s7335_s8 }
  0x71   :  { %v201_v7 = vld [vmem:[#allocation5 + $0x1a0] sm:$0xff]  ;;  %v202_v12 = vld [vmem:[#allocation5 + $0x1a8] sm:$0xff]  ;;  %v9111_v57 = vpack.c.bf16 %v146_v53, %v146_v53  ;;  %p8987_p3 = scmp.ne.s32.totalorder %s7335_s8, %s8986_s30  ;;  %p8992_p5 = scmp.lt.s32.totalorder %s8986_s30, %s8986_s30 }
  0x72   :  { %v7396_v10 = vcombine.high %v197_v6, %v201_v7  ;;  %v189_v13 = vld [vmem:[#allocation5 + $0x140] sm:$0xff]  ;;  %959 = vmatprep.subr.bf16.mxu0 %v7404_v3  ;;  %v7398_v14 = vcombine.high %v198_v11, %v202_v12  ;;  %v190_v16 = vld [vmem:[#allocation5 + $0x148] sm:$0xff]  ;;  %1000 = vmatprep.subr.bf16.mxu1 %v7406_v8  ;;  %v7395_v18 = vcombine.low %v197_v6, %v201_v7 }
  0x73   :  { %v193_v15 = vld [vmem:[#allocation5 + $0x160] sm:$0xff]  ;;  %v194_v17 = vld [vmem:[#allocation5 + $0x168] sm:$0xff]  ;;  %960 = vmatpush1.bf16.msra.mxu0 %v7403_v5  ;;  %1001 = vmatpush1.bf16.msra.mxu1 %v7405_v9  ;;  %v7397_v19 = vcombine.low %v198_v11, %v202_v12  ;;  %p8993_p6 = por %p8992_p5, %p8991_p4 }
  0x74   :  { %961 = vmatprep.subr.bf16.mxu0 %v7396_v10  ;;  %v7388_v20 = vcombine.high %v189_v13, %v193_v15  ;;  %1002 = vmatprep.subr.bf16.mxu1 %v7398_v14  ;;  %v7390_v21 = vcombine.high %v190_v16, %v194_v17  ;;  %v181_v22 = vld [vmem:[#allocation5 + $0x100] sm:$0xff]  ;;  %v182_v24 = vld [vmem:[#allocation5 + $0x108] sm:$0xff]  ;;  %v7387_v26 = vcombine.low %v189_v13, %v193_v15 }
  0x75   :  { %v185_v23 = vld [vmem:[#allocation5 + $0x120] sm:$0xff]  ;;  %v186_v25 = vld [vmem:[#allocation5 + $0x128] sm:$0xff]  ;;  %v7389_v27 = vcombine.low %v190_v16, %v194_v17  ;;  %991 = vmatprep.mubr.bf16.mxu0 %v9111_v57  ;;  %1032 = vmatprep.mubr.bf16.mxu1 %v9111_v57  ;;  %p8994_p7 = pnand %p8993_p6, %p8987_p3 }
  0x76   :  { %v7380_v28 = vcombine.high %v181_v22, %v185_v23  ;;  %v7382_v29 = vcombine.high %v182_v24, %v186_v25  ;;  %v173_v30 = vld [vmem:[#allocation5 + $0xc0] sm:$0xff]  ;;  %v174_v32 = vld [vmem:[#allocation5 + $0xc8] sm:$0xff]  ;;  %v7379_v34 = vcombine.low %v181_v22, %v185_v23  ;;  %v7381_v35 = vcombine.low %v182_v24, %v186_v25 }
  0x77   :  { %962 = vmatpush1.bf16.msra.mxu0 %v7395_v18  ;;  %1003 = vmatpush1.bf16.msra.mxu1 %v7397_v19  ;;  %v177_v31 = vld [vmem:[#allocation5 + $0xe0] sm:$0xff]  ;;  %v178_v33 = vld [vmem:[#allocation5 + $0xe8] sm:$0xff] }
  0x78   :  { %963 = vmatprep.subr.bf16.mxu0 %v7388_v20  ;;  %1004 = vmatprep.subr.bf16.mxu1 %v7390_v21  ;;  %v7372_v36 = vcombine.high %v173_v30, %v177_v31  ;;  %v7374_v37 = vcombine.high %v174_v32, %v178_v33  ;;  %v165_v38 = vld [vmem:[#allocation5 + $0x80] sm:$0xff]  ;;  %v166_v40 = vld [vmem:[#allocation5 + $0x88] sm:$0xff]  ;;  %v7371_v42 = vcombine.low %v173_v30, %v177_v31 }
  0x79   :  { %v169_v39 = vld [vmem:[#allocation5 + $0xa0] sm:$0xff]  ;;  %v170_v41 = vld [vmem:[#allocation5 + $0xa8] sm:$0xff]  ;;  %v7373_v43 = vcombine.low %v174_v32, %v178_v33 }
  0x7a   :  { %v7364_v44 = vcombine.high %v165_v38, %v169_v39  ;;  %v7366_v45 = vcombine.high %v166_v40, %v170_v41  ;;  %v157_v46 = vld [vmem:[#allocation5 + $0x40] sm:$0xff]  ;;  %v158_v48 = vld [vmem:[#allocation5 + $0x48] sm:$0xff]  ;;  %v7363_v50 = vcombine.low %v165_v38, %v169_v39  ;;  %v7365_v51 = vcombine.low %v166_v40, %v170_v41 }
  0x7b   :  { %964 = vmatpush1.bf16.msra.mxu0 %v7387_v26  ;;  %1005 = vmatpush1.bf16.msra.mxu1 %v7389_v27  ;;  %v161_v47 = vld [vmem:[#allocation5 + $0x60] sm:$0xff]  ;;  %v162_v49 = vld [vmem:[#allocation5 + $0x68] sm:$0xff] }
  0x7c   :  { %965 = vmatprep.subr.bf16.mxu0 %v7380_v28  ;;  %1006 = vmatprep.subr.bf16.mxu1 %v7382_v29  ;;  %v7356_v52 = vcombine.high %v157_v46, %v161_v47  ;;  %v7358_v54 = vcombine.high %v158_v48, %v162_v49  ;;  %v149_v55 = vld [vmem:[#allocation5] sm:$0xff]  ;;  %v150_v58 = vld [vmem:[#allocation5 + $0x8] sm:$0xff]  ;;  %v7355_v60 = vcombine.low %v157_v46, %v161_v47 }
  0x7d   :  { %v153_v56 = vld [vmem:[#allocation5 + $0x20] sm:$0xff]  ;;  %v154_v59 = vld [vmem:[#allocation5 + $0x28] sm:$0xff]  ;;  %v7357_v61 = vcombine.low %v158_v48, %v162_v49 }
  0x7e   :  { %v7348_v62 = vcombine.high %v149_v55, %v153_v56  ;;  %v7350_v63 = vcombine.high %v150_v58, %v154_v59  ;;  %v269_v0 = vld [vmem:[#allocation5 + $0x3c0] sm:$0xff]  ;;  %v270_v2 = vld [vmem:[#allocation5 + $0x3c8] sm:$0xff]  ;;  %v7347_v4 = vcombine.low %v149_v55, %v153_v56  ;;  %v7349_v5 = vcombine.low %v150_v58, %v154_v59 }
  0x7f   :  { %966 = vmatpush1.bf16.msra.mxu0 %v7379_v34  ;;  %1007 = vmatpush1.bf16.msra.mxu1 %v7381_v35  ;;  %v273_v1 = vld [vmem:[#allocation5 + $0x3e0] sm:$0xff]  ;;  %v274_v3 = vld [vmem:[#allocation5 + $0x3e8] sm:$0xff] }
  0x80   :  { %967 = vmatprep.subr.bf16.mxu0 %v7372_v36  ;;  %1008 = vmatprep.subr.bf16.mxu1 %v7374_v37  ;;  %v7468_v6 = vcombine.high %v269_v0, %v273_v1  ;;  %v7470_v7 = vcombine.high %v270_v2, %v274_v3  ;;  %v261_v8 = vld [vmem:[#allocation5 + $0x380] sm:$0xff]  ;;  %v262_v10 = vld [vmem:[#allocation5 + $0x388] sm:$0xff]  ;;  %v7467_v12 = vcombine.low %v269_v0, %v273_v1  ;;  %v207_v1 = vld [vmem:[#allocation5 + $0x1d0] sm:$0xff] }
  0x81   :  { %v265_v9 = vld [vmem:[#allocation5 + $0x3a0] sm:$0xff]  ;;  %v266_v11 = vld [vmem:[#allocation5 + $0x3a8] sm:$0xff]  ;;  %v7469_v13 = vcombine.low %v270_v2, %v274_v3  ;;  %v211_v2 = vld [vmem:[#allocation5 + $0x1f0] sm:$0xff] }
  0x82   :  { %v7460_v14 = vcombine.high %v261_v8, %v265_v9  ;;  %v7462_v15 = vcombine.high %v262_v10, %v266_v11  ;;  %v253_v16 = vld [vmem:[#allocation5 + $0x340] sm:$0xff]  ;;  %v254_v18 = vld [vmem:[#allocation5 + $0x348] sm:$0xff]  ;;  %v7459_v20 = vcombine.low %v261_v8, %v265_v9  ;;  %v7461_v21 = vcombine.low %v262_v10, %v266_v11  ;;  %v208_v3 = vld [vmem:[#allocation5 + $0x1d8] sm:$0xff] }
  0x83   :  { %968 = vmatpush1.bf16.msra.mxu0 %v7371_v42  ;;  %1009 = vmatpush1.bf16.msra.mxu1 %v7373_v43  ;;  %v257_v17 = vld [vmem:[#allocation5 + $0x360] sm:$0xff]  ;;  %v258_v19 = vld [vmem:[#allocation5 + $0x368] sm:$0xff]  ;;  %v7408_v8 = vcombine.high %v207_v1, %v211_v2  ;;  %v199_v9 = vld [vmem:[#allocation5 + $0x190] sm:$0xff] }
  0x84   :  { %969 = vmatprep.subr.bf16.mxu0 %v7364_v44  ;;  %1010 = vmatprep.subr.bf16.mxu1 %v7366_v45  ;;  %v7452_v22 = vcombine.high %v253_v16, %v257_v17  ;;  %v7454_v23 = vcombine.high %v254_v18, %v258_v19  ;;  %v245_v24 = vld [vmem:[#allocation5 + $0x300] sm:$0xff]  ;;  %v246_v26 = vld [vmem:[#allocation5 + $0x308] sm:$0xff]  ;;  %v7451_v28 = vcombine.low %v253_v16, %v257_v17  ;;  %v203_v10 = vld [vmem:[#allocation5 + $0x1b0] sm:$0xff] }
  0x85   :  { %v249_v25 = vld [vmem:[#allocation5 + $0x320] sm:$0xff]  ;;  %v250_v27 = vld [vmem:[#allocation5 + $0x328] sm:$0xff]  ;;  %v7453_v29 = vcombine.low %v254_v18, %v258_v19  ;;  %v200_v11 = vld [vmem:[#allocation5 + $0x198] sm:$0xff]  ;;  %v7400_v19 = vcombine.high %v199_v9, %v203_v10 }
  0x86   :  { %v7444_v30 = vcombine.high %v245_v24, %v249_v25  ;;  %v7446_v31 = vcombine.high %v246_v26, %v250_v27  ;;  %v237_v32 = vld [vmem:[#allocation5 + $0x2c0] sm:$0xff]  ;;  %v238_v34 = vld [vmem:[#allocation5 + $0x2c8] sm:$0xff]  ;;  %v7443_v36 = vcombine.low %v245_v24, %v249_v25  ;;  %v7445_v37 = vcombine.low %v246_v26, %v250_v27  ;;  %v191_v16 = vld [vmem:[#allocation5 + $0x150] sm:$0xff] }
  0x87   :  { %970 = vmatpush1.bf16.msra.mxu0 %v7363_v50  ;;  %1011 = vmatpush1.bf16.msra.mxu1 %v7365_v51  ;;  %v241_v33 = vld [vmem:[#allocation5 + $0x2e0] sm:$0xff]  ;;  %v242_v35 = vld [vmem:[#allocation5 + $0x2e8] sm:$0xff]  ;;  %v195_v17 = vld [vmem:[#allocation5 + $0x170] sm:$0xff] }
  0x88   :  { %971 = vmatprep.subr.bf16.mxu0 %v7356_v52  ;;  %1012 = vmatprep.subr.bf16.mxu1 %v7358_v54  ;;  %v7436_v38 = vcombine.high %v237_v32, %v241_v33  ;;  %v7438_v39 = vcombine.high %v238_v34, %v242_v35  ;;  %v229_v40 = vld [vmem:[#allocation5 + $0x280] sm:$0xff]  ;;  %v230_v42 = vld [vmem:[#allocation5 + $0x288] sm:$0xff]  ;;  %v7435_v44 = vcombine.low %v237_v32, %v241_v33  ;;  %v183_v24 = vld [vmem:[#allocation5 + $0x110] sm:$0xff] }
  0x89   :  { %v233_v41 = vld [vmem:[#allocation5 + $0x2a0] sm:$0xff]  ;;  %v234_v43 = vld [vmem:[#allocation5 + $0x2a8] sm:$0xff]  ;;  %v7437_v45 = vcombine.low %v238_v34, %v242_v35  ;;  %v187_v25 = vld [vmem:[#allocation5 + $0x130] sm:$0xff]  ;;  %v7392_v27 = vcombine.high %v191_v16, %v195_v17 }
  0x8a   :  { %v7428_v46 = vcombine.high %v229_v40, %v233_v41  ;;  %v7430_v47 = vcombine.high %v230_v42, %v234_v43  ;;  %v221_v48 = vld [vmem:[#allocation5 + $0x240] sm:$0xff]  ;;  %v222_v50 = vld [vmem:[#allocation5 + $0x248] sm:$0xff]  ;;  %v7427_v52 = vcombine.low %v229_v40, %v233_v41  ;;  %v7429_v53 = vcombine.low %v230_v42, %v234_v43  ;;  %v175_v32 = vld [vmem:[#allocation5 + $0xd0] sm:$0xff] }
  0x8b   :  { %972 = vmatpush1.bf16.msra.mxu0 %v7355_v60  ;;  %1013 = vmatpush1.bf16.msra.mxu1 %v7357_v61  ;;  %v225_v49 = vld [vmem:[#allocation5 + $0x260] sm:$0xff]  ;;  %v226_v51 = vld [vmem:[#allocation5 + $0x268] sm:$0xff]  ;;  %v179_v33 = vld [vmem:[#allocation5 + $0xf0] sm:$0xff]  ;;  %v7384_v35 = vcombine.high %v183_v24, %v187_v25 }
  0x8c   :  { %973 = vmatprep.subr.bf16.mxu0 %v7348_v62  ;;  %1014 = vmatprep.subr.bf16.mxu1 %v7350_v63  ;;  %v7420_v54 = vcombine.high %v221_v48, %v225_v49  ;;  %v7422_v55 = vcombine.high %v222_v50, %v226_v51  ;;  %v213_v56 = vld [vmem:[#allocation5 + $0x200] sm:$0xff]  ;;  %v214_v59 = vld [vmem:[#allocation5 + $0x208] sm:$0xff]  ;;  %v7419_v61 = vcombine.low %v221_v48, %v225_v49  ;;  %v167_v40 = vld [vmem:[#allocation5 + $0x90] sm:$0xff] }
  0x8d   :  { %v217_v58 = vld [vmem:[#allocation5 + $0x220] sm:$0xff]  ;;  %v218_v60 = vld [vmem:[#allocation5 + $0x228] sm:$0xff]  ;;  %v7421_v62 = vcombine.low %v222_v50, %v226_v51  ;;  %v171_v41 = vld [vmem:[#allocation5 + $0xb0] sm:$0xff] }
  0x8e   :  { %v7412_v63 = vcombine.high %v213_v56, %v217_v58  ;;  %v7414_v0 = vcombine.high %v214_v59, %v218_v60  ;;  %v168_v43 = vld [vmem:[#allocation5 + $0x98] sm:$0xff]  ;;  %v163_v48 = vld [vmem:[#allocation5 + $0x70] sm:$0xff]  ;;  %v7368_v50 = vcombine.high %v167_v40, %v171_v41 }
  0x8f   :  { %974 = vmatpush1.bf16.msra.mxu0 %v7347_v4  ;;  %1015 = vmatpush1.bf16.msra.mxu1 %v7349_v5  ;;  %v212_v4 = vld [vmem:[#allocation5 + $0x1f8] sm:$0xff]  ;;  %v7411_v5 = vcombine.low %v213_v56, %v217_v58  ;;  %v155_v56 = vld [vmem:[#allocation5 + $0x30] sm:$0xff] }
  0x90   :  { %975 = vmatprep.subr.bf16.mxu0 %v7468_v6  ;;  %1016 = vmatprep.subr.bf16.mxu1 %v7470_v7  ;;  %v145_v6 = vld [vmem:[#allocation2] sm:$0xff]  ;;  %v7413_v7 = vcombine.low %v214_v59, %v218_v60  ;;  %v7409_v18 = vcombine.low %v208_v3, %v212_v4  ;;  %v160_v51 = vld [vmem:[#allocation5 + $0x58] sm:$0xff] }
  0x91   :  { %v152_v60 = vld [vmem:[#allocation5 + $0x18] sm:$0xff] }
  0x93   :  { %976 = vmatpush2.bf16.msra.mxu0 %v7467_v12  ;;  %1017 = vmatpush2.bf16.msra.mxu1 %v7469_v13  ;;  %v7410_v12 = vcombine.high %v208_v3, %v212_v4  ;;  %v204_v13 = vld [vmem:[#allocation5 + $0x1b8] sm:$0xff] }
  0x94   :  { %977 = vmatprep.subr.bf16.mxu0 %v7460_v14  ;;  %1018 = vmatprep.subr.bf16.mxu1 %v7462_v15  ;;  %v9115_v14 = vpack.c.bf16 %v145_v6, %v145_v6  ;;  %v7407_v15 = vcombine.low %v207_v1, %v211_v2  ;;  %v7401_v26 = vcombine.low %v200_v11, %v204_v13  ;;  %v275_v1 = vld [vmem:[#allocation5 + $0x3f0] sm:$0xff]  ;;  %v272_v4 = vld [vmem:[#allocation5 + $0x3d8] sm:$0xff] }
  0x97   :  { %978 = vmatpush2.bf16.msra.mxu0 %v7459_v20  ;;  %1019 = vmatpush2.bf16.msra.mxu1 %v7461_v21  ;;  %v192_v20 = vld [vmem:[#allocation5 + $0x158] sm:$0xff] }
  0x98   :  { %979 = vmatprep.subr.bf16.mxu0 %v7452_v22  ;;  %1020 = vmatprep.subr.bf16.mxu1 %v7454_v23  ;;  %v196_v21 = vld [vmem:[#allocation5 + $0x178] sm:$0xff]  ;;  %v7402_v22 = vcombine.high %v200_v11, %v204_v13  ;;  %v7399_v23 = vcombine.low %v199_v9, %v203_v10  ;;  %v267_v9 = vld [vmem:[#allocation5 + $0x3b0] sm:$0xff] }
  0x99   :  { %v7393_v34 = vcombine.low %v192_v20, %v196_v21  ;;  %v268_v13 = vld [vmem:[#allocation5 + $0x3b8] sm:$0xff] }
  0x9b   :  { %980 = vmatpush2.bf16.msra.mxu0 %v7451_v28  ;;  %1021 = vmatpush2.bf16.msra.mxu1 %v7453_v29  ;;  %v184_v28 = vld [vmem:[#allocation5 + $0x118] sm:$0xff] }
  0x9c   :  { %981 = vmatprep.subr.bf16.mxu0 %v7444_v30  ;;  %1022 = vmatprep.subr.bf16.mxu1 %v7446_v31  ;;  %v188_v29 = vld [vmem:[#allocation5 + $0x138] sm:$0xff]  ;;  %v7394_v30 = vcombine.high %v192_v20, %v196_v21  ;;  %v7391_v31 = vcombine.low %v191_v16, %v195_v17  ;;  %v255_v17 = vld [vmem:[#allocation5 + $0x350] sm:$0xff] }
  0x9d   :  { %v7385_v42 = vcombine.low %v184_v28, %v188_v29  ;;  %v256_v21 = vld [vmem:[#allocation5 + $0x358] sm:$0xff] }
  0x9f   :  { %982 = vmatpush2.bf16.msra.mxu0 %v7443_v36  ;;  %1023 = vmatpush2.bf16.msra.mxu1 %v7445_v37  ;;  %v176_v36 = vld [vmem:[#allocation5 + $0xd8] sm:$0xff] }
  0xa0   :  { %983 = vmatprep.subr.bf16.mxu0 %v7436_v38  ;;  %1024 = vmatprep.subr.bf16.mxu1 %v7438_v39  ;;  %v180_v37 = vld [vmem:[#allocation5 + $0xf8] sm:$0xff]  ;;  %v7386_v38 = vcombine.high %v184_v28, %v188_v29  ;;  %v7383_v39 = vcombine.low %v183_v24, %v187_v25  ;;  %v247_v25 = vld [vmem:[#allocation5 + $0x310] sm:$0xff] }
  0xa1   :  { %v7377_v49 = vcombine.low %v176_v36, %v180_v37  ;;  %v248_v29 = vld [vmem:[#allocation5 + $0x318] sm:$0xff] }
  0xa3   :  { %984 = vmatpush2.bf16.msra.mxu0 %v7435_v44  ;;  %1025 = vmatpush2.bf16.msra.mxu1 %v7437_v45  ;;  %v172_v44 = vld [vmem:[#allocation5 + $0xb8] sm:$0xff]  ;;  %v7378_v45 = vcombine.high %v176_v36, %v180_v37 }
  0xa4   :  { %985 = vmatprep.subr.bf16.mxu0 %v7428_v46  ;;  %1026 = vmatprep.subr.bf16.mxu1 %v7430_v47  ;;  %v7375_v46 = vcombine.low %v175_v32, %v179_v33  ;;  %v159_v47 = vld [vmem:[#allocation5 + $0x50] sm:$0xff]  ;;  %v7369_v58 = vcombine.low %v168_v43, %v172_v44  ;;  %v240_v37 = vld [vmem:[#allocation5 + $0x2d8] sm:$0xff] }
  0xa5   :  { %v7360_v59 = vcombine.high %v159_v47, %v163_v48 }
  0xa7   :  { %986 = vmatpush2.bf16.msra.mxu0 %v7427_v52  ;;  %1027 = vmatpush2.bf16.msra.mxu1 %v7429_v53  ;;  %v164_v52 = vld [vmem:[#allocation5 + $0x78] sm:$0xff]  ;;  %v7370_v53 = vcombine.high %v168_v43, %v172_v44 }
  0xa8   :  { %987 = vmatprep.subr.bf16.mxu0 %v7420_v54  ;;  %1028 = vmatprep.subr.bf16.mxu1 %v7422_v55  ;;  %v7367_v54 = vcombine.low %v167_v40, %v171_v41  ;;  %v151_v55 = vld [vmem:[#allocation5 + $0x10] sm:$0xff]  ;;  %v7361_v2 = vcombine.low %v160_v51, %v164_v52  ;;  %v232_v44 = vld [vmem:[#allocation5 + $0x298] sm:$0xff] }
  0xa9   :  { %v7352_v3 = vcombine.high %v151_v55, %v155_v56  ;;  %v231_v41 = vld [vmem:[#allocation5 + $0x290] sm:$0xff] }
  0xab   :  { %988 = vmatpush2.bf16.msra.mxu0 %v7419_v61  ;;  %1029 = vmatpush2.bf16.msra.mxu1 %v7421_v62  ;;  %v156_v61 = vld [vmem:[#allocation5 + $0x38] sm:$0xff]  ;;  %v7362_v62 = vcombine.high %v160_v51, %v164_v52 }
  0xac   :  { %989 = vmatprep.subr.bf16.mxu0 %v7412_v63  ;;  %1030 = vmatprep.subr.bf16.mxu1 %v7414_v0  ;;  %v7359_v63 = vcombine.low %v159_v47, %v163_v48  ;;  %v271_v0 = vld [vmem:[#allocation5 + $0x3d0] sm:$0xff]  ;;  %v7354_v6 = vcombine.high %v152_v60, %v156_v61  ;;  %v7353_v10 = vcombine.low %v152_v60, %v156_v61  ;;  %v224_v52 = vld [vmem:[#allocation5 + $0x258] sm:$0xff] }
  0xad   :  { %v7472_v11 = vcombine.high %v271_v0, %v275_v1  ;;  %v7471_v16 = vcombine.low %v271_v0, %v275_v1  ;;  %v223_v48 = vld [vmem:[#allocation5 + $0x250] sm:$0xff]  ;;  %v216_v61 = vld [vmem:[#allocation5 + $0x218] sm:$0xff]  ;;  %v1203_v1 = vld [vmem:[#allocation8 + $0x1c0] sm:$0xff] }
  0xaf   :  { %990 = vmatpush2.bf16.msra.mxu0 %v7411_v5  ;;  %1031 = vmatpush2.bf16.msra.mxu1 %v7413_v7  ;;  %v276_v5 = vld [vmem:[#allocation5 + $0x3f8] sm:$0xff]  ;;  %v7351_v7 = vcombine.low %v151_v55, %v155_v56  ;;  %v215_v56 = vld [vmem:[#allocation5 + $0x210] sm:$0xff] }
  0xb0   :  { %1041 = vmatprep.subr.bf16.mxu0 %v7408_v8  ;;  %1082 = vmatprep.subr.bf16.mxu1 %v7410_v12  ;;  %v263_v8 = vld [vmem:[#allocation5 + $0x390] sm:$0xff]  ;;  %v264_v12 = vld [vmem:[#allocation5 + $0x398] sm:$0xff] }
  0xb1   :  { %v7464_v20 = vcombine.high %v263_v8, %v267_v9  ;;  %v7463_v24 = vcombine.low %v263_v8, %v267_v9  ;;  %v1195_v9 = vld [vmem:[#allocation8 + $0x180] sm:$0xff] }
  0xb2   :  { %992 = vmatmul.mubr.bf16.vlgmr.msra.gmra.mxu0 %v9115_v14  ;;  %1033 = vmatmul.mubr.bf16.vlgmr.msra.gmra.mxu1 %v9115_v14 }
  0xb3   :  { %1042 = vmatpush1.bf16.msra.mxu0 %v7407_v15  ;;  %1083 = vmatpush1.bf16.msra.mxu1 %v7409_v18  ;;  %v7474_v15 = vcombine.high %v272_v4, %v276_v5  ;;  %v259_v18 = vld [vmem:[#allocation5 + $0x370] sm:$0xff] }
  0xb4   :  { %1043 = vmatprep.subr.bf16.mxu0 %v7400_v19  ;;  %1084 = vmatprep.subr.bf16.mxu1 %v7402_v22  ;;  %v7473_v19 = vcombine.low %v272_v4, %v276_v5  ;;  %v260_v22 = vld [vmem:[#allocation5 + $0x378] sm:$0xff]  ;;  %v7456_v28 = vcombine.high %v255_v17, %v259_v18  ;;  %v1331_v5 = vld [vmem:[#allocation8 + $0x5c0] sm:$0xff] }
  0xb5   :  { %1073 = vmatprep.mubr.bf16.mxu0 %v9111_v57  ;;  %1114 = vmatprep.mubr.bf16.mxu1 %v9111_v57  ;;  %v7376_v57 = vcombine.high %v175_v32, %v179_v33  ;;  %v7455_v32 = vcombine.low %v255_v17, %v259_v18  ;;  %v239_v33 = vld [vmem:[#allocation5 + $0x2d0] sm:$0xff]  ;;  %v1187_v18 = vld [vmem:[#allocation8 + $0x140] sm:$0xff] }
  0xb7   :  { %1044 = vmatpush1.bf16.msra.mxu0 %v7399_v23  ;;  %1085 = vmatpush1.bf16.msra.mxu1 %v7401_v26  ;;  %v7466_v23 = vcombine.high %v264_v12, %v268_v13  ;;  %v251_v26 = vld [vmem:[#allocation5 + $0x330] sm:$0xff] }
  0xb8   :  { %1045 = vmatprep.subr.bf16.mxu0 %v7392_v27  ;;  %1086 = vmatprep.subr.bf16.mxu1 %v7394_v30  ;;  %v7465_v27 = vcombine.low %v264_v12, %v268_v13  ;;  %v252_v30 = vld [vmem:[#allocation5 + $0x338] sm:$0xff]  ;;  %v7448_v36 = vcombine.high %v247_v25, %v251_v26  ;;  %v7447_v40 = vcombine.low %v247_v25, %v251_v26  ;;  %v1323_v13 = vld [vmem:[#allocation8 + $0x580] sm:$0xff] }
  0xb9   :  { %v1179_v26 = vld [vmem:[#allocation8 + $0x100] sm:$0xff] }
  0xbb   :  { %1046 = vmatpush1.bf16.msra.mxu0 %v7391_v31  ;;  %1087 = vmatpush1.bf16.msra.mxu1 %v7393_v34  ;;  %v7458_v31 = vcombine.high %v256_v21, %v260_v22  ;;  %v243_v34 = vld [vmem:[#allocation5 + $0x2f0] sm:$0xff] }
  0xbc   :  { %1047 = vmatprep.subr.bf16.mxu0 %v7384_v35  ;;  %1088 = vmatprep.subr.bf16.mxu1 %v7386_v38  ;;  %v7457_v35 = vcombine.low %v256_v21, %v260_v22  ;;  %v244_v38 = vld [vmem:[#allocation5 + $0x2f8] sm:$0xff]  ;;  %v7440_v43 = vcombine.high %v239_v33, %v243_v34  ;;  %v7439_v47 = vcombine.low %v239_v33, %v243_v34  ;;  %v1315_v22 = vld [vmem:[#allocation8 + $0x540] sm:$0xff] }
  0xbd   :  { %v1171_v34 = vld [vmem:[#allocation8 + $0xc0] sm:$0xff] }
  0xbf   :  { %1048 = vmatpush1.bf16.msra.mxu0 %v7383_v39  ;;  %1089 = vmatpush1.bf16.msra.mxu1 %v7385_v42  ;;  %v7450_v39 = vcombine.high %v248_v29, %v252_v30  ;;  %v235_v42 = vld [vmem:[#allocation5 + $0x2b0] sm:$0xff] }
  0xc0   :  { %1049 = vmatprep.subr.bf16.mxu0 %v7376_v57  ;;  %1090 = vmatprep.subr.bf16.mxu1 %v7378_v45  ;;  %v7449_v57 = vcombine.low %v248_v29, %v252_v30  ;;  %v236_v45 = vld [vmem:[#allocation5 + $0x2b8] sm:$0xff]  ;;  %v7432_v51 = vcombine.high %v231_v41, %v235_v42  ;;  %v7431_v55 = vcombine.low %v231_v41, %v235_v42  ;;  %v1307_v30 = vld [vmem:[#allocation8 + $0x500] sm:$0xff] }
  0xc1   :  { %v1163_v41 = vld [vmem:[#allocation8 + $0x80] sm:$0xff] }
  0xc2   :  { %v1167_v42 = vld [vmem:[#allocation8 + $0xa0] sm:$0xff] }
  0xc3   :  { %1050 = vmatpush1.bf16.msra.mxu0 %v7375_v46  ;;  %1091 = vmatpush1.bf16.msra.mxu1 %v7377_v49  ;;  %v7442_v46 = vcombine.high %v240_v37, %v244_v38  ;;  %v227_v49 = vld [vmem:[#allocation5 + $0x270] sm:$0xff] }
  0xc4   :  { %1051 = vmatprep.subr.bf16.mxu0 %v7368_v50  ;;  %1092 = vmatprep.subr.bf16.mxu1 %v7370_v53  ;;  %v7441_v50 = vcombine.low %v240_v37, %v244_v38  ;;  %v228_v53 = vld [vmem:[#allocation5 + $0x278] sm:$0xff]  ;;  %v7424_v60 = vcombine.high %v223_v48, %v227_v49  ;;  %v7423_v0 = vcombine.low %v223_v48, %v227_v49  ;;  %v1299_v37 = vld [vmem:[#allocation8 + $0x4c0] sm:$0xff] }
  0xc5   :  { %v1303_v38 = vld [vmem:[#allocation8 + $0x4e0] sm:$0xff] }
  0xc6   :  { %v1295_v48 = vld [vmem:[#allocation8 + $0x4a0] sm:$0xff] }
  0xc7   :  { %1052 = vmatpush1.bf16.msra.mxu0 %v7367_v54  ;;  %1093 = vmatpush1.bf16.msra.mxu1 %v7369_v58  ;;  %v7434_v54 = vcombine.high %v232_v44, %v236_v45  ;;  %v219_v58 = vld [vmem:[#allocation5 + $0x230] sm:$0xff]  ;;  %v9129_v49 = vld [vmem:[#allocation8 + $0xde0] sm:$0xff] }
  0xc8   :  { %1053 = vmatprep.subr.bf16.mxu0 %v7360_v59  ;;  %1094 = vmatprep.subr.bf16.mxu1 %v7362_v62  ;;  %v7433_v59 = vcombine.low %v232_v44, %v236_v45  ;;  %v220_v62 = vld [vmem:[#allocation5 + $0x238] sm:$0xff]  ;;  %v7416_v4 = vcombine.high %v215_v56, %v219_v58  ;;  %v7415_v8 = vcombine.low %v215_v56, %v219_v58  ;;  %v9127_v44 = vld [vmem:[#allocation8 + $0xdc0] sm:$0xff] }
  0xc9   :  { %v1155_v56 = vld [vmem:[#allocation8 + $0x40] sm:$0xff] }
  0xca   :  { %v1159_v58 = vld [vmem:[#allocation8 + $0x60] sm:$0xff] }
  0xcb   :  { %1054 = vmatpush1.bf16.msra.mxu0 %v7359_v63  ;;  %1095 = vmatpush1.bf16.msra.mxu1 %v7361_v2  ;;  %v7426_v63 = vcombine.high %v224_v52, %v228_v53  ;;  %v1207_v2 = vld [vmem:[#allocation8 + $0x1e0] sm:$0xff] }
  0xcc   :  { %1055 = vmatprep.subr.bf16.mxu0 %v7352_v3  ;;  %1096 = vmatprep.subr.bf16.mxu1 %v7354_v6  ;;  %v7425_v3 = vcombine.low %v224_v52, %v228_v53  ;;  %v1335_v6 = vld [vmem:[#allocation8 + $0x5e0] sm:$0xff]  ;;  %v7532_v12 = vcombine.high %v1203_v1, %v1207_v2  ;;  %v7531_v17 = vcombine.low %v1203_v1, %v1207_v2 }
  0xcd   :  { %v7915_v52 = vcombine.low %v9127_v44, %v9129_v49  ;;  %v1147_v1 = vld [vmem:[#allocation8] sm:$0xff] }
  0xce   :  { %v1151_v2 = vld [vmem:[#allocation8 + $0x20] sm:$0xff] }
  0xcf   :  { %1056 = vmatpush1.bf16.msra.mxu0 %v7351_v7  ;;  %1097 = vmatpush1.bf16.msra.mxu1 %v7353_v10  ;;  %v7418_v7 = vcombine.high %v216_v61, %v220_v62  ;;  %v1199_v10 = vld [vmem:[#allocation8 + $0x1a0] sm:$0xff] }
  0xd0   :  { %1057 = vmatprep.subr.bf16.mxu0 %v7472_v11  ;;  %1098 = vmatprep.subr.bf16.mxu1 %v7474_v15  ;;  %v7417_v11 = vcombine.low %v216_v61, %v220_v62  ;;  %v1327_v15 = vld [vmem:[#allocation8 + $0x5a0] sm:$0xff]  ;;  %v7524_v21 = vcombine.high %v1195_v9, %v1199_v10  ;;  %v7523_v25 = vcombine.low %v1195_v9, %v1199_v10 }
  0xd1   :  { %v1287_v61 = vld [vmem:[#allocation8 + $0x460] sm:$0xff]  ;;  %v7491_v62 = vcombine.low %v1163_v41, %v1167_v42 }
  0xd2   :  { %v1267_v9 = vld [vmem:[#allocation8 + $0x3c0] sm:$0xff] }
  0xd3   :  { %1058 = vmatpush2.bf16.msra.mxu0 %v7471_v16  ;;  %1099 = vmatpush2.bf16.msra.mxu1 %v7473_v19  ;;  %v7660_v16 = vcombine.high %v1331_v5, %v1335_v6  ;;  %v1191_v19 = vld [vmem:[#allocation8 + $0x160] sm:$0xff] }
  0xd4   :  { %1059 = vmatprep.subr.bf16.mxu0 %v7464_v20  ;;  %1100 = vmatprep.subr.bf16.mxu1 %v7466_v23  ;;  %v7659_v20 = vcombine.low %v1331_v5, %v1335_v6  ;;  %v1319_v23 = vld [vmem:[#allocation8 + $0x560] sm:$0xff]  ;;  %v7516_v29 = vcombine.high %v1187_v18, %v1191_v19  ;;  %v7515_v33 = vcombine.low %v1187_v18, %v1191_v19 }
  0xd5   :  { %v1279_v5 = vld [vmem:[#allocation8 + $0x420] sm:$0xff]  ;;  %v7483_v6 = vcombine.low %v1155_v56, %v1159_v58 }
  0xd6   :  { %v1271_v10 = vld [vmem:[#allocation8 + $0x3e0] sm:$0xff] }
  0xd7   :  { %1060 = vmatpush2.bf16.msra.mxu0 %v7463_v24  ;;  %1101 = vmatpush2.bf16.msra.mxu1 %v7465_v27  ;;  %v7652_v24 = vcombine.high %v1323_v13, %v1327_v15  ;;  %v1183_v27 = vld [vmem:[#allocation8 + $0x120] sm:$0xff] }
  0xd8   :  { %1061 = vmatprep.subr.bf16.mxu0 %v7456_v28  ;;  %1102 = vmatprep.subr.bf16.mxu1 %v7458_v31  ;;  %v7651_v28 = vcombine.low %v1323_v13, %v1327_v15  ;;  %v1311_v31 = vld [vmem:[#allocation8 + $0x520] sm:$0xff]  ;;  %v7475_v15 = vcombine.low %v1147_v1, %v1151_v2 }
  0xd9   :  { %v7635_v45 = vcombine.low %v1307_v30, %v1311_v31  ;;  %v1399_v13 = vld [vmem:[#allocation8 + $0x7e0] sm:$0xff] }
  0xda   :  { %v1259_v18 = vld [vmem:[#allocation8 + $0x380] sm:$0xff] }
  0xdb   :  { %1062 = vmatpush2.bf16.msra.mxu0 %v7455_v32  ;;  %1103 = vmatpush2.bf16.msra.mxu1 %v7457_v35  ;;  %v7644_v32 = vcombine.high %v1315_v22, %v1319_v23  ;;  %v1175_v35 = vld [vmem:[#allocation8 + $0xe0] sm:$0xff] }
  0xdc   :  { %1063 = vmatprep.subr.bf16.mxu0 %v7448_v36  ;;  %1104 = vmatprep.subr.bf16.mxu1 %v7450_v39  ;;  %v7643_v36 = vcombine.low %v1315_v22, %v1319_v23  ;;  %v7636_v39 = vcombine.high %v1307_v30, %v1311_v31  ;;  %v7499_v53 = vcombine.low %v1171_v34, %v1175_v35  ;;  %v1263_v19 = vld [vmem:[#allocation8 + $0x3a0] sm:$0xff] }
  0xdd   :  { %v1391_v22 = vld [vmem:[#allocation8 + $0x7a0] sm:$0xff]  ;;  %v7595_v23 = vcombine.low %v1267_v9, %v1271_v10  ;;  %v7587_v31 = vcombine.low %v1259_v18, %v1263_v19 }
  0xde   :  { %v1383_v30 = vld [vmem:[#allocation8 + $0x760] sm:$0xff] }
  0xdf   :  { %1064 = vmatpush2.bf16.msra.mxu0 %v7447_v40  ;;  %1105 = vmatpush2.bf16.msra.mxu1 %v7449_v57  ;;  %v7507_v40 = vcombine.low %v1179_v26, %v1183_v27  ;;  %v9123_v57 = vld [vmem:[#allocation8 + $0x9c0] sm:$0xff] }
  0xe0   :  { %1065 = vmatprep.subr.bf16.mxu0 %v7440_v43  ;;  %1106 = vmatprep.subr.bf16.mxu1 %v7442_v46  ;;  %v9125_v43 = vld [vmem:[#allocation8 + $0x9e0] sm:$0xff]  ;;  %v7500_v46 = vcombine.high %v1171_v34, %v1175_v35 }
  0xe1   :  { %v1243_v34 = vld [vmem:[#allocation8 + $0x300] sm:$0xff] }
  0xe2   :  { %v1247_v35 = vld [vmem:[#allocation8 + $0x320] sm:$0xff] }
  0xe3   :  { %1066 = vmatpush2.bf16.msra.mxu0 %v7439_v47  ;;  %1107 = vmatpush2.bf16.msra.mxu1 %v7441_v50  ;;  %v1291_v47 = vld [vmem:[#allocation8 + $0x480] sm:$0xff]  ;;  %v7628_v50 = vcombine.high %v1299_v37, %v1303_v38 }
  0xe4   :  { %1067 = vmatprep.subr.bf16.mxu0 %v7432_v51  ;;  %1108 = vmatprep.subr.bf16.mxu1 %v7434_v54  ;;  %v7787_v51 = vcombine.low %v9123_v57, %v9125_v43  ;;  %v7627_v54 = vcombine.low %v1299_v37, %v1303_v38  ;;  %v1375_v37 = vld [vmem:[#allocation8 + $0x720] sm:$0xff] }
  0xe7   :  { %1068 = vmatpush2.bf16.msra.mxu0 %v7431_v55  ;;  %1109 = vmatpush2.bf16.msra.mxu1 %v7433_v59  ;;  %v7492_v55 = vcombine.high %v1163_v41, %v1167_v42  ;;  %v1283_v59 = vld [vmem:[#allocation8 + $0x440] sm:$0xff] }
  0xe8   :  { %1069 = vmatprep.subr.bf16.mxu0 %v7424_v60  ;;  %1110 = vmatprep.subr.bf16.mxu1 %v7426_v63  ;;  %v7620_v60 = vcombine.high %v1291_v47, %v1295_v48  ;;  %v7619_v63 = vcombine.low %v1291_v47, %v1295_v48  ;;  %v1235_v41 = vld [vmem:[#allocation8 + $0x2c0] sm:$0xff]  ;;  %v7571_v48 = vcombine.low %v1243_v34, %v1247_v35 }
  0xe9   :  { %v1239_v42 = vld [vmem:[#allocation8 + $0x2e0] sm:$0xff] }
  0xea   :  { %v1367_v47 = vld [vmem:[#allocation8 + $0x6e0] sm:$0xff] }
  0xeb   :  { %1070 = vmatpush2.bf16.msra.mxu0 %v7423_v0  ;;  %1111 = vmatpush2.bf16.msra.mxu1 %v7425_v3  ;;  %v7484_v0 = vcombine.high %v1155_v56, %v1159_v58  ;;  %v1275_v3 = vld [vmem:[#allocation8 + $0x400] sm:$0xff] }
  0xec   :  { %1071 = vmatprep.subr.bf16.mxu0 %v7416_v4  ;;  %1112 = vmatprep.subr.bf16.mxu1 %v7418_v7  ;;  %v7612_v4 = vcombine.high %v1283_v59, %v1287_v61  ;;  %v7611_v7 = vcombine.low %v1283_v59, %v1287_v61  ;;  %v1355_v56 = vld [vmem:[#allocation8 + $0x680] sm:$0xff] }
  0xed   :  { %v1359_v59 = vld [vmem:[#allocation8 + $0x6a0] sm:$0xff] }
  0xef   :  { %1072 = vmatpush2.bf16.msra.mxu0 %v7415_v8  ;;  %1113 = vmatpush2.bf16.msra.mxu1 %v7417_v11  ;;  %v7476_v8 = vcombine.high %v1147_v1, %v1151_v2  ;;  %v1395_v11 = vld [vmem:[#allocation8 + $0x7c0] sm:$0xff]  ;;  %v7684_v2 = vcombine.high %v1355_v56, %v1359_v59 }
  0xf0   :  { %4261 = vmatprep.subr.bf16.mxu0 %v7532_v12  ;;  %4302 = vmatprep.subr.bf16.mxu1 %v7660_v16  ;;  %v7604_v12 = vcombine.high %v1275_v3, %v1279_v5  ;;  %v7603_v16 = vcombine.low %v1275_v3, %v1279_v5  ;;  %v1347_v1 = vld [vmem:[#allocation8 + $0x640] sm:$0xff]  ;;  %v7683_v5 = vcombine.low %v1355_v56, %v1359_v59 }
  0xf1   :  { %v1351_v3 = vld [vmem:[#allocation8 + $0x660] sm:$0xff] }
  0xf2   :  { %1074 = vmatmul.mubr.bf16.vlgmr.msra.gmra.mxu0 %v9115_v14  ;;  %1115 = vmatmul.mubr.bf16.vlgmr.msra.gmra.mxu1 %v9115_v14  ;;  %v7508_v14 = vcombine.high %v1179_v26, %v1183_v27  ;;  %v1251_v26 = vld [vmem:[#allocation8 + $0x340] sm:$0xff] }
  0xf3   :  { %4262 = vmatpush1.bf16.msra.mxu0 %v7531_v17  ;;  %4303 = vmatpush1.bf16.msra.mxu1 %v7659_v20  ;;  %v7596_v17 = vcombine.high %v1267_v9, %v1271_v10  ;;  %v1387_v20 = vld [vmem:[#allocation8 + $0x780] sm:$0xff]  ;;  %v7676_v10 = vcombine.high %v1347_v1, %v1351_v3 }
  0xf4   :  { %4263 = vmatprep.subr.bf16.mxu0 %v7524_v21  ;;  %4304 = vmatprep.subr.bf16.mxu1 %v7652_v24  ;;  %v7724_v21 = vcombine.high %v1395_v11, %v1399_v13  ;;  %v7723_v24 = vcombine.low %v1395_v11, %v1399_v13  ;;  %v1255_v27 = vld [vmem:[#allocation8 + $0x360] sm:$0xff]  ;;  %v7675_v13 = vcombine.low %v1347_v1, %v1351_v3 }
  0xf5   :  { %v7579_v38 = vcombine.low %v1251_v26, %v1255_v27  ;;  %v1339_v9 = vld [vmem:[#allocation8 + $0x600] sm:$0xff] }
  0xf6   :  { %v1343_v11 = vld [vmem:[#allocation8 + $0x620] sm:$0xff] }
  0xf7   :  { %4264 = vmatpush1.bf16.msra.mxu0 %v7523_v25  ;;  %4305 = vmatpush1.bf16.msra.mxu1 %v7651_v28  ;;  %v7588_v25 = vcombine.high %v1259_v18, %v1263_v19  ;;  %v1379_v28 = vld [vmem:[#allocation8 + $0x740] sm:$0xff]  ;;  %v7667_v18 = vcombine.low %v1339_v9, %v1343_v11  ;;  %v7788_v19 = vcombine.high %v9123_v57, %v9125_v43 }
  0xf8   :  { %4265 = vmatprep.subr.bf16.mxu0 %v7516_v29  ;;  %4306 = vmatprep.subr.bf16.mxu1 %v7644_v32  ;;  %v7716_v29 = vcombine.high %v1387_v20, %v1391_v22  ;;  %v7715_v32 = vcombine.low %v1387_v20, %v1391_v22  ;;  %v7916_v20 = vcombine.high %v9127_v44, %v9129_v49  ;;  %v1455_v56 = vld [vmem:[#allocation8 + $0x9a0] sm:$0xff] }
  0xf9   :  { %v1579_v59 = vld [vmem:[#allocation8 + $0xd80] sm:$0xff] }
  0xfa   :  { %v1443_v3 = vld [vmem:[#allocation8 + $0x940] sm:$0xff] }
  0xfb   :  { %4266 = vmatpush1.bf16.msra.mxu0 %v7515_v33  ;;  %4307 = vmatpush1.bf16.msra.mxu1 %v7643_v36  ;;  %v7580_v33 = vcombine.high %v1251_v26, %v1255_v27  ;;  %v1371_v36 = vld [vmem:[#allocation8 + $0x700] sm:$0xff] }
  0xfc   :  { %4267 = vmatprep.subr.bf16.mxu0 %v7508_v14  ;;  %4308 = vmatprep.subr.bf16.mxu1 %v7636_v39  ;;  %v7708_v14 = vcombine.high %v1379_v28, %v1383_v30  ;;  %v7707_v39 = vcombine.low %v1379_v28, %v1383_v30  ;;  %v1431_v44 = vld [vmem:[#allocation8 + $0x8e0] sm:$0xff] }
  0xfd   :  { %v1555_v49 = vld [vmem:[#allocation8 + $0xcc0] sm:$0xff] }
  0xff   :  { %4268 = vmatpush1.bf16.msra.mxu0 %v7507_v40  ;;  %4309 = vmatpush1.bf16.msra.mxu1 %v7635_v45  ;;  %v7572_v40 = vcombine.high %v1243_v34, %v1247_v35  ;;  %v1363_v45 = vld [vmem:[#allocation8 + $0x6c0] sm:$0xff] }
 0x100   :  { %4269 = vmatprep.subr.bf16.mxu0 %v7500_v46  ;;  %4310 = vmatprep.subr.bf16.mxu1 %v7628_v50  ;;  %v7700_v46 = vcombine.high %v1371_v36, %v1375_v37  ;;  %v7699_v50 = vcombine.low %v1371_v36, %v1375_v37  ;;  %v7692_v58 = vcombine.high %v1363_v45, %v1367_v47 }
 0x101   :  { %v7691_v61 = vcombine.low %v1363_v45, %v1367_v47 }
 0x103   :  { %4270 = vmatpush1.bf16.msra.mxu0 %v7499_v53  ;;  %4311 = vmatpush1.bf16.msra.mxu1 %v7627_v54  ;;  %v7564_v53 = vcombine.high %v1235_v41, %v1239_v42  ;;  %v1227_v54 = vld [vmem:[#allocation8 + $0x280] sm:$0xff] }
 0x104   :  { %4271 = vmatprep.subr.bf16.mxu0 %v7492_v55  ;;  %4312 = vmatprep.subr.bf16.mxu1 %v7620_v60  ;;  %v1231_v55 = vld [vmem:[#allocation8 + $0x2a0] sm:$0xff]  ;;  %v7563_v60 = vcombine.low %v1235_v41, %v1239_v42 }
 0x107   :  { %4272 = vmatpush1.bf16.msra.mxu0 %v7491_v62  ;;  %4313 = vmatpush1.bf16.msra.mxu1 %v7619_v63  ;;  %v7556_v62 = vcombine.high %v1227_v54, %v1231_v55  ;;  %v1219_v63 = vld [vmem:[#allocation8 + $0x240] sm:$0xff] }
 0x108   :  { %4273 = vmatprep.subr.bf16.mxu0 %v7484_v0  ;;  %4314 = vmatprep.subr.bf16.mxu1 %v7612_v4  ;;  %v1223_v0 = vld [vmem:[#allocation8 + $0x260] sm:$0xff]  ;;  %v7555_v4 = vcombine.low %v1227_v54, %v1231_v55 }
 0x109   :  { %v1451_v55 = vld [vmem:[#allocation8 + $0x980] sm:$0xff] }
 0x10b   :  { %4274 = vmatpush1.bf16.msra.mxu0 %v7483_v6  ;;  %4315 = vmatpush1.bf16.msra.mxu1 %v7611_v7  ;;  %v7548_v6 = vcombine.high %v1219_v63, %v1223_v0  ;;  %v1211_v7 = vld [vmem:[#allocation8 + $0x200] sm:$0xff] }
 0x10c   :  { %4275 = vmatprep.subr.bf16.mxu0 %v7476_v8  ;;  %4316 = vmatprep.subr.bf16.mxu1 %v7604_v12  ;;  %v1215_v8 = vld [vmem:[#allocation8 + $0x220] sm:$0xff]  ;;  %v7547_v12 = vcombine.low %v1219_v63, %v1223_v0  ;;  %v7780_v0 = vcombine.high %v1451_v55, %v1455_v56 }
 0x10f   :  { %4276 = vmatpush1.bf16.msra.mxu0 %v7475_v15  ;;  %4317 = vmatpush1.bf16.msra.mxu1 %v7603_v16  ;;  %v7540_v15 = vcombine.high %v1211_v7, %v1215_v8  ;;  %v7668_v16 = vcombine.high %v1339_v9, %v1343_v11  ;;  %v1435_v11 = vld [vmem:[#allocation8 + $0x900] sm:$0xff] }
 0x110   :  { %4277 = vmatprep.subr.bf16.mxu0 %v7596_v17  ;;  %4318 = vmatprep.subr.bf16.mxu1 %v7724_v21  ;;  %v7539_v17 = vcombine.low %v1211_v7, %v1215_v8  ;;  %v279_v21 = vlaneseq  ;;  %v7779_v7 = vcombine.low %v1451_v55, %v1455_v56  ;;  %v1523_v56 = vld [vmem:[#allocation8 + $0xbc0] sm:$0xff] }
 0x112   :  { %v9139_v22 = vshrl.u32 %v279_v21, 7 }
 0x113   :  { %4278 = vmatpush2.bf16.msra.mxu0 %v7595_v23  ;;  %4319 = vmatpush2.bf16.msra.mxu1 %v7723_v24  ;;  %v9144_v24 = vld [vmem:[#allocation7] sm:$0xff] }
 0x114   :  { %4279 = vmatprep.subr.bf16.mxu0 %v7588_v25  ;;  %4320 = vmatprep.subr.bf16.mxu1 %v7716_v29  ;;  %v9142_v23 = vsub.s32 0, %v9139_v22  ;;  %v9147_v25 = vsub.s32 2, %v9139_v22  ;;  %v9150_v26 = vsub.s32 1, %v9139_v22  ;;  %v9153_v27 = vsub.s32 3, %v9139_v22 }
 0x116   :  { %v282_v28 = vrot.slane %v9144_v24, %v9142_v23  ;;  %v290_v29 = vrot.slane %v9144_v24, %v9147_v25  ;;  %v286_v30 = vrot.slane %v9144_v24, %v9150_v26 }
 0x117   :  { %4280 = vmatpush2.bf16.msra.mxu0 %v7587_v31  ;;  %4321 = vmatpush2.bf16.msra.mxu1 %v7715_v32  ;;  %v294_v32 = vrot.slane %v9144_v24, %v9153_v27 }
 0x118   :  { %4281 = vmatprep.subr.bf16.mxu0 %v7580_v33  ;;  %4322 = vmatprep.subr.bf16.mxu1 %v7708_v14 }
 0x11b   :  { %4282 = vmatpush2.bf16.msra.mxu0 %v7579_v38  ;;  %4323 = vmatpush2.bf16.msra.mxu1 %v7707_v39 }
 0x11c   :  { %4283 = vmatprep.subr.bf16.mxu0 %v7572_v40  ;;  %4324 = vmatprep.subr.bf16.mxu1 %v7700_v46 }
 0x11f   :  { %4284 = vmatpush2.bf16.msra.mxu0 %v7571_v48  ;;  %4325 = vmatpush2.bf16.msra.mxu1 %v7699_v50 }
 0x120   :  { %4285 = vmatprep.subr.bf16.mxu0 %v7564_v53  ;;  %4326 = vmatprep.subr.bf16.mxu1 %v7692_v58 }
 0x123   :  { %4286 = vmatpush2.bf16.msra.mxu0 %v7563_v60  ;;  %4327 = vmatpush2.bf16.msra.mxu1 %v7691_v61  ;;  %v1583_v60 = vld [vmem:[#allocation8 + $0xda0] sm:$0xff] }
 0x124   :  { %4287 = vmatprep.subr.bf16.mxu0 %v7556_v62  ;;  %4328 = vmatprep.subr.bf16.mxu1 %v7684_v2  ;;  %v7908_v2 = vcombine.high %v1579_v59, %v1583_v60  ;;  %v7907_v8 = vcombine.low %v1579_v59, %v1583_v60  ;;  %v1651_v59 = vld [vmem:[#allocation8 + $0xfc0] sm:$0xff] }
 0x125   :  { %v1655_v60 = vld [vmem:[#allocation8 + $0xfe0] sm:$0xff] }
 0x127   :  { %4288 = vmatpush2.bf16.msra.mxu0 %v7555_v4  ;;  %4329 = vmatpush2.bf16.msra.mxu1 %v7683_v5  ;;  %v1447_v4 = vld [vmem:[#allocation8 + $0x960] sm:$0xff] }
 0x128   :  { %4289 = vmatprep.subr.bf16.mxu0 %v7548_v6  ;;  %4330 = vmatprep.subr.bf16.mxu1 %v7676_v10  ;;  %v1571_v5 = vld [vmem:[#allocation8 + $0xd40] sm:$0xff]  ;;  %v7772_v9 = vcombine.high %v1443_v3, %v1447_v4 }
 0x129   :  { %v1575_v6 = vld [vmem:[#allocation8 + $0xd60] sm:$0xff] }
 0x12a   :  { %v7900_v10 = vcombine.high %v1571_v5, %v1575_v6  ;;  %v7899_v57 = vcombine.low %v1571_v5, %v1575_v6  ;;  %v1515_v5 = vld [vmem:[#allocation8 + $0xb80] sm:$0xff] }
 0x12b   :  { %4290 = vmatpush2.bf16.msra.mxu0 %v7547_v12  ;;  %4331 = vmatpush2.bf16.msra.mxu1 %v7675_v13  ;;  %v1439_v12 = vld [vmem:[#allocation8 + $0x920] sm:$0xff] }
 0x12c   :  { %4291 = vmatprep.subr.bf16.mxu0 %v7540_v15  ;;  %4332 = vmatprep.subr.bf16.mxu1 %v7668_v16  ;;  %v1563_v13 = vld [vmem:[#allocation8 + $0xd00] sm:$0xff]  ;;  %v7771_v16 = vcombine.low %v1443_v3, %v1447_v4  ;;  %v7764_v43 = vcombine.high %v1435_v11, %v1439_v12  ;;  %v7980_v4 = vcombine.high %v1651_v59, %v1655_v60 }
 0x12d   :  { %v1567_v15 = vld [vmem:[#allocation8 + $0xd20] sm:$0xff] }
 0x12e   :  { %v1519_v6 = vld [vmem:[#allocation8 + $0xba0] sm:$0xff] }
 0x12f   :  { %4292 = vmatpush2.bf16.msra.mxu0 %v7539_v17  ;;  %4333 = vmatpush2.bf16.msra.mxu1 %v7667_v18  ;;  %v1427_v17 = vld [vmem:[#allocation8 + $0x8c0] sm:$0xff]  ;;  %v7763_v18 = vcombine.low %v1435_v11, %v1439_v12  ;;  %v7844_v11 = vcombine.high %v1515_v5, %v1519_v6 }
 0x130   :  { %4343 = vmatprep.subr.bf16.mxu0 %v7788_v19  ;;  %4384 = vmatprep.subr.bf16.mxu1 %v7916_v20  ;;  %v7891_v19 = vcombine.low %v1563_v13, %v1567_v15  ;;  %v7756_v20 = vcombine.high %v1427_v17, %v1431_v44 }
 0x172   :  { %v993_v31 = vpop.f32.mrf.mxu0  ;;  %v1034_v34 = vpop.f32.mrf.mxu1 }
 0x173   :  { %v994_v33 = vadd.f32 %v993_v31, %v282_v28  ;;  %v1035_v35 = vadd.f32 %v1034_v34, %v290_v29  ;;  %v1419_v28 = vld [vmem:[#allocation8 + $0x880] sm:$0xff] }
 0x174   :  { %v995_v36 = vpop.f32.mrf.mxu0  ;;  %v1036_v38 = vpop.f32.mrf.mxu1  ;;  %v1423_v29 = vld [vmem:[#allocation8 + $0x8a0] sm:$0xff] }
 0x175   :  { %v1123_v14 = vmul.f32 0.2, %v994_v33  ;;  %v996_v37 = vadd.f32 %v995_v36, %v286_v30  ;;  %v1125_v39 = vmul.f32 0.2, %v1035_v35  ;;  %v1037_v40 = vadd.f32 %v1036_v38, %v294_v32  ;;  %v1547_v30 = vld [vmem:[#allocation8 + $0xc80] sm:$0xff] }
 0x176   :  { %v997_v41 = vpop.f32.mrf.mxu0  ;;  %v1038_v45 = vpop.f32.mrf.mxu1  ;;  %v1551_v31 = vld [vmem:[#allocation8 + $0xca0] sm:$0xff]  ;;  %v7755_v32 = vcombine.low %v1427_v17, %v1431_v44  ;;  %v7748_v34 = vcombine.high %v1419_v28, %v1423_v29 }
 0x177   :  { %v1124_v42 = vmul.f32 0.2, %v996_v37  ;;  %v1131_v46 = vmax.f32 %v994_v33, %v1123_v14  ;;  %v1126_v47 = vmul.f32 0.2, %v1037_v40  ;;  %v1133_v50 = vmax.f32 %v1035_v35, %v1125_v39  ;;  %v1411_v36 = vld [vmem:[#allocation8 + $0x840] sm:$0xff] }
 0x178   :  { %v998_v48 = vpop.f32.mrf.mxu0  ;;  %v1039_v54 = vpop.f32.mrf.mxu1  ;;  %v7876_v35 = vcombine.high %v1547_v30, %v1551_v31  ;;  %v1415_v14 = vld [vmem:[#allocation8 + $0x860] sm:$0xff]  ;;  %v7747_v39 = vcombine.low %v1419_v28, %v1423_v29 }
 0x179   :  { %v1132_v53 = vmax.f32 %v996_v37, %v1124_v42  ;;  %v1134_v58 = vmax.f32 %v1037_v40, %v1126_v47  ;;  %v9165_v62 = vpack.c.bf16 %v1131_v46, %v1131_v46  ;;  %v9169_v1 = vpack.c.bf16 %v1133_v50, %v1133_v50  ;;  %v1539_v37 = vld [vmem:[#allocation8 + $0xc40] sm:$0xff] }
 0x17a   :  { %v1543_v38 = vld [vmem:[#allocation8 + $0xc60] sm:$0xff]  ;;  %v7875_v40 = vcombine.low %v1547_v30, %v1551_v31  ;;  %v7740_v41 = vcombine.high %v1411_v36, %v1415_v14  ;;  %v7739_v50 = vcombine.low %v1411_v36, %v1415_v14 }
 0x17b   :  { %v9163_v61 = vpack.c.bf16 %v1132_v53, %v1132_v53  ;;  %v9167_v63 = vpack.c.bf16 %v1134_v58, %v1134_v58  ;;  %v7868_v42 = vcombine.high %v1539_v37, %v1543_v38  ;;  %v1403_v45 = vld [vmem:[#allocation8 + $0x800] sm:$0xff]  ;;  %v7867_v53 = vcombine.low %v1539_v37, %v1543_v38 }
 0x17c   :  { %v1407_v46 = vld [vmem:[#allocation8 + $0x820] sm:$0xff] }
 0x17d   :  { %4293 = vmatprep.mubr.bf16.mxu0 %v9163_v61  ;;  %4334 = vmatprep.mubr.bf16.mxu1 %v9167_v63  ;;  %v1531_v47 = vld [vmem:[#allocation8 + $0xc00] sm:$0xff]  ;;  %v7732_v54 = vcombine.high %v1403_v45, %v1407_v46 }
 0x17e   :  { %4294 = vmatmul.mubr.bf16.vlgmr.msra.gmra.mxu0 %v9165_v62  ;;  %4335 = vmatmul.mubr.bf16.vlgmr.msra.gmra.mxu1 %v9169_v1  ;;  %v1535_v48 = vld [vmem:[#allocation8 + $0xc20] sm:$0xff] }
 0x17f   :  { %4344 = vmatpush1.bf16.msra.mxu0 %v7787_v51  ;;  %4385 = vmatpush1.bf16.msra.mxu1 %v7915_v52  ;;  %v7892_v51 = vcombine.high %v1563_v13, %v1567_v15  ;;  %v1559_v52 = vld [vmem:[#allocation8 + $0xce0] sm:$0xff]  ;;  %v7860_v55 = vcombine.high %v1531_v47, %v1535_v48 }
 0x180   :  { %4345 = vmatprep.subr.bf16.mxu0 %v7780_v0  ;;  %4386 = vmatprep.subr.bf16.mxu1 %v7908_v2  ;;  %v7884_v21 = vcombine.high %v1555_v49, %v1559_v52  ;;  %v7883_v33 = vcombine.low %v1555_v49, %v1559_v52  ;;  %v1527_v58 = vld [vmem:[#allocation8 + $0xbe0] sm:$0xff]  ;;  %v7731_v0 = vcombine.low %v1403_v45, %v1407_v46 }
 0x181   :  { %v7859_v2 = vcombine.low %v1531_v47, %v1535_v48  ;;  %v7852_v3 = vcombine.high %v1523_v56, %v1527_v58  ;;  %v1507_v13 = vld [vmem:[#allocation8 + $0xb40] sm:$0xff]  ;;  %v305_v47 = vsub.s32 6, %v9139_v22 }
 0x182   :  { %v1511_v15 = vld [vmem:[#allocation8 + $0xb60] sm:$0xff] }
 0x183   :  { %4346 = vmatpush1.bf16.msra.mxu0 %v7779_v7  ;;  %4387 = vmatpush1.bf16.msra.mxu1 %v7907_v8  ;;  %v1643_v7 = vld [vmem:[#allocation8 + $0xf80] sm:$0xff]  ;;  %v7836_v17 = vcombine.high %v1507_v13, %v1511_v15 }
 0x184   :  { %4347 = vmatprep.subr.bf16.mxu0 %v7772_v9  ;;  %4388 = vmatprep.subr.bf16.mxu1 %v7900_v10  ;;  %v1647_v8 = vld [vmem:[#allocation8 + $0xfa0] sm:$0xff]  ;;  %v7851_v9 = vcombine.low %v1523_v56, %v1527_v58  ;;  %v7979_v10 = vcombine.low %v1651_v59, %v1655_v60 }
 0x185   :  { %v7972_v12 = vcombine.high %v1643_v7, %v1647_v8  ;;  %v1499_v49 = vld [vmem:[#allocation8 + $0xb00] sm:$0xff] }
 0x186   :  { %v1503_v52 = vld [vmem:[#allocation8 + $0xb20] sm:$0xff] }
 0x187   :  { %4348 = vmatpush1.bf16.msra.mxu0 %v7771_v16  ;;  %4389 = vmatpush1.bf16.msra.mxu1 %v7899_v57  ;;  %v1635_v16 = vld [vmem:[#allocation8 + $0xf40] sm:$0xff]  ;;  %v7828_v28 = vcombine.high %v1499_v49, %v1503_v52 }
 0x188   :  { %4349 = vmatprep.subr.bf16.mxu0 %v7764_v43  ;;  %4390 = vmatprep.subr.bf16.mxu1 %v7892_v51  ;;  %v1639_v57 = vld [vmem:[#allocation8 + $0xf60] sm:$0xff]  ;;  %v7843_v43 = vcombine.low %v1515_v5, %v1519_v6  ;;  %v7971_v51 = vcombine.low %v1643_v7, %v1647_v8 }
 0x189   :  { %v7964_v44 = vcombine.high %v1635_v16, %v1639_v57  ;;  %v1491_v30 = vld [vmem:[#allocation8 + $0xac0] sm:$0xff] }
 0x18a   :  { %v1495_v31 = vld [vmem:[#allocation8 + $0xae0] sm:$0xff] }
 0x18b   :  { %4350 = vmatpush1.bf16.msra.mxu0 %v7763_v18  ;;  %4391 = vmatpush1.bf16.msra.mxu1 %v7891_v19  ;;  %v1627_v18 = vld [vmem:[#allocation8 + $0xf00] sm:$0xff]  ;;  %v7820_v36 = vcombine.high %v1491_v30, %v1495_v31 }
 0x18c   :  { %4351 = vmatprep.subr.bf16.mxu0 %v7756_v20  ;;  %4392 = vmatprep.subr.bf16.mxu1 %v7884_v21  ;;  %v1631_v19 = vld [vmem:[#allocation8 + $0xf20] sm:$0xff]  ;;  %v7835_v20 = vcombine.low %v1507_v13, %v1511_v15  ;;  %v7963_v21 = vcombine.low %v1635_v16, %v1639_v57 }
 0x18d   :  { %v7956_v29 = vcombine.high %v1627_v18, %v1631_v19  ;;  %v1483_v37 = vld [vmem:[#allocation8 + $0xa80] sm:$0xff] }
 0x18e   :  { %v1487_v38 = vld [vmem:[#allocation8 + $0xaa0] sm:$0xff] }
 0x18f   :  { %4352 = vmatpush1.bf16.msra.mxu0 %v7755_v32  ;;  %4393 = vmatpush1.bf16.msra.mxu1 %v7883_v33  ;;  %v1619_v32 = vld [vmem:[#allocation8 + $0xec0] sm:$0xff]  ;;  %v7812_v46 = vcombine.high %v1483_v37, %v1487_v38  ;;  %v7811_v59 = vcombine.low %v1483_v37, %v1487_v38 }
 0x190   :  { %4353 = vmatprep.subr.bf16.mxu0 %v7748_v34  ;;  %4394 = vmatprep.subr.bf16.mxu1 %v7876_v35  ;;  %v1623_v33 = vld [vmem:[#allocation8 + $0xee0] sm:$0xff]  ;;  %v7827_v34 = vcombine.low %v1499_v49, %v1503_v52  ;;  %v7955_v35 = vcombine.low %v1627_v18, %v1631_v19  ;;  %v1204_v18 = vld [vmem:[#allocation8 + $0x1c8] sm:$0xff] }
 0x191   :  { %v7948_v14 = vcombine.high %v1619_v32, %v1623_v33  ;;  %v7947_v45 = vcombine.low %v1619_v32, %v1623_v33  ;;  %v1603_v56 = vld [vmem:[#allocation8 + $0xe40] sm:$0xff]  ;;  %v1208_v19 = vld [vmem:[#allocation8 + $0x1e8] sm:$0xff] }
 0x192   :  { %v1607_v58 = vld [vmem:[#allocation8 + $0xe60] sm:$0xff] }
 0x193   :  { %4354 = vmatpush1.bf16.msra.mxu0 %v7747_v39  ;;  %4395 = vmatpush1.bf16.msra.mxu1 %v7875_v40  ;;  %v1611_v39 = vld [vmem:[#allocation8 + $0xe80] sm:$0xff]  ;;  %v7932_v5 = vcombine.high %v1603_v56, %v1607_v58 }
 0x194   :  { %4355 = vmatprep.subr.bf16.mxu0 %v7740_v41  ;;  %4396 = vmatprep.subr.bf16.mxu1 %v7868_v42  ;;  %v1615_v40 = vld [vmem:[#allocation8 + $0xea0] sm:$0xff]  ;;  %v7819_v41 = vcombine.low %v1491_v30, %v1495_v31  ;;  %v297_v42 = vsub.s32 4, %v9139_v22 }
 0x195   :  { %v7940_v48 = vcombine.high %v1611_v39, %v1615_v40  ;;  %v1467_v6 = vld [vmem:[#allocation8 + $0xa00] sm:$0xff] }
 0x196   :  { %v298_v60 = vrot.slane %v9144_v24, %v297_v42  ;;  %v1471_v7 = vld [vmem:[#allocation8 + $0xa20] sm:$0xff] }
 0x197   :  { %4356 = vmatpush1.bf16.msra.mxu0 %v7739_v50  ;;  %4397 = vmatpush1.bf16.msra.mxu1 %v7867_v53  ;;  %v301_v50 = vsub.s32 5, %v9139_v22  ;;  %v1475_v53 = vld [vmem:[#allocation8 + $0xa40] sm:$0xff]  ;;  %v7795_v32 = vcombine.low %v1467_v6, %v1471_v7 }
 0x198   :  { %4357 = vmatprep.subr.bf16.mxu0 %v7732_v54  ;;  %4398 = vmatprep.subr.bf16.mxu1 %v7860_v55  ;;  %v1479_v54 = vld [vmem:[#allocation8 + $0xa60] sm:$0xff]  ;;  %v309_v55 = vsub.s32 7, %v9139_v22 }
 0x199   :  { %v7803_v15 = vcombine.low %v1475_v53, %v1479_v54 }
 0x19b   :  { %4358 = vmatpush1.bf16.msra.mxu0 %v7731_v0  ;;  %4399 = vmatpush1.bf16.msra.mxu1 %v7859_v2  ;;  %v7939_v0 = vcombine.low %v1611_v39, %v1615_v40  ;;  %v306_v2 = vrot.slane %v9144_v24, %v305_v47 }
 0x19c   :  { %4359 = vmatprep.subr.bf16.mxu0 %v7852_v3  ;;  %4400 = vmatprep.subr.bf16.mxu1 %v7980_v4  ;;  %v7804_v3 = vcombine.high %v1475_v53, %v1479_v54  ;;  %v302_v4 = vrot.slane %v9144_v24, %v301_v50  ;;  %v7533_v53 = vcombine.low %v1204_v18, %v1208_v19  ;;  %v1324_v54 = vld [vmem:[#allocation8 + $0x588] sm:$0xff] }
 0x19f   :  { %4360 = vmatpush2.bf16.msra.mxu0 %v7851_v9  ;;  %4401 = vmatpush2.bf16.msra.mxu1 %v7979_v10  ;;  %v310_v9 = vrot.slane %v9144_v24, %v309_v55  ;;  %v1595_v10 = vld [vmem:[#allocation8 + $0xe00] sm:$0xff] }
 0x1a0   :  { %4361 = vmatprep.subr.bf16.mxu0 %v7844_v11  ;;  %4402 = vmatprep.subr.bf16.mxu1 %v7972_v12  ;;  %v1599_v11 = vld [vmem:[#allocation8 + $0xe20] sm:$0xff] }
 0x1a1   :  { %v7924_v52 = vcombine.high %v1595_v10, %v1599_v11 }
 0x1a3   :  { %4362 = vmatpush2.bf16.msra.mxu0 %v7843_v43  ;;  %4403 = vmatpush2.bf16.msra.mxu1 %v7971_v51  ;;  %v7931_v43 = vcombine.low %v1603_v56, %v1607_v58  ;;  %v7796_v51 = vcombine.high %v1467_v6, %v1471_v7  ;;  %v1328_v56 = vld [vmem:[#allocation8 + $0x5a8] sm:$0xff] }
 0x1a4   :  { %4363 = vmatprep.subr.bf16.mxu0 %v7836_v17  ;;  %4404 = vmatprep.subr.bf16.mxu1 %v7964_v44  ;;  %v1316_v6 = vld [vmem:[#allocation8 + $0x548] sm:$0xff] }
 0x1a5   :  { %v1320_v7 = vld [vmem:[#allocation8 + $0x568] sm:$0xff] }
 0x1a7   :  { %4364 = vmatpush2.bf16.msra.mxu0 %v7835_v20  ;;  %4405 = vmatpush2.bf16.msra.mxu1 %v7963_v21 }
 0x1a8   :  { %4365 = vmatprep.subr.bf16.mxu0 %v7828_v28  ;;  %4406 = vmatprep.subr.bf16.mxu1 %v7956_v29  ;;  %v1332_v28 = vld [vmem:[#allocation8 + $0x5c8] sm:$0xff] }
 0x1a9   :  { %v1336_v29 = vld [vmem:[#allocation8 + $0x5e8] sm:$0xff] }
 0x1aa   :  { %v7662_v40 = vcombine.high %v1332_v28, %v1336_v29 }
 0x1ab   :  { %4366 = vmatpush2.bf16.msra.mxu0 %v7827_v34  ;;  %4407 = vmatpush2.bf16.msra.mxu1 %v7955_v35 }
 0x1ac   :  { %4367 = vmatprep.subr.bf16.mxu0 %v7820_v36  ;;  %4408 = vmatprep.subr.bf16.mxu1 %v7948_v14  ;;  %v7923_v36 = vcombine.low %v1595_v10, %v1599_v11  ;;  %v7534_v14 = vcombine.high %v1204_v18, %v1208_v19  ;;  %v7646_v11 = vcombine.high %v1316_v6, %v1320_v7  ;;  %v1304_v18 = vld [vmem:[#allocation8 + $0x4e8] sm:$0xff] }
 0x1af   :  { %4368 = vmatpush2.bf16.msra.mxu0 %v7819_v41  ;;  %4409 = vmatpush2.bf16.msra.mxu1 %v7947_v45  ;;  %v1196_v45 = vld [vmem:[#allocation8 + $0x188] sm:$0xff] }
 0x1b0   :  { %4369 = vmatprep.subr.bf16.mxu0 %v7812_v46  ;;  %4410 = vmatprep.subr.bf16.mxu1 %v7940_v48  ;;  %v1200_v46 = vld [vmem:[#allocation8 + $0x1a8] sm:$0xff] }
 0x1b2   :  { %v1075_v8 = vpop.f32.mrf.mxu0  ;;  %v1116_v13 = vpop.f32.mrf.mxu1 }
 0x1b3   :  { %v1076_v12 = vadd.f32 %v1075_v8, %v298_v60  ;;  %4370 = vmatpush2.bf16.msra.mxu0 %v7811_v59  ;;  %v1117_v16 = vadd.f32 %v1116_v13, %v306_v2  ;;  %4411 = vmatpush2.bf16.msra.mxu1 %v7939_v0  ;;  %v7661_v60 = vcombine.low %v1332_v28, %v1336_v29  ;;  %v1184_v13 = vld [vmem:[#allocation8 + $0x128] sm:$0xff] }
 0x1b4   :  { %v1077_v57 = vpop.f32.mrf.mxu0  ;;  %4371 = vmatprep.subr.bf16.mxu0 %v7804_v3  ;;  %v1118_v49 = vpop.f32.mrf.mxu1  ;;  %4412 = vmatprep.subr.bf16.mxu1 %v7932_v5  ;;  %v7526_v2 = vcombine.high %v1196_v45, %v1200_v46  ;;  %v1188_v3 = vld [vmem:[#allocation8 + $0x148] sm:$0xff]  ;;  %v7654_v5 = vcombine.high %v1324_v54, %v1328_v56  ;;  %v7525_v8 = vcombine.low %v1196_v45, %v1200_v46 }
 0x1b5   :  { %v1127_v17 = vmul.f32 0.2, %v1076_v12  ;;  %v1078_v44 = vadd.f32 %v1077_v57, %v302_v4  ;;  %v1129_v24 = vmul.f32 0.2, %v1117_v16  ;;  %v1119_v20 = vadd.f32 %v1118_v49, %v310_v9  ;;  %v1192_v4 = vld [vmem:[#allocation8 + $0x168] sm:$0xff] }
 0x1b6   :  { %v1079_v21 = vpop.f32.mrf.mxu0  ;;  %v1120_v31 = vpop.f32.mrf.mxu1  ;;  %v7653_v9 = vcombine.low %v1324_v54, %v1328_v56  ;;  %v7518_v10 = vcombine.high %v1188_v3, %v1192_v4  ;;  %v7517_v57 = vcombine.low %v1188_v3, %v1192_v4  ;;  %v1176_v49 = vld [vmem:[#allocation8 + $0xe8] sm:$0xff] }
 0x1b7   :  { %v1128_v30 = vmul.f32 0.2, %v1078_v44  ;;  %4372 = vmatpush2.bf16.msra.mxu0 %v7803_v15  ;;  %v1135_v33 = vmax.f32 %v1076_v12, %v1127_v17  ;;  %v1130_v34 = vmul.f32 0.2, %v1119_v20  ;;  %4413 = vmatpush2.bf16.msra.mxu1 %v7931_v43  ;;  %v1137_v37 = vmax.f32 %v1117_v16, %v1129_v24  ;;  %v1180_v12 = vld [vmem:[#allocation8 + $0x108] sm:$0xff] }
 0x1b8   :  { %v1080_v35 = vpop.f32.mrf.mxu0  ;;  %4373 = vmatprep.subr.bf16.mxu0 %v7796_v51  ;;  %v1121_v39 = vpop.f32.mrf.mxu1  ;;  %4414 = vmatprep.subr.bf16.mxu1 %v7924_v52  ;;  %v1308_v15 = vld [vmem:[#allocation8 + $0x508] sm:$0xff]  ;;  %v7645_v43 = vcombine.low %v1316_v6, %v1320_v7  ;;  %v7510_v51 = vcombine.high %v1180_v12, %v1184_v13  ;;  %v7509_v19 = vcombine.low %v1180_v12, %v1184_v13 }
 0x1b9   :  { %v1136_v38 = vmax.f32 %v1078_v44, %v1128_v30  ;;  %v1138_v41 = vmax.f32 %v1119_v20, %v1130_v34  ;;  %v9199_v58 = vpack.c.bf16 %v1135_v33, %v1135_v33  ;;  %v9203_v0 = vpack.c.bf16 %v1137_v37, %v1137_v37  ;;  %v1312_v16 = vld [vmem:[#allocation8 + $0x528] sm:$0xff] }
 0x1ba   :  { %v7638_v17 = vcombine.high %v1308_v15, %v1312_v16  ;;  %v1172_v44 = vld [vmem:[#allocation8 + $0xc8] sm:$0xff]  ;;  %v7637_v24 = vcombine.low %v1308_v15, %v1312_v16 }
 0x1bb   :  { %v9197_v48 = vpack.c.bf16 %v1136_v38, %v1136_v38  ;;  %4374 = vmatpush2.bf16.msra.mxu0 %v7795_v32  ;;  %v9201_v59 = vpack.c.bf16 %v1138_v41, %v1138_v41  ;;  %4415 = vmatpush2.bf16.msra.mxu1 %v7923_v36  ;;  %v1300_v52 = vld [vmem:[#allocation8 + $0x4c8] sm:$0xff]  ;;  %v7502_v20 = vcombine.high %v1172_v44, %v1176_v49 }
 0x1bc   :  { %4425 = vmatprep.subr.bf16.mxu0 %v7534_v14  ;;  %4466 = vmatprep.subr.bf16.mxu1 %v7662_v40  ;;  %v7630_v21 = vcombine.high %v1300_v52, %v1304_v18  ;;  %v1164_v28 = vld [vmem:[#allocation8 + $0x88] sm:$0xff]  ;;  %v7501_v32 = vcombine.low %v1172_v44, %v1176_v49  ;;  %v7629_v33 = vcombine.low %v1300_v52, %v1304_v18 }
 0x1bd   :  { %4375 = vmatprep.mubr.bf16.mxu0 %v9197_v48  ;;  %4416 = vmatprep.mubr.bf16.mxu1 %v9201_v59  ;;  %v1168_v29 = vld [vmem:[#allocation8 + $0xa8] sm:$0xff] }
 0x1be   :  { %4376 = vmatmul.mubr.bf16.vlgmr.msra.gmra.mxu0 %v9199_v58  ;;  %4417 = vmatmul.mubr.bf16.vlgmr.msra.gmra.mxu1 %v9203_v0  ;;  %v1292_v30 = vld [vmem:[#allocation8 + $0x488] sm:$0xff]  ;;  %v7494_v34 = vcombine.high %v1164_v28, %v1168_v29  ;;  %v7493_v39 = vcombine.low %v1164_v28, %v1168_v29 }
 0x1bf   :  { %4426 = vmatpush1.bf16.msra.mxu0 %v7533_v53  ;;  %4467 = vmatpush1.bf16.msra.mxu1 %v7661_v60  ;;  %v1296_v31 = vld [vmem:[#allocation8 + $0x4a8] sm:$0xff] }
 0x1c0   :  { %4457 = vmatprep.mubr.bf16.mxu0 %v9163_v61  ;;  %4498 = vmatprep.mubr.bf16.mxu1 %v9167_v63  ;;  %v7622_v35 = vcombine.high %v1292_v30, %v1296_v31  ;;  %v1156_v36 = vld [vmem:[#allocation8 + $0x48] sm:$0xff]  ;;  %v7621_v40 = vcombine.low %v1292_v30, %v1296_v31 }
 0x1c1   :  { %4427 = vmatprep.subr.bf16.mxu0 %v7526_v2  ;;  %4468 = vmatprep.subr.bf16.mxu1 %v7654_v5  ;;  %v1160_v14 = vld [vmem:[#allocation8 + $0x68] sm:$0xff] }
 0x1c2   :  { %v1284_v37 = vld [vmem:[#allocation8 + $0x448] sm:$0xff]  ;;  %v7486_v41 = vcombine.high %v1156_v36, %v1160_v14  ;;  %v7485_v60 = vcombine.low %v1156_v36, %v1160_v14 }
 0x1c3   :  { %4428 = vmatpush1.bf16.msra.mxu0 %v7525_v8  ;;  %4469 = vmatpush1.bf16.msra.mxu1 %v7653_v9  ;;  %v1288_v38 = vld [vmem:[#allocation8 + $0x468] sm:$0xff] }
 0x1c4   :  { %4429 = vmatprep.subr.bf16.mxu0 %v7518_v10  ;;  %4470 = vmatprep.subr.bf16.mxu1 %v7646_v11  ;;  %v7614_v45 = vcombine.high %v1284_v37, %v1288_v38  ;;  %v1148_v46 = vld [vmem:[#allocation8 + $0x8] sm:$0xff]  ;;  %v7613_v2 = vcombine.low %v1284_v37, %v1288_v38 }
 0x1c5   :  { %v1152_v53 = vld [vmem:[#allocation8 + $0x28] sm:$0xff] }
 0x1c6   :  { %v1276_v54 = vld [vmem:[#allocation8 + $0x408] sm:$0xff]  ;;  %v7478_v3 = vcombine.high %v1148_v46, %v1152_v53  ;;  %v7477_v9 = vcombine.low %v1148_v46, %v1152_v53 }
 0x1c7   :  { %4430 = vmatpush1.bf16.msra.mxu0 %v7517_v57  ;;  %4471 = vmatpush1.bf16.msra.mxu1 %v7645_v43  ;;  %v1280_v56 = vld [vmem:[#allocation8 + $0x428] sm:$0xff] }
 0x1c8   :  { %4431 = vmatprep.subr.bf16.mxu0 %v7510_v51  ;;  %4472 = vmatprep.subr.bf16.mxu1 %v7638_v17  ;;  %v7606_v4 = vcombine.high %v1276_v54, %v1280_v56  ;;  %v1268_v5 = vld [vmem:[#allocation8 + $0x3c8] sm:$0xff]  ;;  %v7605_v10 = vcombine.low %v1276_v54, %v1280_v56 }
 0x1c9   :  { %v1272_v6 = vld [vmem:[#allocation8 + $0x3e8] sm:$0xff] }
 0x1ca   :  { %v1396_v7 = vld [vmem:[#allocation8 + $0x7c8] sm:$0xff]  ;;  %v7598_v11 = vcombine.high %v1268_v5, %v1272_v6  ;;  %v7597_v43 = vcombine.low %v1268_v5, %v1272_v6 }
 0x1cb   :  { %4432 = vmatpush1.bf16.msra.mxu0 %v7509_v19  ;;  %4473 = vmatpush1.bf16.msra.mxu1 %v7637_v24  ;;  %v1400_v8 = vld [vmem:[#allocation8 + $0x7e8] sm:$0xff] }
 0x1cc   :  { %4433 = vmatprep.subr.bf16.mxu0 %v7502_v20  ;;  %4474 = vmatprep.subr.bf16.mxu1 %v7630_v21  ;;  %v7726_v12 = vcombine.high %v1396_v7, %v1400_v8  ;;  %v1260_v13 = vld [vmem:[#allocation8 + $0x388] sm:$0xff]  ;;  %v7725_v51 = vcombine.low %v1396_v7, %v1400_v8 }
 0x1cd   :  { %v1264_v15 = vld [vmem:[#allocation8 + $0x3a8] sm:$0xff] }
 0x1ce   :  { %v1388_v16 = vld [vmem:[#allocation8 + $0x788] sm:$0xff]  ;;  %v7590_v17 = vcombine.high %v1260_v13, %v1264_v15  ;;  %v7589_v24 = vcombine.low %v1260_v13, %v1264_v15 }
 0x1cf   :  { %4434 = vmatpush1.bf16.msra.mxu0 %v7501_v32  ;;  %4475 = vmatpush1.bf16.msra.mxu1 %v7629_v33  ;;  %v1392_v57 = vld [vmem:[#allocation8 + $0x7a8] sm:$0xff] }
 0x1d0   :  { %4435 = vmatprep.subr.bf16.mxu0 %v7494_v34  ;;  %4476 = vmatprep.subr.bf16.mxu1 %v7622_v35  ;;  %v7718_v44 = vcombine.high %v1388_v16, %v1392_v57  ;;  %v1252_v49 = vld [vmem:[#allocation8 + $0x348] sm:$0xff]  ;;  %v7717_v20 = vcombine.low %v1388_v16, %v1392_v57 }
 0x1d1   :  { %v1256_v52 = vld [vmem:[#allocation8 + $0x368] sm:$0xff] }
 0x1d2   :  { %v1380_v18 = vld [vmem:[#allocation8 + $0x748] sm:$0xff]  ;;  %v7582_v21 = vcombine.high %v1252_v49, %v1256_v52  ;;  %v7581_v33 = vcombine.low %v1252_v49, %v1256_v52 }
 0x1d3   :  { %4436 = vmatpush1.bf16.msra.mxu0 %v7493_v39  ;;  %4477 = vmatpush1.bf16.msra.mxu1 %v7621_v40  ;;  %v1384_v19 = vld [vmem:[#allocation8 + $0x768] sm:$0xff] }
 0x1d4   :  { %4437 = vmatprep.subr.bf16.mxu0 %v7486_v41  ;;  %4478 = vmatprep.subr.bf16.mxu1 %v7614_v45  ;;  %v7710_v28 = vcombine.high %v1380_v18, %v1384_v19  ;;  %v1244_v29 = vld [vmem:[#allocation8 + $0x308] sm:$0xff]  ;;  %v7709_v34 = vcombine.low %v1380_v18, %v1384_v19 }
 0x1d5   :  { %v1248_v30 = vld [vmem:[#allocation8 + $0x328] sm:$0xff] }
 0x1d6   :  { %v1372_v31 = vld [vmem:[#allocation8 + $0x708] sm:$0xff]  ;;  %v7574_v35 = vcombine.high %v1244_v29, %v1248_v30  ;;  %v7573_v40 = vcombine.low %v1244_v29, %v1248_v30 }
 0x1d7   :  { %4438 = vmatpush1.bf16.msra.mxu0 %v7485_v60  ;;  %4479 = vmatpush1.bf16.msra.mxu1 %v7613_v2  ;;  %v1376_v32 = vld [vmem:[#allocation8 + $0x728] sm:$0xff] }
 0x1d8   :  { %4439 = vmatprep.subr.bf16.mxu0 %v7478_v3  ;;  %4480 = vmatprep.subr.bf16.mxu1 %v7606_v4  ;;  %v7702_v36 = vcombine.high %v1372_v31, %v1376_v32  ;;  %v1236_v14 = vld [vmem:[#allocation8 + $0x2c8] sm:$0xff]  ;;  %v7701_v41 = vcombine.low %v1372_v31, %v1376_v32 }
 0x1d9   :  { %v1240_v37 = vld [vmem:[#allocation8 + $0x2e8] sm:$0xff] }
 0x1da   :  { %v1364_v38 = vld [vmem:[#allocation8 + $0x6c8] sm:$0xff]  ;;  %v7566_v45 = vcombine.high %v1236_v14, %v1240_v37  ;;  %v7565_v2 = vcombine.low %v1236_v14, %v1240_v37 }
 0x1db   :  { %4440 = vmatpush1.bf16.msra.mxu0 %v7477_v9  ;;  %4481 = vmatpush1.bf16.msra.mxu1 %v7605_v10  ;;  %v1368_v39 = vld [vmem:[#allocation8 + $0x6e8] sm:$0xff] }
 0x1dc   :  { %4441 = vmatprep.subr.bf16.mxu0 %v7598_v11  ;;  %4482 = vmatprep.subr.bf16.mxu1 %v7726_v12  ;;  %v7694_v46 = vcombine.high %v1364_v38, %v1368_v39  ;;  %v1228_v53 = vld [vmem:[#allocation8 + $0x288] sm:$0xff]  ;;  %v7693_v3 = vcombine.low %v1364_v38, %v1368_v39 }
 0x1dd   :  { %v1232_v54 = vld [vmem:[#allocation8 + $0x2a8] sm:$0xff] }
 0x1de   :  { %v1356_v56 = vld [vmem:[#allocation8 + $0x688] sm:$0xff]  ;;  %v7558_v4 = vcombine.high %v1228_v53, %v1232_v54  ;;  %v7557_v10 = vcombine.low %v1228_v53, %v1232_v54 }
 0x1df   :  { %4442 = vmatpush2.bf16.msra.mxu0 %v7597_v43  ;;  %4483 = vmatpush2.bf16.msra.mxu1 %v7725_v51  ;;  %v1360_v60 = vld [vmem:[#allocation8 + $0x6a8] sm:$0xff] }
 0x1e0   :  { %4443 = vmatprep.subr.bf16.mxu0 %v7590_v17  ;;  %4484 = vmatprep.subr.bf16.mxu1 %v7718_v44  ;;  %v7686_v5 = vcombine.high %v1356_v56, %v1360_v60  ;;  %v1220_v6 = vld [vmem:[#allocation8 + $0x248] sm:$0xff]  ;;  %v7685_v11 = vcombine.low %v1356_v56, %v1360_v60 }
 0x1e1   :  { %v1224_v7 = vld [vmem:[#allocation8 + $0x268] sm:$0xff] }
 0x1e2   :  { %v1348_v8 = vld [vmem:[#allocation8 + $0x648] sm:$0xff]  ;;  %v7550_v12 = vcombine.high %v1220_v6, %v1224_v7  ;;  %v7549_v51 = vcombine.low %v1220_v6, %v1224_v7 }
 0x1e3   :  { %4444 = vmatpush2.bf16.msra.mxu0 %v7589_v24  ;;  %4485 = vmatpush2.bf16.msra.mxu1 %v7717_v20  ;;  %v1352_v9 = vld [vmem:[#allocation8 + $0x668] sm:$0xff] }
 0x1e4   :  { %4445 = vmatprep.subr.bf16.mxu0 %v7582_v21  ;;  %4486 = vmatprep.subr.bf16.mxu1 %v7710_v28  ;;  %v7678_v13 = vcombine.high %v1348_v8, %v1352_v9  ;;  %v1212_v15 = vld [vmem:[#allocation8 + $0x208] sm:$0xff]  ;;  %v7677_v17 = vcombine.low %v1348_v8, %v1352_v9 }
 0x1e5   :  { %v1216_v16 = vld [vmem:[#allocation8 + $0x228] sm:$0xff] }
 0x1e6   :  { %v1340_v57 = vld [vmem:[#allocation8 + $0x608] sm:$0xff]  ;;  %v7542_v44 = vcombine.high %v1212_v15, %v1216_v16  ;;  %v7541_v20 = vcombine.low %v1212_v15, %v1216_v16 }
 0x1e7   :  { %4446 = vmatpush2.bf16.msra.mxu0 %v7581_v33  ;;  %4487 = vmatpush2.bf16.msra.mxu1 %v7709_v34  ;;  %v1344_v43 = vld [vmem:[#allocation8 + $0x628] sm:$0xff] }
 0x1e8   :  { %4447 = vmatprep.subr.bf16.mxu0 %v7574_v35  ;;  %4488 = vmatprep.subr.bf16.mxu1 %v7702_v36  ;;  %v7670_v49 = vcombine.high %v1340_v57, %v1344_v43  ;;  %v1460_v52 = vld [vmem:[#allocation8 + $0x9c8] sm:$0xff]  ;;  %v7669_v21 = vcombine.low %v1340_v57, %v1344_v43 }
 0x1e9   :  { %v1464_v18 = vld [vmem:[#allocation8 + $0x9e8] sm:$0xff] }
 0x1ea   :  { %v1588_v19 = vld [vmem:[#allocation8 + $0xdc8] sm:$0xff]  ;;  %v7790_v28 = vcombine.high %v1460_v52, %v1464_v18  ;;  %v7789_v32 = vcombine.low %v1460_v52, %v1464_v18 }
 0x1eb   :  { %4448 = vmatpush2.bf16.msra.mxu0 %v7573_v40  ;;  %4489 = vmatpush2.bf16.msra.mxu1 %v7701_v41  ;;  %v1592_v24 = vld [vmem:[#allocation8 + $0xde8] sm:$0xff] }
 0x1ec   :  { %4449 = vmatprep.subr.bf16.mxu0 %v7566_v45  ;;  %4490 = vmatprep.subr.bf16.mxu1 %v7694_v46  ;;  %v7918_v29 = vcombine.high %v1588_v19, %v1592_v24  ;;  %v1452_v30 = vld [vmem:[#allocation8 + $0x988] sm:$0xff]  ;;  %v7917_v35 = vcombine.low %v1588_v19, %v1592_v24 }
 0x1ed   :  { %v1456_v31 = vld [vmem:[#allocation8 + $0x9a8] sm:$0xff] }
 0x1ee   :  { %v1580_v33 = vld [vmem:[#allocation8 + $0xd88] sm:$0xff]  ;;  %v7782_v36 = vcombine.high %v1452_v30, %v1456_v31  ;;  %v7781_v41 = vcombine.low %v1452_v30, %v1456_v31 }
 0x1ef   :  { %4450 = vmatpush2.bf16.msra.mxu0 %v7565_v2  ;;  %4491 = vmatpush2.bf16.msra.mxu1 %v7693_v3  ;;  %v1584_v34 = vld [vmem:[#allocation8 + $0xda8] sm:$0xff] }
 0x1f0   :  { %4451 = vmatprep.subr.bf16.mxu0 %v7558_v4  ;;  %4492 = vmatprep.subr.bf16.mxu1 %v7686_v5  ;;  %v1444_v14 = vld [vmem:[#allocation8 + $0x948] sm:$0xff]  ;;  %v7910_v38 = vcombine.high %v1580_v33, %v1584_v34  ;;  %v7909_v45 = vcombine.low %v1580_v33, %v1584_v34 }
 0x1f1   :  { %v1448_v37 = vld [vmem:[#allocation8 + $0x968] sm:$0xff] }
 0x1f2   :  { %v1572_v39 = vld [vmem:[#allocation8 + $0xd48] sm:$0xff]  ;;  %v7774_v46 = vcombine.high %v1444_v14, %v1448_v37  ;;  %v7773_v3 = vcombine.low %v1444_v14, %v1448_v37 }
 0x1f3   :  { %4452 = vmatpush2.bf16.msra.mxu0 %v7557_v10  ;;  %4493 = vmatpush2.bf16.msra.mxu1 %v7685_v11  ;;  %v1576_v40 = vld [vmem:[#allocation8 + $0xd68] sm:$0xff] }
 0x1f4   :  { %4453 = vmatprep.subr.bf16.mxu0 %v7550_v12  ;;  %4494 = vmatprep.subr.bf16.mxu1 %v7678_v13  ;;  %v7902_v53 = vcombine.high %v1572_v39, %v1576_v40  ;;  %v1436_v54 = vld [vmem:[#allocation8 + $0x908] sm:$0xff]  ;;  %v7901_v4 = vcombine.low %v1572_v39, %v1576_v40 }
 0x1f5   :  { %v1440_v56 = vld [vmem:[#allocation8 + $0x928] sm:$0xff] }
 0x1f6   :  { %v1564_v60 = vld [vmem:[#allocation8 + $0xd08] sm:$0xff]  ;;  %v7766_v5 = vcombine.high %v1436_v54, %v1440_v56  ;;  %v7765_v11 = vcombine.low %v1436_v54, %v1440_v56 }
 0x1f7   :  { %4454 = vmatpush2.bf16.msra.mxu0 %v7549_v51  ;;  %4495 = vmatpush2.bf16.msra.mxu1 %v7677_v17  ;;  %v1568_v2 = vld [vmem:[#allocation8 + $0xd28] sm:$0xff] }
 0x1f8   :  { %4455 = vmatprep.subr.bf16.mxu0 %v7542_v44  ;;  %4496 = vmatprep.subr.bf16.mxu1 %v7670_v49  ;;  %v7894_v6 = vcombine.high %v1564_v60, %v1568_v2  ;;  %v1428_v7 = vld [vmem:[#allocation8 + $0x8c8] sm:$0xff]  ;;  %v7893_v12 = vcombine.low %v1564_v60, %v1568_v2 }
 0x1f9   :  { %v1432_v8 = vld [vmem:[#allocation8 + $0x8e8] sm:$0xff] }
 0x1fa   :  { %v1556_v9 = vld [vmem:[#allocation8 + $0xcc8] sm:$0xff]  ;;  %v7758_v13 = vcombine.high %v1428_v7, %v1432_v8  ;;  %v7757_v17 = vcombine.low %v1428_v7, %v1432_v8 }
 0x1fb   :  { %4456 = vmatpush2.bf16.msra.mxu0 %v7541_v20  ;;  %4497 = vmatpush2.bf16.msra.mxu1 %v7669_v21  ;;  %v1560_v10 = vld [vmem:[#allocation8 + $0xce8] sm:$0xff] }
 0x1fc   :  { %4507 = vmatprep.subr.bf16.mxu0 %v7790_v28  ;;  %4548 = vmatprep.subr.bf16.mxu1 %v7918_v29  ;;  %v7886_v15 = vcombine.high %v1556_v9, %v1560_v10  ;;  %v1420_v16 = vld [vmem:[#allocation8 + $0x888] sm:$0xff]  ;;  %v7885_v44 = vcombine.low %v1556_v9, %v1560_v10 }
 0x1fd   :  { %v1424_v57 = vld [vmem:[#allocation8 + $0x8a8] sm:$0xff] }
 0x1fe   :  { %4458 = vmatmul.mubr.bf16.vlgmr.msra.gmra.mxu0 %v9165_v62  ;;  %4499 = vmatmul.mubr.bf16.vlgmr.msra.gmra.mxu1 %v9169_v1  ;;  %v1548_v43 = vld [vmem:[#allocation8 + $0xc88] sm:$0xff]  ;;  %v7750_v49 = vcombine.high %v1420_v16, %v1424_v57  ;;  %v7749_v21 = vcombine.low %v1420_v16, %v1424_v57 }
 0x1ff   :  { %4508 = vmatpush1.bf16.msra.mxu0 %v7789_v32  ;;  %4539 = vmatprep.mubr.bf16.mxu0 %v9197_v48  ;;  %v1552_v51 = vld [vmem:[#allocation8 + $0xca8] sm:$0xff] }
 0x200   :  { %4549 = vmatpush1.bf16.msra.mxu1 %v7917_v35  ;;  %4580 = vmatprep.mubr.bf16.mxu1 %v9201_v59  ;;  %v7878_v52 = vcombine.high %v1548_v43, %v1552_v51  ;;  %v1412_v18 = vld [vmem:[#allocation8 + $0x848] sm:$0xff]  ;;  %v7877_v28 = vcombine.low %v1548_v43, %v1552_v51 }
 0x201   :  { %4509 = vmatprep.subr.bf16.mxu0 %v7782_v36  ;;  %4550 = vmatprep.subr.bf16.mxu1 %v7910_v38  ;;  %v1416_v19 = vld [vmem:[#allocation8 + $0x868] sm:$0xff] }
 0x202   :  { %v1540_v24 = vld [vmem:[#allocation8 + $0xc48] sm:$0xff]  ;;  %v7742_v29 = vcombine.high %v1412_v18, %v1416_v19  ;;  %v7741_v35 = vcombine.low %v1412_v18, %v1416_v19 }
 0x203   :  { %4510 = vmatpush1.bf16.msra.mxu0 %v7781_v41  ;;  %v1544_v20 = vld [vmem:[#allocation8 + $0xc68] sm:$0xff] }
 0x204   :  { %4551 = vmatpush1.bf16.msra.mxu1 %v7909_v45  ;;  %4511 = vmatprep.subr.bf16.mxu0 %v7774_v46  ;;  %v7870_v30 = vcombine.high %v1540_v24, %v1544_v20  ;;  %v1404_v31 = vld [vmem:[#allocation8 + $0x808] sm:$0xff]  ;;  %v7869_v36 = vcombine.low %v1540_v24, %v1544_v20 }
 0x205   :  { %4552 = vmatprep.subr.bf16.mxu1 %v7902_v53  ;;  %v1408_v32 = vld [vmem:[#allocation8 + $0x828] sm:$0xff] }
 0x206   :  { %v1532_v33 = vld [vmem:[#allocation8 + $0xc08] sm:$0xff]  ;;  %v7734_v14 = vcombine.high %v1404_v31, %v1408_v32  ;;  %v7733_v45 = vcombine.low %v1404_v31, %v1408_v32 }
 0x207   :  { %4512 = vmatpush1.bf16.msra.mxu0 %v7773_v3  ;;  %v1536_v34 = vld [vmem:[#allocation8 + $0xc28] sm:$0xff] }
 0x208   :  { %4553 = vmatpush1.bf16.msra.mxu1 %v7901_v4  ;;  %4513 = vmatprep.subr.bf16.mxu0 %v7766_v5  ;;  %v7862_v37 = vcombine.high %v1532_v33, %v1536_v34  ;;  %v1524_v38 = vld [vmem:[#allocation8 + $0xbc8] sm:$0xff]  ;;  %v7861_v46 = vcombine.low %v1532_v33, %v1536_v34 }
 0x209   :  { %4554 = vmatprep.subr.bf16.mxu1 %v7894_v6  ;;  %v1528_v39 = vld [vmem:[#allocation8 + $0xbe8] sm:$0xff] }
 0x20a   :  { %v1652_v40 = vld [vmem:[#allocation8 + $0xfc8] sm:$0xff]  ;;  %v7854_v53 = vcombine.high %v1524_v38, %v1528_v39  ;;  %v7853_v4 = vcombine.low %v1524_v38, %v1528_v39 }
 0x20b   :  { %4514 = vmatpush1.bf16.msra.mxu0 %v7765_v11  ;;  %v1656_v41 = vld [vmem:[#allocation8 + $0xfe8] sm:$0xff] }
 0x20c   :  { %4555 = vmatpush1.bf16.msra.mxu1 %v7893_v12  ;;  %4515 = vmatprep.subr.bf16.mxu0 %v7758_v13  ;;  %v7982_v54 = vcombine.high %v1652_v40, %v1656_v41  ;;  %v1516_v56 = vld [vmem:[#allocation8 + $0xb88] sm:$0xff]  ;;  %v7981_v5 = vcombine.low %v1652_v40, %v1656_v41 }
 0x20d   :  { %4556 = vmatprep.subr.bf16.mxu1 %v7886_v15  ;;  %v1520_v60 = vld [vmem:[#allocation8 + $0xba8] sm:$0xff] }
 0x20e   :  { %v1644_v2 = vld [vmem:[#allocation8 + $0xf88] sm:$0xff]  ;;  %v7846_v6 = vcombine.high %v1516_v56, %v1520_v60  ;;  %v7845_v12 = vcombine.low %v1516_v56, %v1520_v60 }
 0x20f   :  { %4516 = vmatpush1.bf16.msra.mxu0 %v7757_v17  ;;  %v1648_v3 = vld [vmem:[#allocation8 + $0xfa8] sm:$0xff] }
 0x210   :  { %4557 = vmatpush1.bf16.msra.mxu1 %v7885_v44  ;;  %4517 = vmatprep.subr.bf16.mxu0 %v7750_v49  ;;  %v7974_v7 = vcombine.high %v1644_v2, %v1648_v3  ;;  %v1508_v8 = vld [vmem:[#allocation8 + $0xb48] sm:$0xff]  ;;  %v7973_v13 = vcombine.low %v1644_v2, %v1648_v3 }
 0x211   :  { %4558 = vmatprep.subr.bf16.mxu1 %v7878_v52  ;;  %v1512_v9 = vld [vmem:[#allocation8 + $0xb68] sm:$0xff] }
 0x212   :  { %v1636_v10 = vld [vmem:[#allocation8 + $0xf48] sm:$0xff]  ;;  %v7838_v15 = vcombine.high %v1508_v8, %v1512_v9  ;;  %v7837_v44 = vcombine.low %v1508_v8, %v1512_v9  ;;  %v1205_v9 = vld [vmem:[#allocation8 + $0x1d0] sm:$0xff] }
 0x213   :  { %4518 = vmatpush1.bf16.msra.mxu0 %v7749_v21  ;;  %v1640_v11 = vld [vmem:[#allocation8 + $0xf68] sm:$0xff] }
 0x214   :  { %4559 = vmatpush1.bf16.msra.mxu1 %v7877_v28  ;;  %4519 = vmatprep.subr.bf16.mxu0 %v7742_v29  ;;  %v7966_v16 = vcombine.high %v1636_v10, %v1640_v11  ;;  %v1500_v57 = vld [vmem:[#allocation8 + $0xb08] sm:$0xff]  ;;  %v7965_v49 = vcombine.low %v1636_v10, %v1640_v11  ;;  %v1209_v10 = vld [vmem:[#allocation8 + $0x1f0] sm:$0xff] }
 0x215   :  { %4560 = vmatprep.subr.bf16.mxu1 %v7870_v30  ;;  %v1504_v43 = vld [vmem:[#allocation8 + $0xb28] sm:$0xff]  ;;  %v1333_v11 = vld [vmem:[#allocation8 + $0x5d0] sm:$0xff] }
 0x216   :  { %v1628_v51 = vld [vmem:[#allocation8 + $0xf08] sm:$0xff]  ;;  %v7830_v52 = vcombine.high %v1500_v57, %v1504_v43  ;;  %v7829_v28 = vcombine.low %v1500_v57, %v1504_v43  ;;  %v9215_v57 = vld [vmem:[#allocation10] sm:$0xff] }
 0x217   :  { %4520 = vmatpush1.bf16.msra.mxu0 %v7741_v35  ;;  %v1632_v17 = vld [vmem:[#allocation8 + $0xf28] sm:$0xff] }
 0x218   :  { %4561 = vmatpush1.bf16.msra.mxu1 %v7869_v36  ;;  %4521 = vmatprep.subr.bf16.mxu0 %v7734_v14  ;;  %v7958_v18 = vcombine.high %v1628_v51, %v1632_v17  ;;  %v1492_v19 = vld [vmem:[#allocation8 + $0xac8] sm:$0xff]  ;;  %v7957_v29 = vcombine.low %v1628_v51, %v1632_v17  ;;  %v1197_v51 = vld [vmem:[#allocation8 + $0x190] sm:$0xff] }
 0x219   :  { %4562 = vmatprep.subr.bf16.mxu1 %v7862_v37  ;;  %v1496_v24 = vld [vmem:[#allocation8 + $0xae8] sm:$0xff]  ;;  %v1201_v17 = vld [vmem:[#allocation8 + $0x1b0] sm:$0xff] }
 0x21a   :  { %v1620_v20 = vld [vmem:[#allocation8 + $0xec8] sm:$0xff]  ;;  %v7822_v30 = vcombine.high %v1492_v19, %v1496_v24  ;;  %v7821_v36 = vcombine.low %v1492_v19, %v1496_v24  ;;  %v1668_v24 = vrot.slane %v9215_v57, %v9150_v26 }
 0x21b   :  { %4522 = vmatpush1.bf16.msra.mxu0 %v7733_v45  ;;  %v1624_v21 = vld [vmem:[#allocation8 + $0xee8] sm:$0xff] }
 0x21c   :  { %4563 = vmatpush1.bf16.msra.mxu1 %v7861_v46  ;;  %4523 = vmatprep.subr.bf16.mxu0 %v7854_v53  ;;  %v7950_v31 = vcombine.high %v1620_v20, %v1624_v21  ;;  %v1484_v32 = vld [vmem:[#allocation8 + $0xa88] sm:$0xff]  ;;  %v7949_v14 = vcombine.low %v1620_v20, %v1624_v21  ;;  %v7528_v20 = vcombine.high %v1197_v51, %v1201_v17  ;;  %v1189_v21 = vld [vmem:[#allocation8 + $0x150] sm:$0xff] }
 0x21d   :  { %4564 = vmatprep.subr.bf16.mxu1 %v7982_v54  ;;  %v1488_v33 = vld [vmem:[#allocation8 + $0xaa8] sm:$0xff] }
 0x21e   :  { %v1612_v34 = vld [vmem:[#allocation8 + $0xe88] sm:$0xff]  ;;  %v7814_v37 = vcombine.high %v1484_v32, %v1488_v33  ;;  %v7813_v46 = vcombine.low %v1484_v32, %v1488_v33  ;;  %v1321_v32 = vld [vmem:[#allocation8 + $0x570] sm:$0xff] }
 0x21f   :  { %4524 = vmatpush2.bf16.msra.mxu0 %v7853_v4  ;;  %v1616_v35 = vld [vmem:[#allocation8 + $0xea8] sm:$0xff] }
 0x220   :  { %4565 = vmatpush2.bf16.msra.mxu1 %v7981_v5  ;;  %4525 = vmatprep.subr.bf16.mxu0 %v7846_v6  ;;  %v7942_v38 = vcombine.high %v1612_v34, %v1616_v35  ;;  %v1476_v39 = vld [vmem:[#allocation8 + $0xa48] sm:$0xff]  ;;  %v7941_v53 = vcombine.low %v1612_v34, %v1616_v35  ;;  %v7527_v35 = vcombine.low %v1197_v51, %v1201_v17  ;;  %v1165_v51 = vld [vmem:[#allocation8 + $0x90] sm:$0xff] }
 0x221   :  { %4566 = vmatprep.subr.bf16.mxu1 %v7974_v7  ;;  %v1480_v40 = vld [vmem:[#allocation8 + $0xa68] sm:$0xff]  ;;  %v1169_v17 = vld [vmem:[#allocation8 + $0xb0] sm:$0xff] }
 0x222   :  { %v1604_v41 = vld [vmem:[#allocation8 + $0xe48] sm:$0xff]  ;;  %v7806_v54 = vcombine.high %v1476_v39, %v1480_v40  ;;  %v7805_v5 = vcombine.low %v1476_v39, %v1480_v40 }
 0x223   :  { %4526 = vmatpush2.bf16.msra.mxu0 %v7845_v12  ;;  %v1608_v45 = vld [vmem:[#allocation8 + $0xe68] sm:$0xff]  ;;  %v1337_v12 = vld [vmem:[#allocation8 + $0x5f0] sm:$0xff] }
 0x224   :  { %4567 = vmatpush2.bf16.msra.mxu1 %v7973_v13  ;;  %4527 = vmatprep.subr.bf16.mxu0 %v7838_v15  ;;  %v7934_v56 = vcombine.high %v1604_v41, %v1608_v45  ;;  %v1468_v60 = vld [vmem:[#allocation8 + $0xa08] sm:$0xff]  ;;  %v7933_v6 = vcombine.low %v1604_v41, %v1608_v45  ;;  %v7664_v43 = vcombine.high %v1333_v11, %v1337_v12  ;;  %v1181_v45 = vld [vmem:[#allocation8 + $0x110] sm:$0xff] }
 0x225   :  { %4568 = vmatprep.subr.bf16.mxu1 %v7966_v16  ;;  %v1472_v2 = vld [vmem:[#allocation8 + $0xa28] sm:$0xff]  ;;  %v7536_v16 = vcombine.high %v1205_v9, %v1209_v10  ;;  %v7663_v19 = vcombine.low %v1333_v11, %v1337_v12  ;;  %v1301_v11 = vld [vmem:[#allocation8 + $0x4d0] sm:$0xff] }
 0x226   :  { %v1596_v3 = vld [vmem:[#allocation8 + $0xe08] sm:$0xff]  ;;  %v7798_v7 = vcombine.high %v1468_v60, %v1472_v2  ;;  %v7797_v13 = vcombine.low %v1468_v60, %v1472_v2  ;;  %v1305_v12 = vld [vmem:[#allocation8 + $0x4f0] sm:$0xff] }
 0x227   :  { %4528 = vmatpush2.bf16.msra.mxu0 %v7837_v44  ;;  %v1600_v4 = vld [vmem:[#allocation8 + $0xe28] sm:$0xff]  ;;  %v7535_v44 = vcombine.low %v1205_v9, %v1209_v10  ;;  %v1173_v9 = vld [vmem:[#allocation8 + $0xd0] sm:$0xff] }
 0x228   :  { %4569 = vmatpush2.bf16.msra.mxu1 %v7965_v49  ;;  %4529 = vmatprep.subr.bf16.mxu0 %v7830_v52  ;;  %v7926_v8 = vcombine.high %v1596_v3, %v1600_v4  ;;  %v7925_v15 = vcombine.low %v1596_v3, %v1600_v4  ;;  %v1664_v49 = vrot.slane %v9215_v57, %v9142_v23  ;;  %v1325_v52 = vld [vmem:[#allocation8 + $0x590] sm:$0xff] }
 0x229   :  { %4570 = vmatprep.subr.bf16.mxu1 %v7958_v18  ;;  %v1329_v18 = vld [vmem:[#allocation8 + $0x5b0] sm:$0xff] }
 0x22a   :  { %v1177_v10 = vld [vmem:[#allocation8 + $0xf0] sm:$0xff] }
 0x22b   :  { %4530 = vmatpush2.bf16.msra.mxu0 %v7829_v28  ;;  %v1193_v28 = vld [vmem:[#allocation8 + $0x170] sm:$0xff] }
 0x22c   :  { %4571 = vmatpush2.bf16.msra.mxu1 %v7957_v29  ;;  %4531 = vmatprep.subr.bf16.mxu0 %v7822_v30  ;;  %v7656_v30 = vcombine.high %v1325_v52, %v1329_v18  ;;  %v7519_v3 = vcombine.low %v1189_v21, %v1193_v28 }
 0x22d   :  { %4572 = vmatprep.subr.bf16.mxu1 %v7950_v31  ;;  %v1317_v31 = vld [vmem:[#allocation8 + $0x550] sm:$0xff] }
 0x22e   :  { %v7648_v41 = vcombine.high %v1317_v31, %v1321_v32 }
 0x22f   :  { %4532 = vmatpush2.bf16.msra.mxu0 %v7821_v36 }
 0x230   :  { %4573 = vmatpush2.bf16.msra.mxu1 %v7949_v14  ;;  %4533 = vmatprep.subr.bf16.mxu0 %v7814_v37  ;;  %v7655_v14 = vcombine.low %v1325_v52, %v1329_v18  ;;  %v7520_v37 = vcombine.high %v1189_v21, %v1193_v28  ;;  %v7503_v52 = vcombine.low %v1173_v9, %v1177_v10  ;;  %v1161_v21 = vld [vmem:[#allocation8 + $0x70] sm:$0xff] }
 0x231   :  { %4574 = vmatprep.subr.bf16.mxu1 %v7942_v38  ;;  %v7631_v18 = vcombine.low %v1301_v11, %v1305_v12  ;;  %v1285_v28 = vld [vmem:[#allocation8 + $0x450] sm:$0xff] }
 0x233   :  { %4534 = vmatpush2.bf16.msra.mxu0 %v7813_v46  ;;  %v1185_v46 = vld [vmem:[#allocation8 + $0x130] sm:$0xff] }
 0x234   :  { %4575 = vmatpush2.bf16.msra.mxu1 %v7941_v53  ;;  %4535 = vmatprep.subr.bf16.mxu0 %v7806_v54  ;;  %v1309_v54 = vld [vmem:[#allocation8 + $0x510] sm:$0xff] }
 0x235   :  { %4576 = vmatprep.subr.bf16.mxu1 %v7934_v56  ;;  %v1313_v56 = vld [vmem:[#allocation8 + $0x530] sm:$0xff] }
 0x237   :  { %4536 = vmatpush2.bf16.msra.mxu0 %v7805_v5  ;;  %v7647_v5 = vcombine.low %v1317_v31, %v1321_v32 }
 0x238   :  { %4577 = vmatpush2.bf16.msra.mxu1 %v7933_v6  ;;  %4537 = vmatprep.subr.bf16.mxu0 %v7798_v7  ;;  %v7512_v6 = vcombine.high %v1181_v45, %v1185_v46 }
 0x239   :  { %4578 = vmatprep.subr.bf16.mxu1 %v7926_v8  ;;  %v7640_v8 = vcombine.high %v1309_v54, %v1313_v56 }
 0x23b   :  { %4538 = vmatpush2.bf16.msra.mxu0 %v7797_v13  ;;  %v7511_v13 = vcombine.low %v1181_v45, %v1185_v46  ;;  %v1269_v45 = vld [vmem:[#allocation8 + $0x3d0] sm:$0xff] }
 0x23c   :  { %4579 = vmatpush2.bf16.msra.mxu1 %v7925_v15  ;;  %4589 = vmatprep.subr.bf16.mxu0 %v7536_v16  ;;  %v7639_v15 = vcombine.low %v1309_v54, %v1313_v56  ;;  %v7504_v16 = vcombine.high %v1173_v9, %v1177_v10  ;;  %v1273_v46 = vld [vmem:[#allocation8 + $0x3f0] sm:$0xff] }
 0x23d   :  { %4630 = vmatprep.subr.bf16.mxu1 %v7664_v43  ;;  %v7632_v43 = vcombine.high %v1301_v11, %v1305_v12  ;;  %v1401_v54 = vld [vmem:[#allocation8 + $0x7f0] sm:$0xff]  ;;  %v7599_v9 = vcombine.low %v1269_v45, %v1273_v46 }
 0x23e   :  { %4540 = vmatmul.mubr.bf16.vlgmr.msra.gmra.mxu0 %v9199_v58  ;;  %v4295_v29 = vpop.f32.mrf.mxu0  ;;  %v4336_v34 = vpop.f32.mrf.mxu1 }
 0x23f   :  { %4581 = vmatmul.mubr.bf16.vlgmr.msra.gmra.mxu1 %v9203_v0  ;;  %v4296_v33 = vadd.f32 %v4295_v29, %v1664_v49  ;;  %4590 = vmatpush1.bf16.msra.mxu0 %v7535_v44  ;;  %v1293_v44 = vld [vmem:[#allocation8 + $0x490] sm:$0xff] }
 0x240   :  { %4621 = vmatprep.mubr.bf16.mxu0 %v9163_v61  ;;  %4631 = vmatpush1.bf16.msra.mxu1 %v7663_v19  ;;  %v4297_v36 = vpop.f32.mrf.mxu0  ;;  %v4338_v40 = vpop.f32.mrf.mxu1  ;;  %v1297_v49 = vld [vmem:[#allocation8 + $0x4b0] sm:$0xff]  ;;  %v7496_v19 = vcombine.high %v1165_v51, %v1169_v17 }
 0x241   :  { %v9224_v38 = vadd.f32 %v4336_v34, %v4296_v33  ;;  %4662 = vmatprep.mubr.bf16.mxu1 %v9167_v63  ;;  %v4298_v39 = vadd.f32 %v4297_v36, %v1668_v24  ;;  %4591 = vmatprep.subr.bf16.mxu0 %v7528_v20  ;;  %v7624_v24 = vcombine.high %v1293_v44, %v1297_v49  ;;  %v1157_v20 = vld [vmem:[#allocation8 + $0x50] sm:$0xff] }
 0x242   :  { %4632 = vmatprep.subr.bf16.mxu1 %v7656_v30  ;;  %v4299_v53 = vpop.f32.mrf.mxu0  ;;  %v4340_v2 = vpop.f32.mrf.mxu1  ;;  %v1289_v29 = vld [vmem:[#allocation8 + $0x470] sm:$0xff]  ;;  %v7495_v30 = vcombine.low %v1165_v51, %v1169_v17  ;;  %v7623_v31 = vcombine.low %v1293_v44, %v1297_v49  ;;  %v7488_v32 = vcombine.high %v1157_v20, %v1161_v21 }
 0x243   :  { %v9227_v60 = vadd.f32 %v4338_v40, %v4298_v39  ;;  %4592 = vmatpush1.bf16.msra.mxu0 %v7527_v35  ;;  %v7616_v33 = vcombine.high %v1285_v28, %v1289_v29  ;;  %v1149_v34 = vld [vmem:[#allocation8 + $0x10] sm:$0xff]  ;;  %v7615_v39 = vcombine.low %v1285_v28, %v1289_v29 }
 0x244   :  { %4633 = vmatpush1.bf16.msra.mxu1 %v7655_v14  ;;  %v4300_v4 = vpop.f32.mrf.mxu0  ;;  %4593 = vmatprep.subr.bf16.mxu0 %v7520_v37  ;;  %v4341_v7 = vpop.f32.mrf.mxu1  ;;  %v1153_v35 = vld [vmem:[#allocation8 + $0x30] sm:$0xff]  ;;  %v7487_v37 = vcombine.low %v1157_v20, %v1161_v21 }
 0x245   :  { %4634 = vmatprep.subr.bf16.mxu1 %v7648_v41  ;;  %v1277_v36 = vld [vmem:[#allocation8 + $0x410] sm:$0xff]  ;;  %v7480_v40 = vcombine.high %v1149_v34, %v1153_v35  ;;  %v7479_v56 = vcombine.low %v1149_v34, %v1153_v35 }
 0x246   :  { %v1281_v14 = vld [vmem:[#allocation8 + $0x430] sm:$0xff] }
 0x247   :  { %4594 = vmatpush1.bf16.msra.mxu0 %v7519_v3  ;;  %v7608_v41 = vcombine.high %v1277_v36, %v1281_v14  ;;  %v1397_v53 = vld [vmem:[#allocation8 + $0x7d0] sm:$0xff]  ;;  %v7607_v2 = vcombine.low %v1277_v36, %v1281_v14  ;;  %v7600_v3 = vcombine.high %v1269_v45, %v1273_v46 }
 0x248   :  { %4635 = vmatpush1.bf16.msra.mxu1 %v7647_v5  ;;  %4595 = vmatprep.subr.bf16.mxu0 %v7512_v6  ;;  %v7728_v4 = vcombine.high %v1397_v53, %v1401_v54  ;;  %v1261_v5 = vld [vmem:[#allocation8 + $0x390] sm:$0xff]  ;;  %v7727_v10 = vcombine.low %v1397_v53, %v1401_v54 }
 0x249   :  { %4636 = vmatprep.subr.bf16.mxu1 %v7640_v8  ;;  %v1265_v6 = vld [vmem:[#allocation8 + $0x3b0] sm:$0xff] }
 0x24a   :  { %v1389_v7 = vld [vmem:[#allocation8 + $0x790] sm:$0xff]  ;;  %v7592_v11 = vcombine.high %v1261_v5, %v1265_v6  ;;  %v7591_v51 = vcombine.low %v1261_v5, %v1265_v6 }
 0x24b   :  { %4596 = vmatpush1.bf16.msra.mxu0 %v7511_v13  ;;  %v1393_v8 = vld [vmem:[#allocation8 + $0x7b0] sm:$0xff] }
 0x24c   :  { %4637 = vmatpush1.bf16.msra.mxu1 %v7639_v15  ;;  %4597 = vmatprep.subr.bf16.mxu0 %v7504_v16  ;;  %v7720_v12 = vcombine.high %v1389_v7, %v1393_v8  ;;  %v1253_v13 = vld [vmem:[#allocation8 + $0x350] sm:$0xff]  ;;  %v7719_v17 = vcombine.low %v1389_v7, %v1393_v8 }
 0x24d   :  { %4638 = vmatprep.subr.bf16.mxu1 %v7632_v43  ;;  %v1257_v15 = vld [vmem:[#allocation8 + $0x370] sm:$0xff] }
 0x24e   :  { %v1381_v16 = vld [vmem:[#allocation8 + $0x750] sm:$0xff]  ;;  %v7584_v44 = vcombine.high %v1253_v13, %v1257_v15  ;;  %v7583_v20 = vcombine.low %v1253_v13, %v1257_v15 }
 0x24f   :  { %4598 = vmatpush1.bf16.msra.mxu0 %v7503_v52  ;;  %v1385_v43 = vld [vmem:[#allocation8 + $0x770] sm:$0xff] }
 0x250   :  { %4639 = vmatpush1.bf16.msra.mxu1 %v7631_v18  ;;  %4599 = vmatprep.subr.bf16.mxu0 %v7496_v19  ;;  %v7712_v49 = vcombine.high %v1381_v16, %v1385_v43  ;;  %v1245_v52 = vld [vmem:[#allocation8 + $0x310] sm:$0xff]  ;;  %v7711_v21 = vcombine.low %v1381_v16, %v1385_v43 }
 0x251   :  { %4640 = vmatprep.subr.bf16.mxu1 %v7624_v24  ;;  %v1249_v18 = vld [vmem:[#allocation8 + $0x330] sm:$0xff] }
 0x252   :  { %v1373_v19 = vld [vmem:[#allocation8 + $0x710] sm:$0xff]  ;;  %v7576_v28 = vcombine.high %v1245_v52, %v1249_v18  ;;  %v7575_v34 = vcombine.low %v1245_v52, %v1249_v18 }
 0x253   :  { %4600 = vmatpush1.bf16.msra.mxu0 %v7495_v30  ;;  %v1377_v24 = vld [vmem:[#allocation8 + $0x730] sm:$0xff] }
 0x254   :  { %4641 = vmatpush1.bf16.msra.mxu1 %v7623_v31  ;;  %4601 = vmatprep.subr.bf16.mxu0 %v7488_v32  ;;  %v7704_v29 = vcombine.high %v1373_v19, %v1377_v24  ;;  %v1237_v30 = vld [vmem:[#allocation8 + $0x2d0] sm:$0xff]  ;;  %v7703_v35 = vcombine.low %v1373_v19, %v1377_v24 }
 0x255   :  { %4642 = vmatprep.subr.bf16.mxu1 %v7616_v33  ;;  %v1241_v31 = vld [vmem:[#allocation8 + $0x2f0] sm:$0xff] }
 0x256   :  { %v1365_v32 = vld [vmem:[#allocation8 + $0x6d0] sm:$0xff]  ;;  %v7568_v36 = vcombine.high %v1237_v30, %v1241_v31  ;;  %v7567_v45 = vcombine.low %v1237_v30, %v1241_v31 }
 0x257   :  { %4602 = vmatpush1.bf16.msra.mxu0 %v7487_v37  ;;  %v1369_v33 = vld [vmem:[#allocation8 + $0x6f0] sm:$0xff] }
 0x258   :  { %4643 = vmatpush1.bf16.msra.mxu1 %v7615_v39  ;;  %4603 = vmatprep.subr.bf16.mxu0 %v7480_v40  ;;  %v7696_v14 = vcombine.high %v1365_v32, %v1369_v33  ;;  %v1229_v37 = vld [vmem:[#allocation8 + $0x290] sm:$0xff]  ;;  %v7695_v46 = vcombine.low %v1365_v32, %v1369_v33 }
 0x259   :  { %4644 = vmatprep.subr.bf16.mxu1 %v7608_v41  ;;  %v1233_v39 = vld [vmem:[#allocation8 + $0x2b0] sm:$0xff] }
 0x25a   :  { %v1357_v40 = vld [vmem:[#allocation8 + $0x690] sm:$0xff]  ;;  %v7560_v53 = vcombine.high %v1229_v37, %v1233_v39  ;;  %v7559_v5 = vcombine.low %v1229_v37, %v1233_v39 }
 0x25b   :  { %4604 = vmatpush1.bf16.msra.mxu0 %v7479_v56  ;;  %v1361_v41 = vld [vmem:[#allocation8 + $0x6b0] sm:$0xff] }
 0x25c   :  { %4645 = vmatpush1.bf16.msra.mxu1 %v7607_v2  ;;  %4605 = vmatprep.subr.bf16.mxu0 %v7600_v3  ;;  %v7688_v54 = vcombine.high %v1357_v40, %v1361_v41  ;;  %v1221_v56 = vld [vmem:[#allocation8 + $0x250] sm:$0xff]  ;;  %v7687_v6 = vcombine.low %v1357_v40, %v1361_v41 }
 0x25d   :  { %4646 = vmatprep.subr.bf16.mxu1 %v7728_v4  ;;  %v1225_v2 = vld [vmem:[#allocation8 + $0x270] sm:$0xff] }
 0x25e   :  { %v1349_v3 = vld [vmem:[#allocation8 + $0x650] sm:$0xff]  ;;  %v7552_v7 = vcombine.high %v1221_v56, %v1225_v2  ;;  %v7551_v13 = vcombine.low %v1221_v56, %v1225_v2 }
 0x25f   :  { %4606 = vmatpush2.bf16.msra.mxu0 %v7599_v9  ;;  %v1353_v4 = vld [vmem:[#allocation8 + $0x670] sm:$0xff] }
 0x260   :  { %4647 = vmatpush2.bf16.msra.mxu1 %v7727_v10  ;;  %4607 = vmatprep.subr.bf16.mxu0 %v7592_v11  ;;  %v7680_v8 = vcombine.high %v1349_v3, %v1353_v4  ;;  %v1213_v9 = vld [vmem:[#allocation8 + $0x210] sm:$0xff]  ;;  %v7679_v15 = vcombine.low %v1349_v3, %v1353_v4 }
 0x261   :  { %4648 = vmatprep.subr.bf16.mxu1 %v7720_v12  ;;  %v1217_v10 = vld [vmem:[#allocation8 + $0x230] sm:$0xff] }
 0x262   :  { %v1341_v11 = vld [vmem:[#allocation8 + $0x610] sm:$0xff]  ;;  %v7544_v16 = vcombine.high %v1213_v9, %v1217_v10  ;;  %v7543_v52 = vcombine.low %v1213_v9, %v1217_v10 }
 0x263   :  { %4608 = vmatpush2.bf16.msra.mxu0 %v7591_v51  ;;  %v1345_v12 = vld [vmem:[#allocation8 + $0x630] sm:$0xff] }
 0x264   :  { %4649 = vmatpush2.bf16.msra.mxu1 %v7719_v17  ;;  %4609 = vmatprep.subr.bf16.mxu0 %v7584_v44  ;;  %v7672_v43 = vcombine.high %v1341_v11, %v1345_v12  ;;  %v1461_v51 = vld [vmem:[#allocation8 + $0x9d0] sm:$0xff]  ;;  %v7671_v18 = vcombine.low %v1341_v11, %v1345_v12 }
 0x265   :  { %4650 = vmatprep.subr.bf16.mxu1 %v7712_v49  ;;  %v1465_v17 = vld [vmem:[#allocation8 + $0x9f0] sm:$0xff] }
 0x266   :  { %v1589_v44 = vld [vmem:[#allocation8 + $0xdd0] sm:$0xff]  ;;  %v7792_v19 = vcombine.high %v1461_v51, %v1465_v17 }
 0x267   :  { %4610 = vmatpush2.bf16.msra.mxu0 %v7583_v20  ;;  %v1593_v49 = vld [vmem:[#allocation8 + $0xdf0] sm:$0xff] }
 0x268   :  { %4651 = vmatpush2.bf16.msra.mxu1 %v7711_v21  ;;  %4611 = vmatprep.subr.bf16.mxu0 %v7576_v28  ;;  %v7920_v24 = vcombine.high %v1589_v44, %v1593_v49  ;;  %v1453_v20 = vld [vmem:[#allocation8 + $0x990] sm:$0xff]  ;;  %v7791_v28 = vcombine.low %v1461_v51, %v1465_v17  ;;  %v7919_v31 = vcombine.low %v1589_v44, %v1593_v49 }
 0x269   :  { %4652 = vmatprep.subr.bf16.mxu1 %v7704_v29  ;;  %v1457_v21 = vld [vmem:[#allocation8 + $0x9b0] sm:$0xff] }
 0x26a   :  { %v1581_v29 = vld [vmem:[#allocation8 + $0xd90] sm:$0xff]  ;;  %v7784_v32 = vcombine.high %v1453_v20, %v1457_v21  ;;  %v7783_v41 = vcombine.low %v1453_v20, %v1457_v21 }
 0x26b   :  { %4612 = vmatpush2.bf16.msra.mxu0 %v7575_v34  ;;  %v1585_v30 = vld [vmem:[#allocation8 + $0xdb0] sm:$0xff] }
 0x26c   :  { %4653 = vmatpush2.bf16.msra.mxu1 %v7703_v35  ;;  %4613 = vmatprep.subr.bf16.mxu0 %v7568_v36  ;;  %v1445_v33 = vld [vmem:[#allocation8 + $0x950] sm:$0xff]  ;;  %v7912_v36 = vcombine.high %v1581_v29, %v1585_v30 }
 0x26d   :  { %4654 = vmatprep.subr.bf16.mxu1 %v7696_v14  ;;  %v1449_v34 = vld [vmem:[#allocation8 + $0x970] sm:$0xff] }
 0x26e   :  { %v1573_v14 = vld [vmem:[#allocation8 + $0xd50] sm:$0xff]  ;;  %v7775_v10 = vcombine.low %v1445_v33, %v1449_v34 }
 0x26f   :  { %4614 = vmatpush2.bf16.msra.mxu0 %v7567_v45  ;;  %v1577_v37 = vld [vmem:[#allocation8 + $0xd70] sm:$0xff] }
 0x270   :  { %4655 = vmatpush2.bf16.msra.mxu1 %v7695_v46  ;;  %4615 = vmatprep.subr.bf16.mxu0 %v7560_v53  ;;  %v7911_v46 = vcombine.low %v1581_v29, %v1585_v30  ;;  %v7776_v53 = vcombine.high %v1445_v33, %v1449_v34  ;;  %v7904_v3 = vcombine.high %v1573_v14, %v1577_v37  ;;  %v1437_v4 = vld [vmem:[#allocation8 + $0x910] sm:$0xff] }
 0x271   :  { %4656 = vmatprep.subr.bf16.mxu1 %v7688_v54  ;;  %v7903_v12 = vcombine.low %v1573_v14, %v1577_v37  ;;  %v1557_v51 = vld [vmem:[#allocation8 + $0xcd0] sm:$0xff] }
 0x272   :  { %v1561_v17 = vld [vmem:[#allocation8 + $0xcf0] sm:$0xff] }
 0x273   :  { %4616 = vmatpush2.bf16.msra.mxu0 %v7559_v5  ;;  %v1549_v20 = vld [vmem:[#allocation8 + $0xc90] sm:$0xff]  ;;  %v7887_v29 = vcombine.low %v1557_v51, %v1561_v17 }
 0x274   :  { %4657 = vmatpush2.bf16.msra.mxu1 %v7687_v6  ;;  %4617 = vmatprep.subr.bf16.mxu0 %v7552_v7  ;;  %v1565_v6 = vld [vmem:[#allocation8 + $0xd10] sm:$0xff] }
 0x275   :  { %4658 = vmatprep.subr.bf16.mxu1 %v7680_v8  ;;  %v1569_v7 = vld [vmem:[#allocation8 + $0xd30] sm:$0xff] }
 0x276   :  { %v7895_v49 = vcombine.low %v1565_v6, %v1569_v7  ;;  %v1553_v21 = vld [vmem:[#allocation8 + $0xcb0] sm:$0xff] }
 0x277   :  { %4618 = vmatpush2.bf16.msra.mxu0 %v7551_v13  ;;  %v1417_v33 = vld [vmem:[#allocation8 + $0x870] sm:$0xff]  ;;  %v7879_v14 = vcombine.low %v1549_v20, %v1553_v21 }
 0x278   :  { %4659 = vmatpush2.bf16.msra.mxu1 %v7679_v15  ;;  %4619 = vmatprep.subr.bf16.mxu0 %v7544_v16  ;;  %v7896_v15 = vcombine.high %v1565_v6, %v1569_v7  ;;  %v1429_v16 = vld [vmem:[#allocation8 + $0x8d0] sm:$0xff] }
 0x279   :  { %4660 = vmatprep.subr.bf16.mxu1 %v7672_v43  ;;  %v1433_v43 = vld [vmem:[#allocation8 + $0x8f0] sm:$0xff] }
 0x27a   :  { %v1541_v34 = vld [vmem:[#allocation8 + $0xc50] sm:$0xff] }
 0x27b   :  { %4620 = vmatpush2.bf16.msra.mxu0 %v7543_v52  ;;  %v7760_v52 = vcombine.high %v1429_v16, %v1433_v43  ;;  %v1657_v6 = vld [vmem:[#allocation8 + $0xff0] sm:$0xff] }
 0x27c   :  { %4661 = vmatpush2.bf16.msra.mxu1 %v7671_v18  ;;  %4671 = vmatprep.subr.bf16.mxu0 %v7792_v19  ;;  %v7888_v18 = vcombine.high %v1557_v51, %v1561_v17  ;;  %v1421_v19 = vld [vmem:[#allocation8 + $0x890] sm:$0xff] }
 0x27d   :  { %4712 = vmatprep.subr.bf16.mxu1 %v7920_v24  ;;  %v1425_v24 = vld [vmem:[#allocation8 + $0x8b0] sm:$0xff] }
 0x27e   :  { %4622 = vmatmul.mubr.bf16.vlgmr.msra.gmra.mxu0 %v9165_v62  ;;  %v4377_v35 = vpop.f32.mrf.mxu0  ;;  %v4418_v40 = vpop.f32.mrf.mxu1  ;;  %v7752_v30 = vcombine.high %v1421_v19, %v1425_v24 }
 0x27f   :  { %4663 = vmatmul.mubr.bf16.vlgmr.msra.gmra.mxu1 %v9169_v1  ;;  %v4378_v39 = vadd.f32 %v4377_v35, %v9224_v38  ;;  %4672 = vmatpush1.bf16.msra.mxu0 %v7791_v28  ;;  %v1441_v38 = vld [vmem:[#allocation8 + $0x930] sm:$0xff]  ;;  %v7759_v28 = vcombine.low %v1429_v16, %v1433_v43 }
 0x280   :  { %4703 = vmatprep.mubr.bf16.mxu0 %v9197_v48  ;;  %4713 = vmatpush1.bf16.msra.mxu1 %v7919_v31  ;;  %v4379_v45 = vpop.f32.mrf.mxu0  ;;  %v4420_v2 = vpop.f32.mrf.mxu1  ;;  %v7768_v13 = vcombine.high %v1437_v4, %v1441_v38  ;;  %v7767_v44 = vcombine.low %v1437_v4, %v1441_v38  ;;  %v7880_v31 = vcombine.high %v1549_v20, %v1553_v21  ;;  %v1545_v35 = vld [vmem:[#allocation8 + $0xc70] sm:$0xff] }
 0x281   :  { %v9233_v54 = vadd.f32 %v4418_v40, %v4378_v39  ;;  %4744 = vmatprep.mubr.bf16.mxu1 %v9201_v59  ;;  %v4380_v56 = vadd.f32 %v4379_v45, %v9227_v60  ;;  %4673 = vmatprep.subr.bf16.mxu0 %v7784_v32  ;;  %v1413_v32 = vld [vmem:[#allocation8 + $0x850] sm:$0xff]  ;;  %v7872_v39 = vcombine.high %v1541_v34, %v1545_v35 }
 0x282   :  { %4714 = vmatprep.subr.bf16.mxu1 %v7912_v36  ;;  %v4381_v5 = vpop.f32.mrf.mxu0  ;;  %v4422_v9 = vpop.f32.mrf.mxu1  ;;  %v7751_v36 = vcombine.low %v1421_v19, %v1425_v24  ;;  %v7744_v37 = vcombine.high %v1413_v32, %v1417_v33  ;;  %v1405_v40 = vld [vmem:[#allocation8 + $0x810] sm:$0xff] }
 0x283   :  { %v9237_v8 = vadd.f32 %v4420_v2, %v4380_v56  ;;  %4674 = vmatpush1.bf16.msra.mxu0 %v7783_v41  ;;  %v1409_v41 = vld [vmem:[#allocation8 + $0x830] sm:$0xff]  ;;  %v7871_v56 = vcombine.low %v1541_v34, %v1545_v35 }
 0x284   :  { %4715 = vmatpush1.bf16.msra.mxu1 %v7911_v46  ;;  %v4382_v11 = vpop.f32.mrf.mxu0  ;;  %4675 = vmatprep.subr.bf16.mxu0 %v7776_v53  ;;  %v4423_v60 = vpop.f32.mrf.mxu1  ;;  %v1533_v45 = vld [vmem:[#allocation8 + $0xc10] sm:$0xff]  ;;  %v7743_v53 = vcombine.low %v1413_v32, %v1417_v33  ;;  %v7736_v2 = vcombine.high %v1405_v40, %v1409_v41  ;;  %v7735_v7 = vcombine.low %v1405_v40, %v1409_v41 }
 0x285   :  { %4716 = vmatprep.subr.bf16.mxu1 %v7904_v3  ;;  %v1537_v46 = vld [vmem:[#allocation8 + $0xc30] sm:$0xff] }
 0x286   :  { %v7864_v3 = vcombine.high %v1533_v45, %v1537_v46  ;;  %v1525_v4 = vld [vmem:[#allocation8 + $0xbd0] sm:$0xff]  ;;  %v7863_v9 = vcombine.low %v1533_v45, %v1537_v46 }
 0x287   :  { %4676 = vmatpush1.bf16.msra.mxu0 %v7775_v10  ;;  %v1529_v38 = vld [vmem:[#allocation8 + $0xbf0] sm:$0xff] }
 0x288   :  { %4717 = vmatpush1.bf16.msra.mxu1 %v7903_v12  ;;  %4677 = vmatprep.subr.bf16.mxu0 %v7768_v13  ;;  %v1653_v5 = vld [vmem:[#allocation8 + $0xfd0] sm:$0xff]  ;;  %v7856_v10 = vcombine.high %v1525_v4, %v1529_v38  ;;  %v7855_v16 = vcombine.low %v1525_v4, %v1529_v38 }
 0x289   :  { %4718 = vmatprep.subr.bf16.mxu1 %v7896_v15  ;;  %v7984_v11 = vcombine.high %v1653_v5, %v1657_v6  ;;  %v1517_v12 = vld [vmem:[#allocation8 + $0xb90] sm:$0xff]  ;;  %v7983_v43 = vcombine.low %v1653_v5, %v1657_v6 }
 0x28a   :  { %v1521_v13 = vld [vmem:[#allocation8 + $0xbb0] sm:$0xff] }
 0x28b   :  { %4678 = vmatpush1.bf16.msra.mxu0 %v7767_v44  ;;  %v1645_v60 = vld [vmem:[#allocation8 + $0xf90] sm:$0xff]  ;;  %v7848_v51 = vcombine.high %v1517_v12, %v1521_v13  ;;  %v7847_v19 = vcombine.low %v1517_v12, %v1521_v13 }
 0x28c   :  { %4719 = vmatpush1.bf16.msra.mxu1 %v7895_v49  ;;  %4679 = vmatprep.subr.bf16.mxu0 %v7760_v52  ;;  %v1649_v15 = vld [vmem:[#allocation8 + $0xfb0] sm:$0xff] }
 0x28d   :  { %4720 = vmatprep.subr.bf16.mxu1 %v7888_v18  ;;  %v7976_v17 = vcombine.high %v1645_v60, %v1649_v15  ;;  %v1509_v44 = vld [vmem:[#allocation8 + $0xb50] sm:$0xff]  ;;  %v7975_v24 = vcombine.low %v1645_v60, %v1649_v15 }
 0x28e   :  { %v1513_v49 = vld [vmem:[#allocation8 + $0xb70] sm:$0xff] }
 0x28f   :  { %4680 = vmatpush1.bf16.msra.mxu0 %v7759_v28  ;;  %v1637_v52 = vld [vmem:[#allocation8 + $0xf50] sm:$0xff]  ;;  %v7840_v20 = vcombine.high %v1509_v44, %v1513_v49  ;;  %v7839_v32 = vcombine.low %v1509_v44, %v1513_v49 }
 0x290   :  { %4721 = vmatpush1.bf16.msra.mxu1 %v7887_v29  ;;  %4681 = vmatprep.subr.bf16.mxu0 %v7752_v30  ;;  %v1641_v18 = vld [vmem:[#allocation8 + $0xf70] sm:$0xff] }
 0x291   :  { %4722 = vmatprep.subr.bf16.mxu1 %v7880_v31  ;;  %v7968_v21 = vcombine.high %v1637_v52, %v1641_v18  ;;  %v1501_v28 = vld [vmem:[#allocation8 + $0xb10] sm:$0xff]  ;;  %v7967_v33 = vcombine.low %v1637_v52, %v1641_v18 }
 0x292   :  { %v1505_v29 = vld [vmem:[#allocation8 + $0xb30] sm:$0xff] }
 0x293   :  { %4682 = vmatpush1.bf16.msra.mxu0 %v7751_v36  ;;  %v1629_v30 = vld [vmem:[#allocation8 + $0xf10] sm:$0xff]  ;;  %v7832_v34 = vcombine.high %v1501_v28, %v1505_v29  ;;  %v7831_v40 = vcombine.low %v1501_v28, %v1505_v29 }
 0x294   :  { %4723 = vmatpush1.bf16.msra.mxu1 %v7879_v14  ;;  %4683 = vmatprep.subr.bf16.mxu0 %v7744_v37  ;;  %v1633_v31 = vld [vmem:[#allocation8 + $0xf30] sm:$0xff] }
 0x295   :  { %4724 = vmatprep.subr.bf16.mxu1 %v7872_v39  ;;  %v7960_v35 = vcombine.high %v1629_v30, %v1633_v31  ;;  %v1493_v36 = vld [vmem:[#allocation8 + $0xad0] sm:$0xff]  ;;  %v7959_v41 = vcombine.low %v1629_v30, %v1633_v31 }
 0x296   :  { %v1497_v14 = vld [vmem:[#allocation8 + $0xaf0] sm:$0xff] }
 0x297   :  { %4684 = vmatpush1.bf16.msra.mxu0 %v7743_v53  ;;  %v1621_v37 = vld [vmem:[#allocation8 + $0xed0] sm:$0xff]  ;;  %v7824_v45 = vcombine.high %v1493_v36, %v1497_v14  ;;  %v7823_v4 = vcombine.low %v1493_v36, %v1497_v14  ;;  %v1326_v36 = vld [vmem:[#allocation8 + $0x598] sm:$0xff] }
 0x298   :  { %4725 = vmatpush1.bf16.msra.mxu1 %v7871_v56  ;;  %4685 = vmatprep.subr.bf16.mxu0 %v7736_v2  ;;  %v1625_v39 = vld [vmem:[#allocation8 + $0xef0] sm:$0xff]  ;;  %v1330_v14 = vld [vmem:[#allocation8 + $0x5b8] sm:$0xff] }
 0x299   :  { %4726 = vmatprep.subr.bf16.mxu1 %v7864_v3  ;;  %v7952_v46 = vcombine.high %v1621_v37, %v1625_v39  ;;  %v1485_v53 = vld [vmem:[#allocation8 + $0xa90] sm:$0xff]  ;;  %v7951_v38 = vcombine.low %v1621_v37, %v1625_v39  ;;  %v1676_v39 = vrot.slane %v9215_v57, %v9153_v27 }
 0x29a   :  { %v1489_v56 = vld [vmem:[#allocation8 + $0xab0] sm:$0xff] }
 0x29b   :  { %4686 = vmatpush1.bf16.msra.mxu0 %v7735_v7  ;;  %v1613_v2 = vld [vmem:[#allocation8 + $0xe90] sm:$0xff]  ;;  %v7816_v5 = vcombine.high %v1485_v53, %v1489_v56  ;;  %v7815_v12 = vcombine.low %v1485_v53, %v1489_v56  ;;  %v7658_v53 = vcombine.high %v1326_v36, %v1330_v14  ;;  %v1318_v56 = vld [vmem:[#allocation8 + $0x558] sm:$0xff] }
 0x29c   :  { %4727 = vmatpush1.bf16.msra.mxu1 %v7863_v9  ;;  %4687 = vmatprep.subr.bf16.mxu0 %v7856_v10  ;;  %v1617_v3 = vld [vmem:[#allocation8 + $0xeb0] sm:$0xff] }
 0x29d   :  { %4728 = vmatprep.subr.bf16.mxu1 %v7984_v11  ;;  %v7944_v6 = vcombine.high %v1613_v2, %v1617_v3  ;;  %v1477_v7 = vld [vmem:[#allocation8 + $0xa50] sm:$0xff]  ;;  %v7943_v13 = vcombine.low %v1613_v2, %v1617_v3  ;;  %v1322_v2 = vld [vmem:[#allocation8 + $0x578] sm:$0xff] }
 0x29e   :  { %v1481_v9 = vld [vmem:[#allocation8 + $0xa70] sm:$0xff] }
 0x29f   :  { %4688 = vmatpush2.bf16.msra.mxu0 %v7855_v16  ;;  %v1605_v10 = vld [vmem:[#allocation8 + $0xe50] sm:$0xff]  ;;  %v7808_v60 = vcombine.high %v1477_v7, %v1481_v9  ;;  %v7807_v44 = vcombine.low %v1477_v7, %v1481_v9 }
 0x2a0   :  { %4729 = vmatpush2.bf16.msra.mxu1 %v7983_v43  ;;  %4689 = vmatprep.subr.bf16.mxu0 %v7848_v51  ;;  %v1609_v11 = vld [vmem:[#allocation8 + $0xe70] sm:$0xff] }
 0x2a1   :  { %4730 = vmatprep.subr.bf16.mxu1 %v7976_v17  ;;  %v7936_v15 = vcombine.high %v1605_v10, %v1609_v11  ;;  %v1469_v16 = vld [vmem:[#allocation8 + $0xa10] sm:$0xff]  ;;  %v7935_v49 = vcombine.low %v1605_v10, %v1609_v11  ;;  %v7650_v11 = vcombine.high %v1318_v56, %v1322_v2 }
 0x2a2   :  { %v1473_v43 = vld [vmem:[#allocation8 + $0xa30] sm:$0xff] }
 0x2a3   :  { %4690 = vmatpush2.bf16.msra.mxu0 %v7847_v19  ;;  %v1597_v51 = vld [vmem:[#allocation8 + $0xe10] sm:$0xff]  ;;  %v7800_v52 = vcombine.high %v1469_v16, %v1473_v43  ;;  %v1206_v19 = vld [vmem:[#allocation8 + $0x1d8] sm:$0xff]  ;;  %v7799_v28 = vcombine.low %v1469_v16, %v1473_v43 }
 0x2a4   :  { %4731 = vmatpush2.bf16.msra.mxu1 %v7975_v24  ;;  %4691 = vmatprep.subr.bf16.mxu0 %v7840_v20  ;;  %v1601_v17 = vld [vmem:[#allocation8 + $0xe30] sm:$0xff]  ;;  %v1210_v24 = vld [vmem:[#allocation8 + $0x1f8] sm:$0xff] }
 0x2a5   :  { %4732 = vmatprep.subr.bf16.mxu1 %v7968_v21  ;;  %v7928_v18 = vcombine.high %v1597_v51, %v1601_v17  ;;  %v1334_v20 = vld [vmem:[#allocation8 + $0x5d8] sm:$0xff]  ;;  %v7927_v29 = vcombine.low %v1597_v51, %v1601_v17  ;;  %v7538_v30 = vcombine.high %v1206_v19, %v1210_v24 }
 0x2a6   :  { %v1338_v21 = vld [vmem:[#allocation8 + $0x5f8] sm:$0xff] }
 0x2a7   :  { %4692 = vmatpush2.bf16.msra.mxu0 %v7839_v32  ;;  %v7666_v31 = vcombine.high %v1334_v20, %v1338_v21  ;;  %v1198_v32 = vld [vmem:[#allocation8 + $0x198] sm:$0xff]  ;;  %v7665_v37 = vcombine.low %v1334_v20, %v1338_v21 }
 0x2a8   :  { %4733 = vmatpush2.bf16.msra.mxu1 %v7967_v33  ;;  %4693 = vmatprep.subr.bf16.mxu0 %v7832_v34  ;;  %v1202_v33 = vld [vmem:[#allocation8 + $0x1b8] sm:$0xff]  ;;  %v1672_v34 = vrot.slane %v9215_v57, %v9147_v25  ;;  %v7657_v57 = vcombine.low %v1326_v36, %v1330_v14 }
 0x2a9   :  { %4734 = vmatprep.subr.bf16.mxu1 %v7960_v35  ;;  %v7537_v35 = vcombine.low %v1206_v19, %v1210_v24  ;;  %v1314_v16 = vld [vmem:[#allocation8 + $0x538] sm:$0xff] }
 0x2aa   :  { %v1178_v19 = vld [vmem:[#allocation8 + $0xf8] sm:$0xff] }
 0x2ab   :  { %4694 = vmatpush2.bf16.msra.mxu0 %v7831_v40  ;;  %v7530_v40 = vcombine.high %v1198_v32, %v1202_v33  ;;  %v1302_v24 = vld [vmem:[#allocation8 + $0x4d8] sm:$0xff] }
 0x2ac   :  { %4735 = vmatpush2.bf16.msra.mxu1 %v7959_v41  ;;  %4695 = vmatprep.subr.bf16.mxu0 %v7824_v45  ;;  %v1190_v41 = vld [vmem:[#allocation8 + $0x158] sm:$0xff] }
 0x2ad   :  { %4736 = vmatprep.subr.bf16.mxu1 %v7952_v46  ;;  %v1194_v45 = vld [vmem:[#allocation8 + $0x178] sm:$0xff] }
 0x2ae   :  { %v7521_v51 = vcombine.low %v1190_v41, %v1194_v45  ;;  %v1306_v20 = vld [vmem:[#allocation8 + $0x4f8] sm:$0xff] }
 0x2af   :  { %4696 = vmatpush2.bf16.msra.mxu0 %v7823_v4  ;;  %v7633_v36 = vcombine.low %v1302_v24, %v1306_v20 }
 0x2b0   :  { %4737 = vmatpush2.bf16.msra.mxu1 %v7951_v38  ;;  %4697 = vmatprep.subr.bf16.mxu0 %v7816_v5  ;;  %v7529_v38 = vcombine.low %v1198_v32, %v1202_v33  ;;  %v1170_v32 = vld [vmem:[#allocation8 + $0xb8] sm:$0xff] }
 0x2b1   :  { %4738 = vmatprep.subr.bf16.mxu1 %v7944_v6  ;;  %v7522_v6 = vcombine.high %v1190_v41, %v1194_v45  ;;  %v1294_v33 = vld [vmem:[#allocation8 + $0x498] sm:$0xff] }
 0x2b2   :  { %v1286_v41 = vld [vmem:[#allocation8 + $0x458] sm:$0xff] }
 0x2b3   :  { %4698 = vmatpush2.bf16.msra.mxu0 %v7815_v12  ;;  %v1182_v12 = vld [vmem:[#allocation8 + $0x118] sm:$0xff] }
 0x2b4   :  { %4739 = vmatpush2.bf16.msra.mxu1 %v7943_v13  ;;  %4699 = vmatprep.subr.bf16.mxu0 %v7808_v60  ;;  %v1186_v13 = vld [vmem:[#allocation8 + $0x138] sm:$0xff] }
 0x2b5   :  { %4740 = vmatprep.subr.bf16.mxu1 %v7936_v15  ;;  %v1310_v15 = vld [vmem:[#allocation8 + $0x518] sm:$0xff]  ;;  %v7513_v21 = vcombine.low %v1182_v12, %v1186_v13 }
 0x2b6   :  { %v1290_v45 = vld [vmem:[#allocation8 + $0x478] sm:$0xff] }
 0x2b7   :  { %4700 = vmatpush2.bf16.msra.mxu0 %v7807_v44  ;;  %v7649_v44 = vcombine.low %v1318_v56, %v1322_v2  ;;  %v7618_v2 = vcombine.high %v1286_v41, %v1290_v45 }
 0x2b8   :  { %4741 = vmatpush2.bf16.msra.mxu1 %v7935_v49  ;;  %4701 = vmatprep.subr.bf16.mxu0 %v7800_v52  ;;  %v7642_v52 = vcombine.high %v1310_v15, %v1314_v16 }
 0x2b9   :  { %4742 = vmatprep.subr.bf16.mxu1 %v7928_v18  ;;  %v1174_v18 = vld [vmem:[#allocation8 + $0xd8] sm:$0xff] }
 0x2bb   :  { %4702 = vmatpush2.bf16.msra.mxu0 %v7799_v28  ;;  %v7641_v28 = vcombine.low %v1310_v15, %v1314_v16 }
 0x2bc   :  { %4743 = vmatpush2.bf16.msra.mxu1 %v7927_v29  ;;  %4753 = vmatprep.subr.bf16.mxu0 %v7538_v30  ;;  %v7506_v29 = vcombine.high %v1174_v18, %v1178_v19  ;;  %v7634_v30 = vcombine.high %v1302_v24, %v1306_v20  ;;  %v1254_v20 = vld [vmem:[#allocation8 + $0x358] sm:$0xff] }
 0x2bd   :  { %4794 = vmatprep.subr.bf16.mxu1 %v7666_v31  ;;  %v1166_v31 = vld [vmem:[#allocation8 + $0x98] sm:$0xff] }
 0x2be   :  { %v4459_v46 = vpop.f32.mrf.mxu0  ;;  %4704 = vmatmul.mubr.bf16.vlgmr.msra.gmra.mxu0 %v9199_v58  ;;  %v4500_v4 = vpop.f32.mrf.mxu1  ;;  %v7498_v14 = vcombine.high %v1166_v31, %v1170_v32 }
 0x2bf   :  { %v4460_v3 = vadd.f32 %v4459_v46, %v1672_v34  ;;  %4745 = vmatmul.mubr.bf16.vlgmr.msra.gmra.mxu1 %v9203_v0  ;;  %4754 = vmatpush1.bf16.msra.mxu0 %v7537_v35  ;;  %v1298_v34 = vld [vmem:[#allocation8 + $0x4b8] sm:$0xff]  ;;  %v7505_v35 = vcombine.low %v1174_v18, %v1178_v19  ;;  %v7497_v46 = vcombine.low %v1166_v31, %v1170_v32 }
 0x2c0   :  { %4785 = vmatprep.mubr.bf16.mxu0 %v9163_v61  ;;  %4795 = vmatpush1.bf16.msra.mxu1 %v7665_v37  ;;  %v4461_v5 = vpop.f32.mrf.mxu0  ;;  %v4502_v10 = vpop.f32.mrf.mxu1  ;;  %v7626_v37 = vcombine.high %v1294_v33, %v1298_v34 }
 0x2c1   :  { %v9246_v7 = vadd.f32 %v4500_v4, %v4460_v3  ;;  %4826 = vmatprep.mubr.bf16.mxu1 %v9167_v63  ;;  %v4462_v9 = vadd.f32 %v4461_v5, %v1676_v39  ;;  %4755 = vmatprep.subr.bf16.mxu0 %v7530_v40  ;;  %v7514_v63 = vcombine.high %v1182_v12, %v1186_v13  ;;  %v1158_v39 = vld [vmem:[#allocation8 + $0x58] sm:$0xff] }
 0x2c2   :  { %v4463_v60 = vpop.f32.mrf.mxu0  ;;  %4796 = vmatprep.subr.bf16.mxu1 %v7658_v53  ;;  %v4504_v61 = vpop.f32.mrf.mxu1  ;;  %v1162_v40 = vld [vmem:[#allocation8 + $0x78] sm:$0xff]  ;;  %v7625_v53 = vcombine.low %v1294_v33, %v1298_v34 }
 0x2c3   :  { %v9249_v43 = vadd.f32 %v4502_v10, %v4462_v9  ;;  %4756 = vmatpush1.bf16.msra.mxu0 %v7529_v38  ;;  %v7490_v56 = vcombine.high %v1158_v39, %v1162_v40  ;;  %v1150_v3 = vld [vmem:[#allocation8 + $0x18] sm:$0xff] }
 0x2c4   :  { %4797 = vmatpush1.bf16.msra.mxu1 %v7657_v57  ;;  %v4464_v17 = vpop.f32.mrf.mxu0  ;;  %4757 = vmatprep.subr.bf16.mxu0 %v7522_v6  ;;  %v4505_v49 = vpop.f32.mrf.mxu1  ;;  %v1154_v4 = vld [vmem:[#allocation8 + $0x38] sm:$0xff]  ;;  %v7489_v57 = vcombine.low %v1158_v39, %v1162_v40  ;;  %v7617_v6 = vcombine.low %v1286_v41, %v1290_v45 }
 0x2c5   :  { %4798 = vmatprep.subr.bf16.mxu1 %v7650_v11  ;;  %v1278_v38 = vld [vmem:[#allocation8 + $0x418] sm:$0xff]  ;;  %v7482_v9 = vcombine.high %v1150_v3, %v1154_v4  ;;  %v7481_v15 = vcombine.low %v1150_v3, %v1154_v4 }
 0x2c6   :  { %v1282_v5 = vld [vmem:[#allocation8 + $0x438] sm:$0xff] }
 0x2c7   :  { %4758 = vmatpush1.bf16.msra.mxu0 %v7521_v51  ;;  %v7610_v10 = vcombine.high %v1278_v38, %v1282_v5  ;;  %v1270_v11 = vld [vmem:[#allocation8 + $0x3d8] sm:$0xff]  ;;  %v7609_v16 = vcombine.low %v1278_v38, %v1282_v5 }
 0x2c8   :  { %4799 = vmatpush1.bf16.msra.mxu1 %v7649_v44  ;;  %4759 = vmatprep.subr.bf16.mxu0 %v7514_v63  ;;  %v1274_v12 = vld [vmem:[#allocation8 + $0x3f8] sm:$0xff] }
 0x2c9   :  { %4800 = vmatprep.subr.bf16.mxu1 %v7642_v52  ;;  %v1398_v13 = vld [vmem:[#allocation8 + $0x7d8] sm:$0xff]  ;;  %v7602_v61 = vcombine.high %v1270_v11, %v1274_v12  ;;  %v7601_v52 = vcombine.low %v1270_v11, %v1274_v12 }
 0x2ca   :  { %v1402_v60 = vld [vmem:[#allocation8 + $0x7f8] sm:$0xff] }
 0x2cb   :  { %4760 = vmatpush1.bf16.msra.mxu0 %v7513_v21  ;;  %v7730_v51 = vcombine.high %v1398_v13, %v1402_v60  ;;  %v1262_v17 = vld [vmem:[#allocation8 + $0x398] sm:$0xff]  ;;  %v7729_v18 = vcombine.low %v1398_v13, %v1402_v60 }
 0x2cc   :  { %4801 = vmatpush1.bf16.msra.mxu1 %v7641_v28  ;;  %4761 = vmatprep.subr.bf16.mxu0 %v7506_v29  ;;  %v1266_v44 = vld [vmem:[#allocation8 + $0x3b8] sm:$0xff] }
 0x2cd   :  { %4802 = vmatprep.subr.bf16.mxu1 %v7634_v30  ;;  %v1390_v63 = vld [vmem:[#allocation8 + $0x798] sm:$0xff]  ;;  %v7594_v19 = vcombine.high %v1262_v17, %v1266_v44  ;;  %v7593_v30 = vcombine.low %v1262_v17, %v1266_v44 }
 0x2ce   :  { %v1394_v49 = vld [vmem:[#allocation8 + $0x7b8] sm:$0xff] }
 0x2cf   :  { %4762 = vmatpush1.bf16.msra.mxu0 %v7505_v35  ;;  %v7722_v24 = vcombine.high %v1390_v63, %v1394_v49  ;;  %v1258_v21 = vld [vmem:[#allocation8 + $0x378] sm:$0xff]  ;;  %v7721_v31 = vcombine.low %v1390_v63, %v1394_v49 }
 0x2d0   :  { %4803 = vmatpush1.bf16.msra.mxu1 %v7633_v36  ;;  %4763 = vmatprep.subr.bf16.mxu0 %v7498_v14  ;;  %v1382_v28 = vld [vmem:[#allocation8 + $0x758] sm:$0xff]  ;;  %v7586_v32 = vcombine.high %v1254_v20, %v1258_v21 }
 0x2d1   :  { %4804 = vmatprep.subr.bf16.mxu1 %v7626_v37  ;;  %v1386_v29 = vld [vmem:[#allocation8 + $0x778] sm:$0xff]  ;;  %v7585_v37 = vcombine.low %v1254_v20, %v1258_v21 }
 0x2d2   :  { %v7714_v33 = vcombine.high %v1382_v28, %v1386_v29  ;;  %v1246_v34 = vld [vmem:[#allocation8 + $0x318] sm:$0xff]  ;;  %v7713_v39 = vcombine.low %v1382_v28, %v1386_v29 }
 0x2d3   :  { %4764 = vmatpush1.bf16.msra.mxu0 %v7497_v46  ;;  %v1250_v35 = vld [vmem:[#allocation8 + $0x338] sm:$0xff] }
 0x2d4   :  { %4805 = vmatpush1.bf16.msra.mxu1 %v7625_v53  ;;  %4765 = vmatprep.subr.bf16.mxu0 %v7490_v56  ;;  %v1374_v36 = vld [vmem:[#allocation8 + $0x718] sm:$0xff]  ;;  %v7578_v40 = vcombine.high %v1246_v34, %v1250_v35 }
 0x2d5   :  { %4806 = vmatprep.subr.bf16.mxu1 %v7618_v2  ;;  %v1378_v14 = vld [vmem:[#allocation8 + $0x738] sm:$0xff]  ;;  %v7577_v2 = vcombine.low %v1246_v34, %v1250_v35 }
 0x2d6   :  { %v7706_v41 = vcombine.high %v1374_v36, %v1378_v14  ;;  %v1238_v45 = vld [vmem:[#allocation8 + $0x2d8] sm:$0xff]  ;;  %v7705_v3 = vcombine.low %v1374_v36, %v1378_v14 }
 0x2d7   :  { %4766 = vmatpush1.bf16.msra.mxu0 %v7489_v57  ;;  %v1242_v46 = vld [vmem:[#allocation8 + $0x2f8] sm:$0xff] }
 0x2d8   :  { %4807 = vmatpush1.bf16.msra.mxu1 %v7617_v6  ;;  %4767 = vmatprep.subr.bf16.mxu0 %v7482_v9  ;;  %v1366_v53 = vld [vmem:[#allocation8 + $0x6d8] sm:$0xff]  ;;  %v7570_v4 = vcombine.high %v1238_v45, %v1242_v46 }
 0x2d9   :  { %4808 = vmatprep.subr.bf16.mxu1 %v7610_v10  ;;  %v1370_v56 = vld [vmem:[#allocation8 + $0x6f8] sm:$0xff]  ;;  %v7569_v10 = vcombine.low %v1238_v45, %v1242_v46 }
 0x2da   :  { %v7698_v38 = vcombine.high %v1366_v53, %v1370_v56  ;;  %v1230_v5 = vld [vmem:[#allocation8 + $0x298] sm:$0xff]  ;;  %v7697_v11 = vcombine.low %v1366_v53, %v1370_v56 }
 0x2db   :  { %4768 = vmatpush1.bf16.msra.mxu0 %v7481_v15  ;;  %v1234_v57 = vld [vmem:[#allocation8 + $0x2b8] sm:$0xff] }
 0x2dc   :  { %4809 = vmatpush1.bf16.msra.mxu1 %v7609_v16  ;;  %4769 = vmatprep.subr.bf16.mxu0 %v7602_v61  ;;  %v1358_v6 = vld [vmem:[#allocation8 + $0x698] sm:$0xff]  ;;  %v7562_v12 = vcombine.high %v1230_v5, %v1234_v57 }
 0x2dd   :  { %4810 = vmatprep.subr.bf16.mxu1 %v7730_v51  ;;  %v1362_v9 = vld [vmem:[#allocation8 + $0x6b8] sm:$0xff]  ;;  %v7561_v51 = vcombine.low %v1230_v5, %v1234_v57 }
 0x2de   :  { %v7690_v13 = vcombine.high %v1358_v6, %v1362_v9  ;;  %v1222_v60 = vld [vmem:[#allocation8 + $0x258] sm:$0xff]  ;;  %v7689_v17 = vcombine.low %v1358_v6, %v1362_v9 }
 0x2df   :  { %4770 = vmatpush2.bf16.msra.mxu0 %v7601_v52  ;;  %v1226_v15 = vld [vmem:[#allocation8 + $0x278] sm:$0xff] }
 0x2e0   :  { %4811 = vmatpush2.bf16.msra.mxu1 %v7729_v18  ;;  %4771 = vmatprep.subr.bf16.mxu0 %v7594_v19  ;;  %v1350_v16 = vld [vmem:[#allocation8 + $0x658] sm:$0xff]  ;;  %v7554_v44 = vcombine.high %v1222_v60, %v1226_v15 }
 0x2e1   :  { %4812 = vmatprep.subr.bf16.mxu1 %v7722_v24  ;;  %v1354_v61 = vld [vmem:[#allocation8 + $0x678] sm:$0xff]  ;;  %v7553_v24 = vcombine.low %v1222_v60, %v1226_v15 }
 0x2e2   :  { %v7682_v63 = vcombine.high %v1350_v16, %v1354_v61  ;;  %v1214_v49 = vld [vmem:[#allocation8 + $0x218] sm:$0xff]  ;;  %v7681_v20 = vcombine.low %v1350_v16, %v1354_v61 }
 0x2e3   :  { %4772 = vmatpush2.bf16.msra.mxu0 %v7593_v30  ;;  %v1218_v52 = vld [vmem:[#allocation8 + $0x238] sm:$0xff] }
 0x2e4   :  { %4813 = vmatpush2.bf16.msra.mxu1 %v7721_v31  ;;  %4773 = vmatprep.subr.bf16.mxu0 %v7586_v32  ;;  %v1342_v18 = vld [vmem:[#allocation8 + $0x618] sm:$0xff]  ;;  %v7546_v21 = vcombine.high %v1214_v49, %v1218_v52 }
 0x2e5   :  { %4814 = vmatprep.subr.bf16.mxu1 %v7714_v33  ;;  %v1346_v19 = vld [vmem:[#allocation8 + $0x638] sm:$0xff]  ;;  %v7545_v33 = vcombine.low %v1214_v49, %v1218_v52 }
 0x2e6   :  { %v7674_v28 = vcombine.high %v1342_v18, %v1346_v19  ;;  %v1462_v29 = vld [vmem:[#allocation8 + $0x9d8] sm:$0xff]  ;;  %v7673_v34 = vcombine.low %v1342_v18, %v1346_v19 }
 0x2e7   :  { %4774 = vmatpush2.bf16.msra.mxu0 %v7585_v37  ;;  %v1466_v30 = vld [vmem:[#allocation8 + $0x9f8] sm:$0xff] }
 0x2e8   :  { %4815 = vmatpush2.bf16.msra.mxu1 %v7713_v39  ;;  %4775 = vmatprep.subr.bf16.mxu0 %v7578_v40  ;;  %v1590_v31 = vld [vmem:[#allocation8 + $0xdd8] sm:$0xff]  ;;  %v7794_v35 = vcombine.high %v1462_v29, %v1466_v30  ;;  %v7793_v39 = vcombine.low %v1462_v29, %v1466_v30 }
 0x2e9   :  { %4816 = vmatprep.subr.bf16.mxu1 %v7706_v41  ;;  %v1594_v32 = vld [vmem:[#allocation8 + $0xdf8] sm:$0xff] }
 0x2ea   :  { %v7922_v36 = vcombine.high %v1590_v31, %v1594_v32  ;;  %v1454_v14 = vld [vmem:[#allocation8 + $0x998] sm:$0xff]  ;;  %v7921_v45 = vcombine.low %v1590_v31, %v1594_v32 }
 0x2eb   :  { %4776 = vmatpush2.bf16.msra.mxu0 %v7577_v2  ;;  %v1458_v37 = vld [vmem:[#allocation8 + $0x9b8] sm:$0xff] }
 0x2ec   :  { %4817 = vmatpush2.bf16.msra.mxu1 %v7705_v3  ;;  %4777 = vmatprep.subr.bf16.mxu0 %v7570_v4  ;;  %v1582_v40 = vld [vmem:[#allocation8 + $0xd98] sm:$0xff]  ;;  %v7786_v46 = vcombine.high %v1454_v14, %v1458_v37  ;;  %v7785_v6 = vcombine.low %v1454_v14, %v1458_v37 }
 0x2ed   :  { %4818 = vmatprep.subr.bf16.mxu1 %v7698_v38  ;;  %v1586_v41 = vld [vmem:[#allocation8 + $0xdb8] sm:$0xff] }
 0x2ee   :  { %v1446_v53 = vld [vmem:[#allocation8 + $0x958] sm:$0xff]  ;;  %v7914_v3 = vcombine.high %v1582_v40, %v1586_v41 }
 0x2ef   :  { %4778 = vmatpush2.bf16.msra.mxu0 %v7569_v10  ;;  %v1450_v56 = vld [vmem:[#allocation8 + $0x978] sm:$0xff]  ;;  %v7913_v10 = vcombine.low %v1582_v40, %v1586_v41 }
 0x2f0   :  { %4819 = vmatpush2.bf16.msra.mxu1 %v7697_v11  ;;  %4779 = vmatprep.subr.bf16.mxu0 %v7562_v12  ;;  %v1574_v4 = vld [vmem:[#allocation8 + $0xd58] sm:$0xff]  ;;  %v7778_v11 = vcombine.high %v1446_v53, %v1450_v56  ;;  %v7777_v61 = vcombine.low %v1446_v53, %v1450_v56 }
 0x2f1   :  { %4820 = vmatprep.subr.bf16.mxu1 %v7690_v13  ;;  %v1578_v38 = vld [vmem:[#allocation8 + $0xd78] sm:$0xff] }
 0x2f2   :  { %v1438_v13 = vld [vmem:[#allocation8 + $0x918] sm:$0xff] }
 0x2f3   :  { %4780 = vmatpush2.bf16.msra.mxu0 %v7561_v51  ;;  %v1442_v60 = vld [vmem:[#allocation8 + $0x938] sm:$0xff] }
 0x2f4   :  { %4821 = vmatpush2.bf16.msra.mxu1 %v7689_v17  ;;  %4781 = vmatprep.subr.bf16.mxu0 %v7554_v44  ;;  %v1566_v15 = vld [vmem:[#allocation8 + $0xd18] sm:$0xff]  ;;  %v7905_v17 = vcombine.low %v1574_v4, %v1578_v38  ;;  %v7770_v44 = vcombine.high %v1438_v13, %v1442_v60 }
 0x2f5   :  { %4822 = vmatprep.subr.bf16.mxu1 %v7682_v63  ;;  %v1570_v16 = vld [vmem:[#allocation8 + $0xd38] sm:$0xff] }
 0x2f6   :  { %v1430_v49 = vld [vmem:[#allocation8 + $0x8d8] sm:$0xff] }
 0x2f7   :  { %4782 = vmatpush2.bf16.msra.mxu0 %v7553_v24  ;;  %v1434_v52 = vld [vmem:[#allocation8 + $0x8f8] sm:$0xff]  ;;  %v7769_v24 = vcombine.low %v1438_v13, %v1442_v60 }
 0x2f8   :  { %4823 = vmatpush2.bf16.msra.mxu1 %v7681_v20  ;;  %4783 = vmatprep.subr.bf16.mxu0 %v7546_v21  ;;  %v1558_v18 = vld [vmem:[#allocation8 + $0xcd8] sm:$0xff]  ;;  %v7897_v20 = vcombine.low %v1566_v15, %v1570_v16  ;;  %v7762_v21 = vcombine.high %v1430_v49, %v1434_v52 }
 0x2f9   :  { %4824 = vmatprep.subr.bf16.mxu1 %v7674_v28  ;;  %v1562_v19 = vld [vmem:[#allocation8 + $0xcf8] sm:$0xff] }
 0x2fa   :  { %v7890_v28 = vcombine.high %v1558_v18, %v1562_v19  ;;  %v1422_v29 = vld [vmem:[#allocation8 + $0x898] sm:$0xff] }
 0x2fb   :  { %4784 = vmatpush2.bf16.msra.mxu0 %v7545_v33  ;;  %v1426_v30 = vld [vmem:[#allocation8 + $0x8b8] sm:$0xff]  ;;  %v7761_v33 = vcombine.low %v1430_v49, %v1434_v52 }
 0x2fc   :  { %4825 = vmatpush2.bf16.msra.mxu1 %v7673_v34  ;;  %4835 = vmatprep.subr.bf16.mxu0 %v7794_v35  ;;  %v1550_v31 = vld [vmem:[#allocation8 + $0xc98] sm:$0xff]  ;;  %v7889_v34 = vcombine.low %v1558_v18, %v1562_v19  ;;  %v7754_v35 = vcombine.high %v1422_v29, %v1426_v30  ;;  %v7753_v41 = vcombine.low %v1422_v29, %v1426_v30 }
 0x2fd   :  { %4876 = vmatprep.subr.bf16.mxu1 %v7922_v36  ;;  %v1554_v32 = vld [vmem:[#allocation8 + $0xcb8] sm:$0xff] }
 0x2fe   :  { %v4541_v2 = vpop.f32.mrf.mxu0  ;;  %4786 = vmatmul.mubr.bf16.vlgmr.msra.gmra.mxu0 %v9165_v62  ;;  %v7882_v36 = vcombine.high %v1550_v31, %v1554_v32  ;;  %v1414_v14 = vld [vmem:[#allocation8 + $0x858] sm:$0xff] }
 0x2ff   :  { %v4542_v5 = vadd.f32 %v4541_v2, %v9246_v7  ;;  %v4582_v57 = vpop.f32.mrf.mxu1  ;;  %4827 = vmatmul.mubr.bf16.vlgmr.msra.gmra.mxu1 %v9169_v1  ;;  %4836 = vmatpush1.bf16.msra.mxu0 %v7793_v39  ;;  %v7906_v7 = vcombine.high %v1574_v4, %v1578_v38  ;;  %v1418_v37 = vld [vmem:[#allocation8 + $0x878] sm:$0xff] }
 0x300   :  { %4867 = vmatprep.mubr.bf16.mxu0 %v9197_v48  ;;  %4877 = vmatpush1.bf16.msra.mxu1 %v7921_v45  ;;  %v9255_v9 = vpop.f32.mrf.mxu0  ;;  %v1542_v39 = vld [vmem:[#allocation8 + $0xc58] sm:$0xff]  ;;  %v7881_v45 = vcombine.low %v1550_v31, %v1554_v32  ;;  %v7745_v38 = vcombine.low %v1414_v14, %v1418_v37 }
 0x301   :  { %v9257_v12 = vadd.f32 %v4582_v57, %v4542_v5  ;;  %4908 = vmatprep.mubr.bf16.mxu1 %v9201_v59  ;;  %v9260_v62 = vpop.f32.mrf.mxu1  ;;  %4837 = vmatprep.subr.bf16.mxu0 %v7786_v46  ;;  %v7898_v59 = vcombine.high %v1566_v15, %v1570_v16  ;;  %v1546_v40 = vld [vmem:[#allocation8 + $0xc78] sm:$0xff]  ;;  %v7746_v46 = vcombine.high %v1414_v14, %v1418_v37 }
 0x302   :  { %v4545_v1 = vpop.f32.mrf.mxu0  ;;  %4878 = vmatprep.subr.bf16.mxu1 %v7914_v3  ;;  %v7874_v53 = vcombine.high %v1542_v39, %v1546_v40  ;;  %v1406_v56 = vld [vmem:[#allocation8 + $0x818] sm:$0xff]  ;;  %v7873_v5 = vcombine.low %v1542_v39, %v1546_v40 }
 0x303   :  { %v4586_v48 = vpop.f32.mrf.mxu1  ;;  %4838 = vmatpush1.bf16.msra.mxu0 %v7785_v6  ;;  %v1410_v2 = vld [vmem:[#allocation8 + $0x838] sm:$0xff] }
 0x304   :  { %4879 = vmatpush1.bf16.msra.mxu1 %v7913_v10  ;;  %v4546_v51 = vpop.f32.mrf.mxu0  ;;  %4839 = vmatprep.subr.bf16.mxu0 %v7778_v11  ;;  %v1534_v3 = vld [vmem:[#allocation8 + $0xc18] sm:$0xff]  ;;  %v7738_v57 = vcombine.high %v1406_v56, %v1410_v2  ;;  %v7737_v60 = vcombine.low %v1406_v56, %v1410_v2 }
 0x305   :  { %v4587_v63 = vpop.f32.mrf.mxu1  ;;  %4880 = vmatprep.subr.bf16.mxu1 %v7906_v7  ;;  %v1538_v4 = vld [vmem:[#allocation8 + $0xc38] sm:$0xff] }
 0x306   :  { %v7866_v6 = vcombine.high %v1534_v3, %v1538_v4  ;;  %v1526_v10 = vld [vmem:[#allocation8 + $0xbd8] sm:$0xff]  ;;  %v7865_v1 = vcombine.low %v1534_v3, %v1538_v4 }
 0x307   :  { %4840 = vmatpush1.bf16.msra.mxu0 %v7777_v61  ;;  %v1530_v11 = vld [vmem:[#allocation8 + $0xbf8] sm:$0xff] }
 0x308   :  { %4881 = vmatpush1.bf16.msra.mxu1 %v7905_v17  ;;  %4841 = vmatprep.subr.bf16.mxu0 %v7770_v44  ;;  %v1654_v7 = vld [vmem:[#allocation8 + $0xfd8] sm:$0xff]  ;;  %v7858_v15 = vcombine.high %v1526_v10, %v1530_v11  ;;  %v7857_v44 = vcombine.low %v1526_v10, %v1530_v11 }
 0x309   :  { %4882 = vmatprep.subr.bf16.mxu1 %v7898_v59  ;;  %v1658_v13 = vld [vmem:[#allocation8 + $0xff8] sm:$0xff] }
 0x30a   :  { %v7986_v16 = vcombine.high %v1654_v7, %v1658_v13  ;;  %v1518_v48 = vld [vmem:[#allocation8 + $0xb98] sm:$0xff]  ;;  %v7985_v63 = vcombine.low %v1654_v7, %v1658_v13 }
 0x30b   :  { %4842 = vmatpush1.bf16.msra.mxu0 %v7769_v24  ;;  %v1522_v61 = vld [vmem:[#allocation8 + $0xbb8] sm:$0xff] }
 0x30c   :  { %4883 = vmatpush1.bf16.msra.mxu1 %v7897_v20  ;;  %4843 = vmatprep.subr.bf16.mxu0 %v7762_v21  ;;  %v1646_v51 = vld [vmem:[#allocation8 + $0xf98] sm:$0xff]  ;;  %v7850_v59 = vcombine.high %v1518_v48, %v1522_v61  ;;  %v7849_v20 = vcombine.low %v1518_v48, %v1522_v61 }
 0x30d   :  { %4884 = vmatprep.subr.bf16.mxu1 %v7890_v28  ;;  %v1650_v17 = vld [vmem:[#allocation8 + $0xfb8] sm:$0xff] }
 0x30e   :  { %v7978_v49 = vcombine.high %v1646_v51, %v1650_v17  ;;  %v1510_v52 = vld [vmem:[#allocation8 + $0xb58] sm:$0xff]  ;;  %v7977_v21 = vcombine.low %v1646_v51, %v1650_v17 }
 0x30f   :  { %4844 = vmatpush1.bf16.msra.mxu0 %v7761_v33  ;;  %v1514_v18 = vld [vmem:[#allocation8 + $0xb78] sm:$0xff] }
 0x310   :  { %4885 = vmatpush1.bf16.msra.mxu1 %v7889_v34  ;;  %4845 = vmatprep.subr.bf16.mxu0 %v7754_v35  ;;  %v1638_v19 = vld [vmem:[#allocation8 + $0xf58] sm:$0xff]  ;;  %v7842_v28 = vcombine.high %v1510_v52, %v1514_v18  ;;  %v7841_v34 = vcombine.low %v1510_v52, %v1514_v18  ;;  %v4918_v18 = vmul.f32 0.2, %v9237_v8 }
 0x311   :  { %4886 = vmatprep.subr.bf16.mxu1 %v7882_v36  ;;  %v1642_v24 = vld [vmem:[#allocation8 + $0xf78] sm:$0xff] }
 0x312   :  { %v7970_v29 = vcombine.high %v1638_v19, %v1642_v24  ;;  %v1502_v30 = vld [vmem:[#allocation8 + $0xb18] sm:$0xff]  ;;  %v7969_v35 = vcombine.low %v1638_v19, %v1642_v24 }
 0x313   :  { %4846 = vmatpush1.bf16.msra.mxu0 %v7753_v41  ;;  %v1506_v31 = vld [vmem:[#allocation8 + $0xb38] sm:$0xff] }
 0x314   :  { %4887 = vmatpush1.bf16.msra.mxu1 %v7881_v45  ;;  %4847 = vmatprep.subr.bf16.mxu0 %v7746_v46  ;;  %v1630_v32 = vld [vmem:[#allocation8 + $0xf18] sm:$0xff]  ;;  %v7834_v36 = vcombine.high %v1502_v30, %v1506_v31  ;;  %v7833_v45 = vcombine.low %v1502_v30, %v1506_v31  ;;  %v9267_v30 = vld [vmem:[#allocation10] sm:$0xff] }
 0x315   :  { %4888 = vmatprep.subr.bf16.mxu1 %v7874_v53  ;;  %v1634_v33 = vld [vmem:[#allocation8 + $0xf38] sm:$0xff]  ;;  %v1680_v31 = vrot.slane %v9267_v30, %v297_v42 }
 0x316   :  { %v7962_v14 = vcombine.high %v1630_v32, %v1634_v33  ;;  %v1494_v37 = vld [vmem:[#allocation8 + $0xad8] sm:$0xff]  ;;  %v7961_v46 = vcombine.low %v1630_v32, %v1634_v33 }
 0x317   :  { %4848 = vmatpush1.bf16.msra.mxu0 %v7745_v38  ;;  %v1498_v39 = vld [vmem:[#allocation8 + $0xaf8] sm:$0xff] }
 0x318   :  { %4889 = vmatpush1.bf16.msra.mxu1 %v7873_v5  ;;  %4849 = vmatprep.subr.bf16.mxu0 %v7738_v57  ;;  %v1622_v40 = vld [vmem:[#allocation8 + $0xed8] sm:$0xff]  ;;  %v7826_v53 = vcombine.high %v1494_v37, %v1498_v39  ;;  %v7825_v5 = vcombine.low %v1494_v37, %v1498_v39 }
 0x319   :  { %4890 = vmatprep.subr.bf16.mxu1 %v7866_v6  ;;  %v1626_v41 = vld [vmem:[#allocation8 + $0xef8] sm:$0xff] }
 0x31a   :  { %v7954_v56 = vcombine.high %v1622_v40, %v1626_v41  ;;  %v1486_v2 = vld [vmem:[#allocation8 + $0xa98] sm:$0xff]  ;;  %v7953_v57 = vcombine.low %v1622_v40, %v1626_v41 }
 0x31b   :  { %4850 = vmatpush1.bf16.msra.mxu0 %v7737_v60  ;;  %v1490_v3 = vld [vmem:[#allocation8 + $0xab8] sm:$0xff] }
 0x31c   :  { %4891 = vmatpush1.bf16.msra.mxu1 %v7865_v1  ;;  %4851 = vmatprep.subr.bf16.mxu0 %v7858_v15  ;;  %v1614_v4 = vld [vmem:[#allocation8 + $0xe98] sm:$0xff]  ;;  %v7818_v6 = vcombine.high %v1486_v2, %v1490_v3  ;;  %v4544_v1 = vadd.f32 %v9255_v9, %v9249_v43  ;;  %v7817_v15 = vcombine.low %v1486_v2, %v1490_v3 }
 0x31d   :  { %4892 = vmatprep.subr.bf16.mxu1 %v7986_v16  ;;  %v1618_v38 = vld [vmem:[#allocation8 + $0xeb8] sm:$0xff] }
 0x31e   :  { %v7946_v10 = vcombine.high %v1614_v4, %v1618_v38  ;;  %v1478_v11 = vld [vmem:[#allocation8 + $0xa58] sm:$0xff]  ;;  %v7945_v16 = vcombine.low %v1614_v4, %v1618_v38 }
 0x31f   :  { %4852 = vmatpush2.bf16.msra.mxu0 %v7857_v44  ;;  %v1482_v7 = vld [vmem:[#allocation8 + $0xa78] sm:$0xff] }
 0x320   :  { %4893 = vmatpush2.bf16.msra.mxu1 %v7985_v63  ;;  %4853 = vmatprep.subr.bf16.mxu0 %v7850_v59  ;;  %v1606_v13 = vld [vmem:[#allocation8 + $0xe58] sm:$0xff]  ;;  %v7810_v48 = vcombine.high %v1478_v11, %v1482_v7  ;;  %v4585_v59 = vadd.f32 %v9260_v62, %v4544_v1  ;;  %v4926_v62 = vmax.f32 %v9237_v8, %v4918_v18 }
 0x321   :  { %4894 = vmatprep.subr.bf16.mxu1 %v7978_v49  ;;  %v1610_v60 = vld [vmem:[#allocation8 + $0xe78] sm:$0xff]  ;;  %v7809_v49 = vcombine.low %v1478_v11, %v1482_v7 }
 0x322   :  { %v7938_v61 = vcombine.high %v1606_v13, %v1610_v60  ;;  %v1470_v51 = vld [vmem:[#allocation8 + $0xa18] sm:$0xff]  ;;  %v7937_v52 = vcombine.low %v1606_v13, %v1610_v60  ;;  %v4920_v19 = vmul.f32 0.2, %v4585_v59 }
 0x323   :  { %4854 = vmatpush2.bf16.msra.mxu0 %v7849_v20  ;;  %v1474_v17 = vld [vmem:[#allocation8 + $0xa38] sm:$0xff] }
 0x324   :  { %4895 = vmatpush2.bf16.msra.mxu1 %v7977_v21  ;;  %4855 = vmatprep.subr.bf16.mxu0 %v7842_v28  ;;  %v1598_v44 = vld [vmem:[#allocation8 + $0xe18] sm:$0xff]  ;;  %v7802_v43 = vcombine.high %v1470_v51, %v1474_v17  ;;  %v7801_v24 = vcombine.low %v1470_v51, %v1474_v17 }
 0x325   :  { %4896 = vmatprep.subr.bf16.mxu1 %v7970_v29  ;;  %v1602_v63 = vld [vmem:[#allocation8 + $0xe38] sm:$0xff]  ;;  %v4928_v29 = vmax.f32 %v4585_v59, %v4920_v19 }
 0x326   :  { %v7930_v9 = vcombine.high %v1598_v44, %v1602_v63  ;;  %v7929_v20 = vcombine.low %v1598_v44, %v1602_v63  ;;  %v8325_v21 = vld [vmem:[#allocation11 + $0xe4] ss:$16 sps:$4 sm:$0xff]   ;;  %v8323_v32 = vld [vmem:[#allocation11 + $0xe0] ss:$16 sps:$4 sm:$0xff]  }
 0x327   :  { %4856 = vmatpush2.bf16.msra.mxu0 %v7841_v34  ;;  %v8328_v28 = vld [vmem:[#allocation11 + $0x2e4] ss:$16 sps:$4 sm:$0xff]   ;;  %v8326_v33 = vld [vmem:[#allocation11 + $0x2e0] ss:$16 sps:$4 sm:$0xff]  }
 0x328   :  { %4897 = vmatpush2.bf16.msra.mxu1 %v7969_v35  ;;  %4857 = vmatprep.subr.bf16.mxu0 %v7834_v36  ;;  %v8331_v34 = vld [vmem:[#allocation11 + $0xc4] ss:$16 sps:$4 sm:$0xff]   ;;  %v9272_v35 = vpack.c.bf16 %v4926_v62, %v4926_v62  ;;  %v8329_v42 = vld [vmem:[#allocation11 + $0xc0] ss:$16 sps:$4 sm:$0xff]  }
 0x329   :  { %4898 = vmatprep.subr.bf16.mxu1 %v7962_v14  ;;  %v8334_v8 = vld [vmem:[#allocation11 + $0x2c4] ss:$16 sps:$4 sm:$0xff]   ;;  %v9275_v14 = vpack.c.bf16 %v4928_v29, %v4928_v29  ;;  %v8332_v41 = vld [vmem:[#allocation11 + $0x2c0] ss:$16 sps:$4 sm:$0xff]  }
 0x32a   :  { %v8335_v2 = vld [vmem:[#allocation11 + $0xa0] ss:$16 sps:$4 sm:$0xff]   ;;  %v8343_v38 = vld [vmem:[#allocation11 + $0x84] ss:$16 sps:$4 sm:$0xff]  }
 0x32b   :  { %4858 = vmatpush2.bf16.msra.mxu0 %v7833_v45  ;;  %v8337_v45 = vld [vmem:[#allocation11 + $0xa4] ss:$16 sps:$4 sm:$0xff]   ;;  %v8338_v4 = vld [vmem:[#allocation11 + $0x2a0] ss:$16 sps:$4 sm:$0xff]  }
 0x32c   :  { %4899 = vmatpush2.bf16.msra.mxu1 %v7961_v46  ;;  %4859 = vmatprep.subr.bf16.mxu0 %v7826_v53  ;;  %v8340_v53 = vld [vmem:[#allocation11 + $0x2a4] ss:$16 sps:$4 sm:$0xff]   ;;  %v8347_v13 = vld [vmem:[#allocation11 + $0x60] ss:$16 sps:$4 sm:$0xff]  }
 0x32d   :  { %4900 = vmatprep.subr.bf16.mxu1 %v7954_v56  ;;  %v8349_v11 = vld [vmem:[#allocation11 + $0x64] ss:$16 sps:$4 sm:$0xff]   ;;  %v8350_v60 = vld [vmem:[#allocation11 + $0x260] ss:$16 sps:$4 sm:$0xff]  }
 0x32e   :  { %v8352_v7 = vld [vmem:[#allocation11 + $0x264] ss:$16 sps:$4 sm:$0xff]   ;;  %v8359_v17 = vld [vmem:[#allocation11 + $0x20] ss:$16 sps:$4 sm:$0xff]  }
 0x32f   :  { %4860 = vmatpush2.bf16.msra.mxu0 %v7825_v5  ;;  %v8355_v1 = vld [vmem:[#allocation11 + $0x44] ss:$16 sps:$4 sm:$0xff]   ;;  %v8362_v44 = vld [vmem:[#allocation11 + $0x220] ss:$16 sps:$4 sm:$0xff]  }
 0x330   :  { %4901 = vmatpush2.bf16.msra.mxu1 %v7953_v57  ;;  %4861 = vmatprep.subr.bf16.mxu0 %v7818_v6  ;;  %v8346_v57 = vld [vmem:[#allocation11 + $0x284] ss:$16 sps:$4 sm:$0xff]   ;;  %v8341_v6 = vld [vmem:[#allocation11 + $0x80] ss:$16 sps:$4 sm:$0xff]  }
 0x331   :  { %4902 = vmatprep.subr.bf16.mxu1 %v7946_v10  ;;  %v8344_v10 = vld [vmem:[#allocation11 + $0x280] ss:$16 sps:$4 sm:$0xff]   ;;  %v8364_v51 = vld [vmem:[#allocation11 + $0x224] ss:$16 sps:$4 sm:$0xff]  }
 0x332   :  { %v8367_v63 = vld [vmem:[#allocation11 + $0x4] ss:$16 sps:$4 sm:$0xff]   ;;  %v8371_v18 = vld [vmem:[#allocation11 + $0x1e0] ss:$16 sps:$4 sm:$0xff]  }
 0x333   :  { %4862 = vmatpush2.bf16.msra.mxu0 %v7817_v15  ;;  %v8358_v15 = vld [vmem:[#allocation11 + $0x244] ss:$16 sps:$4 sm:$0xff]   ;;  %v8374_v19 = vld [vmem:[#allocation11 + $0x3e0] ss:$16 sps:$4 sm:$0xff]  }
 0x334   :  { %4903 = vmatpush2.bf16.msra.mxu1 %v7945_v16  ;;  %4863 = vmatprep.subr.bf16.mxu0 %v7810_v48  ;;  %v8353_v16 = vld [vmem:[#allocation11 + $0x40] ss:$16 sps:$4 sm:$0xff]   ;;  %v8370_v59 = vld [vmem:[#allocation11 + $0x204] ss:$16 sps:$4 sm:$0xff]  }
 0x335   :  { %4904 = vmatprep.subr.bf16.mxu1 %v7938_v61  ;;  %v8356_v48 = vld [vmem:[#allocation11 + $0x240] ss:$16 sps:$4 sm:$0xff]   ;;  %v8361_v61 = vld [vmem:[#allocation11 + $0x24] ss:$16 sps:$4 sm:$0xff]  }
 0x336   :  { %v8385_v62 = vld [vmem:[#allocation11 + $0x1a4] ss:$16 sps:$4 sm:$0xff]  }
 0x337   :  { %4864 = vmatpush2.bf16.msra.mxu0 %v7809_v49  ;;  %v8365_v49 = vld [vmem:[#allocation11] ss:$16 sps:$4 sm:$0xff]   ;;  %v8388_v29 = vld [vmem:[#allocation11 + $0x3a4] ss:$16 sps:$4 sm:$0xff]  }
 0x338   :  { %4905 = vmatpush2.bf16.msra.mxu1 %v7937_v52  ;;  %4865 = vmatprep.subr.bf16.mxu0 %v7802_v43  ;;  %v8368_v52 = vld [vmem:[#allocation11 + $0x200] ss:$16 sps:$4 sm:$0xff]   ;;  %v8373_v43 = vld [vmem:[#allocation11 + $0x1e4] ss:$16 sps:$4 sm:$0xff]  }
 0x339   :  { %4906 = vmatprep.subr.bf16.mxu1 %v7930_v9  ;;  %v8376_v9 = vld [vmem:[#allocation11 + $0x3e4] ss:$16 sps:$4 sm:$0xff]  }
 0x33b   :  { %4866 = vmatpush2.bf16.msra.mxu0 %v7801_v24  ;;  %v8379_v24 = vld [vmem:[#allocation11 + $0x1c4] ss:$16 sps:$4 sm:$0xff]  }
 0x33c   :  { %4907 = vmatpush2.bf16.msra.mxu1 %v7929_v20  ;;  %6499 = vmatprep.subr.bf16.mxu0 %v8325_v21  ;;  %v8382_v20 = vld [vmem:[#allocation11 + $0x3c4] ss:$16 sps:$4 sm:$0xff]   ;;  %v8377_v21 = vld [vmem:[#allocation11 + $0x1c0] ss:$16 sps:$4 sm:$0xff]  }
 0x33d   :  { %6540 = vmatprep.subr.bf16.mxu1 %v8328_v28  ;;  %v8380_v28 = vld [vmem:[#allocation11 + $0x3c0] ss:$16 sps:$4 sm:$0xff]  }
 0x33e   :  { %v4623_v36 = vpop.f32.mrf.mxu0  ;;  %4868 = vmatmul.mubr.bf16.vlgmr.msra.gmra.mxu0 %v9199_v58 }
 0x33f   :  { %v4624_v37 = vadd.f32 %v4623_v36, %v1680_v31  ;;  %v4664_v39 = vpop.f32.mrf.mxu1  ;;  %4909 = vmatmul.mubr.bf16.vlgmr.msra.gmra.mxu1 %v9203_v0  ;;  %6500 = vmatpush1.bf16.msra.mxu0 %v8323_v32  ;;  %v8383_v31 = vld [vmem:[#allocation11 + $0x1a0] ss:$16 sps:$4 sm:$0xff]  }
 0x340   :  { %6531 = vmatprep.mubr.bf16.mxu0 %v9272_v35  ;;  %6541 = vmatpush1.bf16.msra.mxu1 %v8326_v33  ;;  %v9279_v40 = vpop.f32.mrf.mxu0  ;;  %v8386_v32 = vld [vmem:[#allocation11 + $0x3a0] ss:$16 sps:$4 sm:$0xff]   ;;  %v8391_v33 = vld [vmem:[#allocation11 + $0x184] ss:$16 sps:$4 sm:$0xff]  }
 0x341   :  { %v9281_v46 = vadd.f32 %v4664_v39, %v4624_v37  ;;  %6572 = vmatprep.mubr.bf16.mxu1 %v9275_v14  ;;  %v9284_v58 = vpop.f32.mrf.mxu1  ;;  %6501 = vmatprep.subr.bf16.mxu0 %v8331_v34  ;;  %v8394_v34 = vld [vmem:[#allocation11 + $0x384] ss:$16 sps:$4 sm:$0xff]   ;;  %v8389_v36 = vld [vmem:[#allocation11 + $0x180] ss:$16 sps:$4 sm:$0xff]  }
 0x342   :  { %v4627_v56 = vpop.f32.mrf.mxu0  ;;  %6542 = vmatprep.subr.bf16.mxu1 %v8334_v8  ;;  %v8392_v8 = vld [vmem:[#allocation11 + $0x380] ss:$16 sps:$4 sm:$0xff]   ;;  %v8397_v37 = vld [vmem:[#allocation11 + $0x164] ss:$16 sps:$4 sm:$0xff]  }
 0x343   :  { %v4668_v0 = vpop.f32.mrf.mxu1  ;;  %6502 = vmatpush1.bf16.msra.mxu0 %v8329_v42  ;;  %v8400_v39 = vld [vmem:[#allocation11 + $0x364] ss:$16 sps:$4 sm:$0xff]   ;;  %v8395_v42 = vld [vmem:[#allocation11 + $0x160] ss:$16 sps:$4 sm:$0xff]  }
 0x344   :  { %6543 = vmatpush1.bf16.msra.mxu1 %v8332_v41  ;;  %v4628_v3 = vpop.f32.mrf.mxu0  ;;  %6503 = vmatprep.subr.bf16.mxu0 %v8337_v45  ;;  %v8398_v41 = vld [vmem:[#allocation11 + $0x360] ss:$16 sps:$4 sm:$0xff]   ;;  %v8403_v45 = vld [vmem:[#allocation11 + $0x144] ss:$16 sps:$4 sm:$0xff]  }
 0x345   :  { %v4669_v5 = vpop.f32.mrf.mxu1  ;;  %6544 = vmatprep.subr.bf16.mxu1 %v8340_v53  ;;  %v8406_v53 = vld [vmem:[#allocation11 + $0x344] ss:$16 sps:$4 sm:$0xff]   ;;  %v8401_v56 = vld [vmem:[#allocation11 + $0x140] ss:$16 sps:$4 sm:$0xff]  }
 0x346   :  { %v8404_v0 = vld [vmem:[#allocation11 + $0x340] ss:$16 sps:$4 sm:$0xff]   ;;  %v8412_v3 = vld [vmem:[#allocation11 + $0x324] ss:$16 sps:$4 sm:$0xff]  }
 0x347   :  { %6504 = vmatpush1.bf16.msra.mxu0 %v8335_v2  ;;  %v8409_v2 = vld [vmem:[#allocation11 + $0x124] ss:$16 sps:$4 sm:$0xff]   ;;  %v8410_v5 = vld [vmem:[#allocation11 + $0x320] ss:$16 sps:$4 sm:$0xff]  }
 0x348   :  { %6545 = vmatpush1.bf16.msra.mxu1 %v8338_v4  ;;  %6505 = vmatprep.subr.bf16.mxu0 %v8343_v38  ;;  %v8407_v4 = vld [vmem:[#allocation11 + $0x120] ss:$16 sps:$4 sm:$0xff]   ;;  %v4917_v38 = vmul.f32 0.2, %v9233_v54 }
 0x349   :  { %6546 = vmatprep.subr.bf16.mxu1 %v8346_v57  ;;  %v8415_v57 = vld [vmem:[#allocation11 + $0x104] ss:$16 sps:$4 sm:$0xff]  }
 0x34b   :  { %6506 = vmatpush1.bf16.msra.mxu0 %v8341_v6  ;;  %v4919_v6 = vmul.f32 0.2, %v9257_v12 }
 0x34c   :  { %6547 = vmatpush1.bf16.msra.mxu1 %v8344_v10  ;;  %6507 = vmatprep.subr.bf16.mxu0 %v8349_v11  ;;  %v8418_v10 = vld [vmem:[#allocation11 + $0x304] ss:$16 sps:$4 sm:$0xff]   ;;  %v1684_v11 = vrot.slane %v9267_v30, %v301_v50 }
 0x34d   :  { %6548 = vmatprep.subr.bf16.mxu1 %v8352_v7  ;;  %v8413_v7 = vld [vmem:[#allocation11 + $0x100] ss:$16 sps:$4 sm:$0xff]   ;;  %v8424_v50 = vld [vmem:[#allocation11 + $0x4c4] ss:$16 sps:$4 sm:$0xff]  }
 0x34f   :  { %6508 = vmatpush1.bf16.msra.mxu0 %v8347_v13  ;;  %v4925_v13 = vmax.f32 %v9233_v54, %v4917_v38  ;;  %v8487_v54 = vld [vmem:[#allocation11 + $0x6c4] ss:$16 sps:$4 sm:$0xff]   ;;  %v8437_v38 = vld [vmem:[#allocation11 + $0x420] ss:$16 sps:$4 sm:$0xff]  }
 0x350   :  { %6549 = vmatpush1.bf16.msra.mxu1 %v8350_v60  ;;  %6509 = vmatprep.subr.bf16.mxu0 %v8355_v1  ;;  %v8416_v60 = vld [vmem:[#allocation11 + $0x300] ss:$16 sps:$4 sm:$0xff]   ;;  %v8421_v1 = vld [vmem:[#allocation11 + $0x4e4] ss:$16 sps:$4 sm:$0xff]  }
 0x351   :  { %6550 = vmatprep.subr.bf16.mxu1 %v8358_v15  ;;  %v4927_v15 = vmax.f32 %v9257_v12, %v4919_v6  ;;  %v8523_v6 = vld [vmem:[#allocation11 + $0x604] ss:$16 sps:$4 sm:$0xff]  }
 0x353   :  { %6510 = vmatpush1.bf16.msra.mxu0 %v8353_v16  ;;  %v8481_v16 = vld [vmem:[#allocation11 + $0x6e4] ss:$16 sps:$4 sm:$0xff]  }
 0x354   :  { %6551 = vmatpush1.bf16.msra.mxu1 %v8356_v48  ;;  %6511 = vmatprep.subr.bf16.mxu0 %v8361_v61  ;;  %v4626_v48 = vadd.f32 %v9279_v40, %v1684_v11  ;;  %v8419_v61 = vld [vmem:[#allocation11 + $0x4e0] ss:$16 sps:$4 sm:$0xff]   ;;  %v8445_v11 = vld [vmem:[#allocation11 + $0x5e4] ss:$16 sps:$4 sm:$0xff]  }
 0x355   :  { %6552 = vmatprep.subr.bf16.mxu1 %v8364_v51  ;;  %v9294_v51 = vpack.c.bf16 %v4925_v13, %v4925_v13  ;;  %v8422_v40 = vld [vmem:[#allocation11 + $0x4c0] ss:$16 sps:$4 sm:$0xff]   ;;  %v8529_v13 = vld [vmem:[#allocation11 + $0x7e4] ss:$16 sps:$4 sm:$0xff]  }
 0x356   :  { %v4667_v12 = vadd.f32 %v9284_v58, %v4626_v48  ;;  %v8425_v58 = vld [vmem:[#allocation11 + $0x4a0] ss:$16 sps:$4 sm:$0xff]  }
 0x357   :  { %6512 = vmatpush1.bf16.msra.mxu0 %v8359_v17  ;;  %v8479_v17 = vld [vmem:[#allocation11 + $0x6e0] ss:$16 sps:$4 sm:$0xff]  }
 0x358   :  { %6553 = vmatpush1.bf16.msra.mxu1 %v8362_v44  ;;  %6513 = vmatprep.subr.bf16.mxu0 %v8367_v63  ;;  %v9296_v44 = vpack.c.bf16 %v4927_v15, %v4927_v15  ;;  %v8527_v15 = vld [vmem:[#allocation11 + $0x7e0] ss:$16 sps:$4 sm:$0xff]  }
 0x359   :  { %6554 = vmatprep.subr.bf16.mxu1 %v8370_v59  ;;  %v8446_v48 = vld [vmem:[#allocation11 + $0x5c0] ss:$16 sps:$4 sm:$0xff]  }
 0x35b   :  { %6514 = vmatpush1.bf16.msra.mxu0 %v8365_v49 }
 0x35c   :  { %6555 = vmatpush1.bf16.msra.mxu1 %v8368_v52  ;;  %6515 = vmatprep.subr.bf16.mxu0 %v8373_v43  ;;  %v8427_v52 = vld [vmem:[#allocation11 + $0x4a4] ss:$16 sps:$4 sm:$0xff]   ;;  %v8485_v43 = vld [vmem:[#allocation11 + $0x6c0] ss:$16 sps:$4 sm:$0xff]  }
 0x35d   :  { %6556 = vmatprep.subr.bf16.mxu1 %v8376_v9 }
 0x35f   :  { %6516 = vmatpush2.bf16.msra.mxu0 %v8371_v18 }
 0x360   :  { %6557 = vmatpush2.bf16.msra.mxu1 %v8374_v19  ;;  %6517 = vmatprep.subr.bf16.mxu0 %v8379_v24  ;;  %v8493_v19 = vld [vmem:[#allocation11 + $0x6a4] ss:$16 sps:$4 sm:$0xff]  }
 0x361   :  { %6558 = vmatprep.subr.bf16.mxu1 %v8382_v20 }
 0x363   :  { %6518 = vmatpush2.bf16.msra.mxu0 %v8377_v21 }
 0x364   :  { %6559 = vmatpush2.bf16.msra.mxu1 %v8380_v28  ;;  %6519 = vmatprep.subr.bf16.mxu0 %v8385_v62  ;;  %v8430_v62 = vld [vmem:[#allocation11 + $0x484] ss:$16 sps:$4 sm:$0xff]  }
 0x365   :  { %6560 = vmatprep.subr.bf16.mxu1 %v8388_v29  ;;  %v8491_v29 = vld [vmem:[#allocation11 + $0x6a0] ss:$16 sps:$4 sm:$0xff]  }
 0x367   :  { %6520 = vmatpush2.bf16.msra.mxu0 %v8383_v31 }
 0x368   :  { %6561 = vmatpush2.bf16.msra.mxu1 %v8386_v32  ;;  %6521 = vmatprep.subr.bf16.mxu0 %v8391_v33  ;;  %v8499_v33 = vld [vmem:[#allocation11 + $0x684] ss:$16 sps:$4 sm:$0xff]  }
 0x369   :  { %6562 = vmatprep.subr.bf16.mxu1 %v8394_v34 }
 0x36b   :  { %6522 = vmatpush2.bf16.msra.mxu0 %v8389_v36  ;;  %v8428_v36 = vld [vmem:[#allocation11 + $0x480] ss:$16 sps:$4 sm:$0xff]  }
 0x36c   :  { %6563 = vmatpush2.bf16.msra.mxu1 %v8392_v8  ;;  %6523 = vmatprep.subr.bf16.mxu0 %v8397_v37  ;;  %v8433_v8 = vld [vmem:[#allocation11 + $0x464] ss:$16 sps:$4 sm:$0xff]   ;;  %v8497_v37 = vld [vmem:[#allocation11 + $0x680] ss:$16 sps:$4 sm:$0xff]  }
 0x36d   :  { %6564 = vmatprep.subr.bf16.mxu1 %v8400_v39 }
 0x36f   :  { %6524 = vmatpush2.bf16.msra.mxu0 %v8395_v42  ;;  %v8505_v42 = vld [vmem:[#allocation11 + $0x664] ss:$16 sps:$4 sm:$0xff]  }
 0x370   :  { %6565 = vmatpush2.bf16.msra.mxu1 %v8398_v41  ;;  %6525 = vmatprep.subr.bf16.mxu0 %v8403_v45  ;;  %v8431_v41 = vld [vmem:[#allocation11 + $0x460] ss:$16 sps:$4 sm:$0xff]   ;;  %v8436_v45 = vld [vmem:[#allocation11 + $0x444] ss:$16 sps:$4 sm:$0xff]  }
 0x371   :  { %6566 = vmatprep.subr.bf16.mxu1 %v8406_v53  ;;  %v8503_v53 = vld [vmem:[#allocation11 + $0x660] ss:$16 sps:$4 sm:$0xff]  }
 0x373   :  { %6526 = vmatpush2.bf16.msra.mxu0 %v8401_v56  ;;  %v8511_v56 = vld [vmem:[#allocation11 + $0x644] ss:$16 sps:$4 sm:$0xff]  }
 0x374   :  { %6567 = vmatpush2.bf16.msra.mxu1 %v8404_v0  ;;  %6527 = vmatprep.subr.bf16.mxu0 %v8409_v2  ;;  %v8434_v0 = vld [vmem:[#allocation11 + $0x440] ss:$16 sps:$4 sm:$0xff]   ;;  %v8439_v2 = vld [vmem:[#allocation11 + $0x424] ss:$16 sps:$4 sm:$0xff]  }
 0x375   :  { %6568 = vmatprep.subr.bf16.mxu1 %v8412_v3  ;;  %v8509_v3 = vld [vmem:[#allocation11 + $0x640] ss:$16 sps:$4 sm:$0xff]  }
 0x377   :  { %6528 = vmatpush2.bf16.msra.mxu0 %v8407_v4  ;;  %v8517_v4 = vld [vmem:[#allocation11 + $0x624] ss:$16 sps:$4 sm:$0xff]  }
 0x378   :  { %6569 = vmatpush2.bf16.msra.mxu1 %v8410_v5  ;;  %6529 = vmatprep.subr.bf16.mxu0 %v8415_v57  ;;  %v8442_v5 = vld [vmem:[#allocation11 + $0x404] ss:$16 sps:$4 sm:$0xff]   ;;  %v8515_v57 = vld [vmem:[#allocation11 + $0x620] ss:$16 sps:$4 sm:$0xff]  }
 0x379   :  { %6570 = vmatprep.subr.bf16.mxu1 %v8418_v10  ;;  %v8440_v10 = vld [vmem:[#allocation11 + $0x400] ss:$16 sps:$4 sm:$0xff]  }
 0x37b   :  { %6530 = vmatpush2.bf16.msra.mxu0 %v8413_v7  ;;  %v8521_v7 = vld [vmem:[#allocation11 + $0x600] ss:$16 sps:$4 sm:$0xff]  }
 0x37c   :  { %6571 = vmatpush2.bf16.msra.mxu1 %v8416_v60  ;;  %6581 = vmatprep.subr.bf16.mxu0 %v8421_v1  ;;  %v8443_v60 = vld [vmem:[#allocation11 + $0x5e0] ss:$16 sps:$4 sm:$0xff]   ;;  %v8448_v1 = vld [vmem:[#allocation11 + $0x5c4] ss:$16 sps:$4 sm:$0xff]  }
 0x37d   :  { %6622 = vmatprep.subr.bf16.mxu1 %v8481_v16  ;;  %v8535_v16 = vld [vmem:[#allocation11 + $0x7c4] ss:$16 sps:$4 sm:$0xff]  }
 0x37e   :  { %v9298_v63 = vpop.f32.mrf.mxu0  ;;  %6532 = vmatmul.mubr.bf16.vlgmr.msra.gmra.mxu0 %v9294_v51 }
 0x37f   :  { %v9302_v59 = vpop.f32.mrf.mxu1  ;;  %6573 = vmatmul.mubr.bf16.vlgmr.msra.gmra.mxu1 %v9296_v44  ;;  %6582 = vmatpush1.bf16.msra.mxu0 %v8419_v61  ;;  %v8451_v61 = vld [vmem:[#allocation11 + $0x5a4] ss:$16 sps:$4 sm:$0xff]  }
 0x380   :  { %v4707_v49 = vpop.f32.mrf.mxu0  ;;  %6583 = vmatprep.subr.bf16.mxu0 %v8424_v50  ;;  %6623 = vmatpush1.bf16.msra.mxu1 %v8479_v17  ;;  %v8533_v50 = vld [vmem:[#allocation11 + $0x7c0] ss:$16 sps:$4 sm:$0xff]   ;;  %v8541_v17 = vld [vmem:[#allocation11 + $0x7a4] ss:$16 sps:$4 sm:$0xff]  }
 0x381   :  { %v4708_v9 = vadd.f32 %v4707_v49, %v4667_v12  ;;  %v4748_v18 = vpop.f32.mrf.mxu1  ;;  %6624 = vmatprep.subr.bf16.mxu1 %v8487_v54  ;;  %v8449_v54 = vld [vmem:[#allocation11 + $0x5a0] ss:$16 sps:$4 sm:$0xff]   ;;  %v8454_v12 = vld [vmem:[#allocation11 + $0x584] ss:$16 sps:$4 sm:$0xff]  }
 0x382   :  { %v4709_v24 = vpop.f32.mrf.mxu0  ;;  %v8547_v49 = vld [vmem:[#allocation11 + $0x784] ss:$16 sps:$4 sm:$0xff]  }
 0x383   :  { %v4749_v20 = vadd.f32 %v4748_v18, %v4708_v9  ;;  %v4750_v21 = vpop.f32.mrf.mxu1  ;;  %6584 = vmatpush1.bf16.msra.mxu0 %v8422_v40  ;;  %v8539_v40 = vld [vmem:[#allocation11 + $0x7a0] ss:$16 sps:$4 sm:$0xff]   ;;  %v8553_v18 = vld [vmem:[#allocation11 + $0x764] ss:$16 sps:$4 sm:$0xff]   ;;  %v4706_v24 = vadd.f32 %v9298_v63, %v9281_v46 }
 0x384   :  { %v4710_v28 = vpop.f32.mrf.mxu0  ;;  %6585 = vmatprep.subr.bf16.mxu0 %v8427_v52  ;;  %6625 = vmatpush1.bf16.msra.mxu1 %v8485_v43  ;;  %v8452_v52 = vld [vmem:[#allocation11 + $0x580] ss:$16 sps:$4 sm:$0xff]   ;;  %v8457_v43 = vld [vmem:[#allocation11 + $0x564] ss:$16 sps:$4 sm:$0xff]  }
 0x385   :  { %v4922_v31 = vmul.f32 0.2, %v4749_v20  ;;  %v4751_v32 = vpop.f32.mrf.mxu1  ;;  %6626 = vmatprep.subr.bf16.mxu1 %v8493_v19  ;;  %v8545_v9 = vld [vmem:[#allocation11 + $0x780] ss:$16 sps:$4 sm:$0xff]   ;;  %v8466_v46 = vld [vmem:[#allocation11 + $0x504] ss:$16 sps:$4 sm:$0xff]  }
 0x386   :  { %v8455_v19 = vld [vmem:[#allocation11 + $0x560] ss:$16 sps:$4 sm:$0xff]   ;;  %v8565_v32 = vld [vmem:[#allocation11 + $0x724] ss:$16 sps:$4 sm:$0xff]  }
 0x387   :  { %v4930_v34 = vmax.f32 %v4749_v20, %v4922_v31  ;;  %6586 = vmatpush1.bf16.msra.mxu0 %v8425_v58  ;;  %v8460_v20 = vld [vmem:[#allocation11 + $0x544] ss:$16 sps:$4 sm:$0xff]   ;;  %v8551_v21 = vld [vmem:[#allocation11 + $0x760] ss:$16 sps:$4 sm:$0xff]  }
 0x388   :  { %6587 = vmatprep.subr.bf16.mxu0 %v8430_v62  ;;  %6627 = vmatpush1.bf16.msra.mxu1 %v8491_v29  ;;  %v8559_v58 = vld [vmem:[#allocation11 + $0x744] ss:$16 sps:$4 sm:$0xff]   ;;  %v8458_v28 = vld [vmem:[#allocation11 + $0x540] ss:$16 sps:$4 sm:$0xff]   ;;  %v4747_v62 = vadd.f32 %v9302_v59, %v4706_v24  ;;  %v8469_v59 = vld [vmem:[#allocation11 + $0xec] ss:$16 sps:$4 sm:$0xff]  }
 0x389   :  { %v9305_v39 = vpack.c.bf16 %v4930_v34, %v4930_v34  ;;  %6628 = vmatprep.subr.bf16.mxu1 %v8499_v33  ;;  %v8463_v29 = vld [vmem:[#allocation11 + $0x524] ss:$16 sps:$4 sm:$0xff]   ;;  %v8557_v31 = vld [vmem:[#allocation11 + $0x740] ss:$16 sps:$4 sm:$0xff]   ;;  %v8530_v24 = vld [vmem:[#allocation11 + $0x168] ss:$16 sps:$4 sm:$0xff]  }
 0x38a   :  { %v8461_v33 = vld [vmem:[#allocation11 + $0x520] ss:$16 sps:$4 sm:$0xff]   ;;  %v4921_v34 = vmul.f32 0.2, %v4747_v62 }
 0x38b   :  { %6588 = vmatpush1.bf16.msra.mxu0 %v8428_v36  ;;  %6613 = vmatprep.mubr.bf16.mxu0 %v9305_v39  ;;  %v8563_v63 = vld [vmem:[#allocation11 + $0x720] ss:$16 sps:$4 sm:$0xff]   ;;  %v8571_v36 = vld [vmem:[#allocation11 + $0x704] ss:$16 sps:$4 sm:$0xff]  }
 0x38c   :  { %6589 = vmatprep.subr.bf16.mxu0 %v8433_v8  ;;  %6629 = vmatpush1.bf16.msra.mxu1 %v8497_v37  ;;  %v8464_v8 = vld [vmem:[#allocation11 + $0x500] ss:$16 sps:$4 sm:$0xff]   ;;  %v4929_v37 = vmax.f32 %v4747_v62, %v4921_v34  ;;  %v8550_v62 = vld [vmem:[#allocation11 + $0x10c] ss:$16 sps:$4 sm:$0xff]  }
 0x38d   :  { %6630 = vmatprep.subr.bf16.mxu1 %v8505_v42  ;;  %v8569_v42 = vld [vmem:[#allocation11 + $0x700] ss:$16 sps:$4 sm:$0xff]  }
 0x38f   :  { %6590 = vmatpush1.bf16.msra.mxu0 %v8431_v41  ;;  %v8577_v41 = vld [vmem:[#allocation11 + $0x2ec] ss:$16 sps:$4 sm:$0xff]  }
 0x390   :  { %6591 = vmatprep.subr.bf16.mxu0 %v8436_v45  ;;  %6631 = vmatpush1.bf16.msra.mxu1 %v8503_v53  ;;  %v8467_v45 = vld [vmem:[#allocation11 + $0xe8] ss:$16 sps:$4 sm:$0xff]   ;;  %v9311_v53 = vpack.c.bf16 %v4929_v37, %v4929_v37 }
 0x391   :  { %6632 = vmatprep.subr.bf16.mxu1 %v8511_v56  ;;  %v8472_v56 = vld [vmem:[#allocation11 + $0xcc] ss:$16 sps:$4 sm:$0xff]  }
 0x393   :  { %6592 = vmatpush1.bf16.msra.mxu0 %v8434_v0 }
 0x394   :  { %6593 = vmatprep.subr.bf16.mxu0 %v8439_v2  ;;  %6633 = vmatpush1.bf16.msra.mxu1 %v8509_v3  ;;  %v8470_v3 = vld [vmem:[#allocation11 + $0xc8] ss:$16 sps:$4 sm:$0xff]  }
 0x395   :  { %6634 = vmatprep.subr.bf16.mxu1 %v8517_v4 }
 0x397   :  { %6594 = vmatpush1.bf16.msra.mxu0 %v8437_v38  ;;  %v8475_v38 = vld [vmem:[#allocation11 + $0xac] ss:$16 sps:$4 sm:$0xff]  }
 0x398   :  { %6595 = vmatprep.subr.bf16.mxu0 %v8442_v5  ;;  %6635 = vmatpush1.bf16.msra.mxu1 %v8515_v57 }
 0x399   :  { %6636 = vmatprep.subr.bf16.mxu1 %v8523_v6 }
 0x39b   :  { %6596 = vmatpush1.bf16.msra.mxu0 %v8440_v10  ;;  %v8473_v10 = vld [vmem:[#allocation11 + $0xa8] ss:$16 sps:$4 sm:$0xff]  }
 0x39c   :  { %6597 = vmatprep.subr.bf16.mxu0 %v8445_v11  ;;  %6637 = vmatpush1.bf16.msra.mxu1 %v8521_v7  ;;  %v8478_v7 = vld [vmem:[#allocation11 + $0x8c] ss:$16 sps:$4 sm:$0xff]  }
 0x39d   :  { %6638 = vmatprep.subr.bf16.mxu1 %v8529_v13 }
 0x39f   :  { %6598 = vmatpush2.bf16.msra.mxu0 %v8443_v60  ;;  %v8476_v60 = vld [vmem:[#allocation11 + $0x88] ss:$16 sps:$4 sm:$0xff]  }
 0x3a0   :  { %6599 = vmatprep.subr.bf16.mxu0 %v8448_v1  ;;  %6639 = vmatpush2.bf16.msra.mxu1 %v8527_v15  ;;  %v8484_v1 = vld [vmem:[#allocation11 + $0x6c] ss:$16 sps:$4 sm:$0xff]  }
 0x3a1   :  { %6640 = vmatprep.subr.bf16.mxu1 %v8535_v16  ;;  %v8490_v15 = vld [vmem:[#allocation11 + $0x4c] ss:$16 sps:$4 sm:$0xff]   ;;  %v8488_v16 = vld [vmem:[#allocation11 + $0x48] ss:$16 sps:$4 sm:$0xff]  }
 0x3a3   :  { %6600 = vmatpush2.bf16.msra.mxu0 %v8446_v48  ;;  %v8496_v48 = vld [vmem:[#allocation11 + $0x2c] ss:$16 sps:$4 sm:$0xff]  }
 0x3a4   :  { %6601 = vmatprep.subr.bf16.mxu0 %v8451_v61  ;;  %6641 = vmatpush2.bf16.msra.mxu1 %v8533_v50  ;;  %v8494_v61 = vld [vmem:[#allocation11 + $0x28] ss:$16 sps:$4 sm:$0xff]   ;;  %v8502_v50 = vld [vmem:[#allocation11 + $0xc] ss:$16 sps:$4 sm:$0xff]  }
 0x3a5   :  { %6642 = vmatprep.subr.bf16.mxu1 %v8541_v17  ;;  %v8500_v17 = vld [vmem:[#allocation11 + $0x8] ss:$16 sps:$4 sm:$0xff]  }
 0x3a7   :  { %6602 = vmatpush2.bf16.msra.mxu0 %v8449_v54  ;;  %v8508_v54 = vld [vmem:[#allocation11 + $0x1ec] ss:$16 sps:$4 sm:$0xff]  }
 0x3a8   :  { %6603 = vmatprep.subr.bf16.mxu0 %v8454_v12  ;;  %6643 = vmatpush2.bf16.msra.mxu1 %v8539_v40  ;;  %v8506_v12 = vld [vmem:[#allocation11 + $0x1e8] ss:$16 sps:$4 sm:$0xff]   ;;  %v8514_v40 = vld [vmem:[#allocation11 + $0x1cc] ss:$16 sps:$4 sm:$0xff]  }
 0x3a9   :  { %6644 = vmatprep.subr.bf16.mxu1 %v8547_v49  ;;  %v8512_v49 = vld [vmem:[#allocation11 + $0x1c8] ss:$16 sps:$4 sm:$0xff]  }
 0x3ab   :  { %6604 = vmatpush2.bf16.msra.mxu0 %v8452_v52  ;;  %v8520_v52 = vld [vmem:[#allocation11 + $0x1ac] ss:$16 sps:$4 sm:$0xff]  }
 0x3ac   :  { %6605 = vmatprep.subr.bf16.mxu0 %v8457_v43  ;;  %6645 = vmatpush2.bf16.msra.mxu1 %v8545_v9  ;;  %v8518_v43 = vld [vmem:[#allocation11 + $0x1a8] ss:$16 sps:$4 sm:$0xff]   ;;  %v8526_v9 = vld [vmem:[#allocation11 + $0x18c] ss:$16 sps:$4 sm:$0xff]  }
 0x3ad   :  { %6646 = vmatprep.subr.bf16.mxu1 %v8553_v18  ;;  %v8524_v18 = vld [vmem:[#allocation11 + $0x188] ss:$16 sps:$4 sm:$0xff]  }
 0x3af   :  { %6606 = vmatpush2.bf16.msra.mxu0 %v8455_v19  ;;  %v8532_v19 = vld [vmem:[#allocation11 + $0x16c] ss:$16 sps:$4 sm:$0xff]  }
 0x3b0   :  { %6607 = vmatprep.subr.bf16.mxu0 %v8460_v20  ;;  %6647 = vmatpush2.bf16.msra.mxu1 %v8551_v21  ;;  %v8538_v20 = vld [vmem:[#allocation11 + $0x14c] ss:$16 sps:$4 sm:$0xff]   ;;  %v8536_v21 = vld [vmem:[#allocation11 + $0x148] ss:$16 sps:$4 sm:$0xff]  }
 0x3b1   :  { %6648 = vmatprep.subr.bf16.mxu1 %v8559_v58  ;;  %v8544_v58 = vld [vmem:[#allocation11 + $0x12c] ss:$16 sps:$4 sm:$0xff]  }
 0x3b3   :  { %6608 = vmatpush2.bf16.msra.mxu0 %v8458_v28  ;;  %v8542_v28 = vld [vmem:[#allocation11 + $0x128] ss:$16 sps:$4 sm:$0xff]  }
 0x3b4   :  { %6609 = vmatprep.subr.bf16.mxu0 %v8463_v29  ;;  %6649 = vmatpush2.bf16.msra.mxu1 %v8557_v31  ;;  %v1688_v29 = vrot.slane %v9267_v30, %v305_v47  ;;  %v1692_v31 = vrot.slane %v9267_v30, %v309_v55  ;;  %v8560_v30 = vld [vmem:[#allocation11 + $0x4c8] ss:$16 sps:$4 sm:$0xff]  }
 0x3b5   :  { %6650 = vmatprep.subr.bf16.mxu1 %v8565_v32  ;;  %v8548_v32 = vld [vmem:[#allocation11 + $0x108] ss:$16 sps:$4 sm:$0xff]  }
 0x3b7   :  { %6610 = vmatpush2.bf16.msra.mxu0 %v8461_v33  ;;  %v8556_v33 = vld [vmem:[#allocation11 + $0x4ec] ss:$16 sps:$4 sm:$0xff]  }
 0x3b8   :  { %6611 = vmatprep.subr.bf16.mxu0 %v8466_v46  ;;  %6651 = vmatpush2.bf16.msra.mxu1 %v8563_v63  ;;  %v8554_v63 = vld [vmem:[#allocation11 + $0x4e8] ss:$16 sps:$4 sm:$0xff]  }
 0x3b9   :  { %6652 = vmatprep.subr.bf16.mxu1 %v8571_v36  ;;  %v8562_v36 = vld [vmem:[#allocation11 + $0x4cc] ss:$16 sps:$4 sm:$0xff]  }
 0x3bb   :  { %6612 = vmatpush2.bf16.msra.mxu0 %v8464_v8 }
 0x3bc   :  { %6663 = vmatprep.subr.bf16.mxu0 %v8469_v59  ;;  %6653 = vmatpush2.bf16.msra.mxu1 %v8569_v42  ;;  %v8568_v42 = vld [vmem:[#allocation11 + $0x4ac] ss:$16 sps:$4 sm:$0xff]  }
 0x3bd   :  { %6704 = vmatprep.subr.bf16.mxu1 %v8577_v41 }
 0x3be   :  { %v9313_v0 = vpop.f32.mrf.mxu0  ;;  %6614 = vmatmul.mubr.bf16.vlgmr.msra.gmra.mxu0 %v9311_v53 }
 0x3bf   :  { %v9316_v2 = vpop.f32.mrf.mxu1  ;;  %6664 = vmatpush1.bf16.msra.mxu0 %v8467_v45  ;;  %6695 = vmatprep.mubr.bf16.mxu0 %v9272_v35  ;;  %v8482_v35 = vld [vmem:[#allocation11 + $0x68] ss:$16 sps:$4 sm:$0xff]   ;;  %v4788_v34 = vadd.f32 %v9313_v0, %v1688_v29 }
 0x3c0   :  { %v9319_v4 = vpop.f32.mrf.mxu0  ;;  %6665 = vmatprep.subr.bf16.mxu0 %v8472_v56  ;;  %v8611_v29 = vld [vmem:[#allocation11 + $0x228] ss:$16 sps:$4 sm:$0xff]  }
 0x3c1   :  { %v9321_v5 = vpop.f32.mrf.mxu1  ;;  %v4790_v46 = vadd.f32 %v9319_v4, %v1692_v31  ;;  %v4829_v8 = vadd.f32 %v9316_v2, %v4788_v34  ;;  %v8619_v31 = vld [vmem:[#allocation11 + $0x20c] ss:$16 sps:$4 sm:$0xff]   ;;  %v8617_v34 = vld [vmem:[#allocation11 + $0x208] ss:$16 sps:$4 sm:$0xff]  }
 0x3c2   :  { %v4791_v57 = vpop.f32.mrf.mxu0 }
 0x3c3   :  { %v4832_v6 = vpop.f32.mrf.mxu1  ;;  %6666 = vmatpush1.bf16.msra.mxu0 %v8470_v3  ;;  %v4831_v22 = vadd.f32 %v9321_v5, %v4790_v46  ;;  %v8574_v5 = vld [vmem:[#allocation11 + $0x48c] ss:$16 sps:$4 sm:$0xff]  }
 0x3c4   :  { %v4792_v11 = vpop.f32.mrf.mxu0  ;;  %6667 = vmatprep.subr.bf16.mxu0 %v8475_v38  ;;  %v8625_v46 = vld [vmem:[#allocation11 + $0x3ec] ss:$16 sps:$4 sm:$0xff]  }
 0x3c5   :  { %v4833_v13 = vpop.f32.mrf.mxu1  ;;  %v8572_v11 = vld [vmem:[#allocation11 + $0x488] ss:$16 sps:$4 sm:$0xff]  }
 0x3c7   :  { %6668 = vmatpush1.bf16.msra.mxu0 %v8473_v10 }
 0x3c8   :  { %6669 = vmatprep.subr.bf16.mxu0 %v8478_v7  ;;  %v8580_v7 = vld [vmem:[#allocation11 + $0x46c] ss:$16 sps:$4 sm:$0xff]  }
 0x3cb   :  { %6670 = vmatpush1.bf16.msra.mxu0 %v8476_v60  ;;  %v8575_v60 = vld [vmem:[#allocation11 + $0x2e8] ss:$16 sps:$4 sm:$0xff]  }
 0x3cc   :  { %6671 = vmatprep.subr.bf16.mxu0 %v8484_v1 }
 0x3cf   :  { %6672 = vmatpush1.bf16.msra.mxu0 %v8482_v35  ;;  %v8583_v35 = vld [vmem:[#allocation11 + $0x2cc] ss:$16 sps:$4 sm:$0xff]  }
 0x3d0   :  { %6673 = vmatprep.subr.bf16.mxu0 %v8490_v15  ;;  %v8578_v15 = vld [vmem:[#allocation11 + $0x468] ss:$16 sps:$4 sm:$0xff]  }
 0x3d3   :  { %6674 = vmatpush1.bf16.msra.mxu0 %v8488_v16  ;;  %v8586_v16 = vld [vmem:[#allocation11 + $0x44c] ss:$16 sps:$4 sm:$0xff]  }
 0x3d4   :  { %6675 = vmatprep.subr.bf16.mxu0 %v8496_v48  ;;  %v8581_v48 = vld [vmem:[#allocation11 + $0x2c8] ss:$16 sps:$4 sm:$0xff]  }
 0x3d7   :  { %6676 = vmatpush1.bf16.msra.mxu0 %v8494_v61  ;;  %v8589_v61 = vld [vmem:[#allocation11 + $0x2ac] ss:$16 sps:$4 sm:$0xff]  }
 0x3d8   :  { %6677 = vmatprep.subr.bf16.mxu0 %v8502_v50  ;;  %v8584_v50 = vld [vmem:[#allocation11 + $0x448] ss:$16 sps:$4 sm:$0xff]  }
 0x3db   :  { %6678 = vmatpush1.bf16.msra.mxu0 %v8500_v17  ;;  %v8592_v17 = vld [vmem:[#allocation11 + $0x42c] ss:$16 sps:$4 sm:$0xff]  }
 0x3dc   :  { %6679 = vmatprep.subr.bf16.mxu0 %v8508_v54  ;;  %v8587_v54 = vld [vmem:[#allocation11 + $0x2a8] ss:$16 sps:$4 sm:$0xff]  }
 0x3df   :  { %6680 = vmatpush2.bf16.msra.mxu0 %v8506_v12  ;;  %v8595_v12 = vld [vmem:[#allocation11 + $0x28c] ss:$16 sps:$4 sm:$0xff]  }
 0x3e0   :  { %6681 = vmatprep.subr.bf16.mxu0 %v8514_v40  ;;  %v8590_v40 = vld [vmem:[#allocation11 + $0x428] ss:$16 sps:$4 sm:$0xff]  }
 0x3e3   :  { %6682 = vmatpush2.bf16.msra.mxu0 %v8512_v49  ;;  %v8598_v49 = vld [vmem:[#allocation11 + $0x40c] ss:$16 sps:$4 sm:$0xff]  }
 0x3e4   :  { %6683 = vmatprep.subr.bf16.mxu0 %v8520_v52  ;;  %v8593_v52 = vld [vmem:[#allocation11 + $0x288] ss:$16 sps:$4 sm:$0xff]  }
 0x3e7   :  { %6684 = vmatpush2.bf16.msra.mxu0 %v8518_v43  ;;  %v8601_v43 = vld [vmem:[#allocation11 + $0x26c] ss:$16 sps:$4 sm:$0xff]  }
 0x3e8   :  { %6685 = vmatprep.subr.bf16.mxu0 %v8526_v9  ;;  %v8604_v9 = vld [vmem:[#allocation11 + $0x5ec] ss:$16 sps:$4 sm:$0xff]  }
 0x3eb   :  { %6686 = vmatpush2.bf16.msra.mxu0 %v8524_v18  ;;  %v8599_v18 = vld [vmem:[#allocation11 + $0x268] ss:$16 sps:$4 sm:$0xff]  }
 0x3ec   :  { %6687 = vmatprep.subr.bf16.mxu0 %v8532_v19  ;;  %v8607_v19 = vld [vmem:[#allocation11 + $0x24c] ss:$16 sps:$4 sm:$0xff]  }
 0x3ef   :  { %6688 = vmatpush2.bf16.msra.mxu0 %v8530_v24  ;;  %v8602_v24 = vld [vmem:[#allocation11 + $0x5e8] ss:$16 sps:$4 sm:$0xff]  }
 0x3f0   :  { %6689 = vmatprep.subr.bf16.mxu0 %v8538_v20  ;;  %v8610_v20 = vld [vmem:[#allocation11 + $0x5cc] ss:$16 sps:$4 sm:$0xff]  }
 0x3f3   :  { %6690 = vmatpush2.bf16.msra.mxu0 %v8536_v21  ;;  %v8605_v21 = vld [vmem:[#allocation11 + $0x248] ss:$16 sps:$4 sm:$0xff]  }
 0x3f4   :  { %6691 = vmatprep.subr.bf16.mxu0 %v8544_v58  ;;  %v8613_v58 = vld [vmem:[#allocation11 + $0x22c] ss:$16 sps:$4 sm:$0xff]  }
 0x3f7   :  { %6692 = vmatpush2.bf16.msra.mxu0 %v8542_v28  ;;  %v8608_v28 = vld [vmem:[#allocation11 + $0x5c8] ss:$16 sps:$4 sm:$0xff]  }
 0x3f8   :  { %6693 = vmatprep.subr.bf16.mxu0 %v8550_v62  ;;  %v8616_v62 = vld [vmem:[#allocation11 + $0x5ac] ss:$16 sps:$4 sm:$0xff]  }
 0x3fb   :  { %6694 = vmatpush2.bf16.msra.mxu0 %v8548_v32  ;;  %v8614_v32 = vld [vmem:[#allocation11 + $0x5a8] ss:$16 sps:$4 sm:$0xff]  }
 0x3fc   :  { %6745 = vmatprep.subr.bf16.mxu0 %v8556_v33  ;;  %v8622_v33 = vld [vmem:[#allocation11 + $0x58c] ss:$16 sps:$4 sm:$0xff]  }
 0x3fe   :  { %v4869_v37 = vpop.f32.mrf.mxu0  ;;  %6696 = vmatmul.mubr.bf16.vlgmr.msra.gmra.mxu0 %v9294_v51  ;;  %v8566_v51 = vld [vmem:[#allocation11 + $0x4a8] ss:$16 sps:$4 sm:$0xff]  }
 0x3ff   :  { %v4870_v47 = vadd.f32 %v4869_v37, %v4829_v8  ;;  %v4910_v55 = vpop.f32.mrf.mxu1  ;;  %6746 = vmatpush1.bf16.msra.mxu0 %v8554_v63  ;;  %6777 = vmatprep.mubr.bf16.mxu0 %v9305_v39  ;;  %v8620_v63 = vld [vmem:[#allocation11 + $0x588] ss:$16 sps:$4 sm:$0xff]   ;;  %v8631_v37 = vld [vmem:[#allocation11 + $0x3cc] ss:$16 sps:$4 sm:$0xff]  }
 0x400   :  { %v4871_v59 = vpop.f32.mrf.mxu0  ;;  %6747 = vmatprep.subr.bf16.mxu0 %v8562_v36  ;;  %v8628_v36 = vld [vmem:[#allocation11 + $0x56c] ss:$16 sps:$4 sm:$0xff]   ;;  %v8623_v8 = vld [vmem:[#allocation11 + $0x3e8] ss:$16 sps:$4 sm:$0xff]  }
 0x401   :  { %v4911_v41 = vadd.f32 %v4910_v55, %v4870_v47  ;;  %v4872_v45 = vadd.f32 %v4871_v59, %v4831_v22  ;;  %v4912_v56 = vpop.f32.mrf.mxu1  ;;  %v8626_v22 = vld [vmem:[#allocation11 + $0x568] ss:$16 sps:$4 sm:$0xff]   ;;  %v8634_v47 = vld [vmem:[#allocation11 + $0x54c] ss:$16 sps:$4 sm:$0xff]  }
 0x402   :  { %v4873_v0 = vpop.f32.mrf.mxu0  ;;  %v8629_v55 = vld [vmem:[#allocation11 + $0x3c8] ss:$16 sps:$4 sm:$0xff]  }
 0x403   :  { %v4923_v3 = vmul.f32 0.2, %v4911_v41  ;;  %v4913_v2 = vadd.f32 %v4912_v56, %v4872_v45  ;;  %v4914_v4 = vpop.f32.mrf.mxu1  ;;  %6748 = vmatpush1.bf16.msra.mxu0 %v8560_v30  ;;  %v8637_v30 = vld [vmem:[#allocation11 + $0x3ac] ss:$16 sps:$4 sm:$0xff]   ;;  %v8632_v59 = vld [vmem:[#allocation11 + $0x548] ss:$16 sps:$4 sm:$0xff]  }
 0x404   :  { %v4874_v38 = vpop.f32.mrf.mxu0  ;;  %6749 = vmatprep.subr.bf16.mxu0 %v8568_v42  ;;  %v8640_v42 = vld [vmem:[#allocation11 + $0x52c] ss:$16 sps:$4 sm:$0xff]   ;;  %v8638_v56 = vld [vmem:[#allocation11 + $0x528] ss:$16 sps:$4 sm:$0xff]  }
 0x405   :  { %v4924_v57 = vmul.f32 0.2, %v4913_v2  ;;  %v4915_v6 = vpop.f32.mrf.mxu1  ;;  %v4931_v10 = vmax.f32 %v4911_v41, %v4923_v3  ;;  %v8635_v41 = vld [vmem:[#allocation11 + $0x3a8] ss:$16 sps:$4 sm:$0xff]   ;;  %v8643_v45 = vld [vmem:[#allocation11 + $0x38c] ss:$16 sps:$4 sm:$0xff]  }
 0x406   :  { %v8646_v0 = vld [vmem:[#allocation11 + $0x50c] ss:$16 sps:$4 sm:$0xff]   ;;  %v8641_v3 = vld [vmem:[#allocation11 + $0x388] ss:$16 sps:$4 sm:$0xff]  }
 0x407   :  { %v4932_v39 = vmax.f32 %v4913_v2, %v4924_v57  ;;  %6750 = vmatpush1.bf16.msra.mxu0 %v8566_v51  ;;  %v9337_v1 = vpack.c.bf16 %v4931_v10, %v4931_v10  ;;  %v8649_v2 = vld [vmem:[#allocation11 + $0x36c] ss:$16 sps:$4 sm:$0xff]   ;;  %v8644_v4 = vld [vmem:[#allocation11 + $0x508] ss:$16 sps:$4 sm:$0xff]   ;;  %v9342_v51 = vld [vmem:[#allocation13] sm:$0xf] }
 0x408   :  { %6751 = vmatprep.subr.bf16.mxu0 %v8574_v5  ;;  %v8709_v38 = vld [vmem:[#allocation14 + $0x74] ss:$8 sps:$4 sm:$0xff]   ;;  %v8652_v57 = vld [vmem:[#allocation11 + $0x34c] ss:$16 sps:$4 sm:$0xff]   ;;  %v5202_v6 = vrot.slane %v9342_v51, %v9142_v23 }
 0x409   :  { %v9335_v13 = vpack.c.bf16 %v4932_v39, %v4932_v39  ;;  %v8647_v5 = vld [vmem:[#allocation11 + $0x368] ss:$16 sps:$4 sm:$0xff]   ;;  %v8707_v10 = vld [vmem:[#allocation14 + $0x70] ss:$8 sps:$4 sm:$0xff]  }
 0x40a   :  { %v8712_v39 = vld [vmem:[#allocation14 + $0x64] ss:$8 sps:$4 sm:$0xff]  }
 0x40b   :  { %6654 = vmatprep.mubr.bf16.mxu1 %v9335_v13  ;;  %6752 = vmatpush1.bf16.msra.mxu0 %v8572_v11  ;;  %v8650_v11 = vld [vmem:[#allocation11 + $0x348] ss:$16 sps:$4 sm:$0xff]  }
 0x40c   :  { %6655 = vmatmul.mubr.bf16.vlgmr.msra.gmra.mxu1 %v9337_v1  ;;  %6753 = vmatprep.subr.bf16.mxu0 %v8580_v7  ;;  %v5206_v7 = vrot.slane %v9342_v51, %v9150_v26 }
 0x40d   :  { %6705 = vmatpush1.bf16.msra.mxu1 %v8575_v60  ;;  %6736 = vmatprep.mubr.bf16.mxu1 %v9275_v14  ;;  %v8596_v14 = vld [vmem:[#allocation11 + $0x408] ss:$16 sps:$4 sm:$0xff]  }
 0x40e   :  { %6706 = vmatprep.subr.bf16.mxu1 %v8583_v35  ;;  %v8655_v35 = vld [vmem:[#allocation11 + $0x32c] ss:$16 sps:$4 sm:$0xff]  }
 0x40f   :  { %6754 = vmatpush1.bf16.msra.mxu0 %v8578_v15 }
 0x410   :  { %6755 = vmatprep.subr.bf16.mxu0 %v8586_v16 }
 0x411   :  { %6707 = vmatpush1.bf16.msra.mxu1 %v8581_v48  ;;  %v8710_v48 = vld [vmem:[#allocation14 + $0x60] ss:$8 sps:$4 sm:$0xff]  }
 0x412   :  { %6708 = vmatprep.subr.bf16.mxu1 %v8589_v61 }
 0x413   :  { %6756 = vmatpush1.bf16.msra.mxu0 %v8584_v50  ;;  %v8715_v50 = vld [vmem:[#allocation14 + $0x54] ss:$8 sps:$4 sm:$0xff]  }
 0x414   :  { %6757 = vmatprep.subr.bf16.mxu0 %v8592_v17 }
 0x415   :  { %6709 = vmatpush1.bf16.msra.mxu1 %v8587_v54 }
 0x416   :  { %6710 = vmatprep.subr.bf16.mxu1 %v8595_v12 }
 0x417   :  { %6758 = vmatpush1.bf16.msra.mxu0 %v8590_v40  ;;  %v8653_v40 = vld [vmem:[#allocation11 + $0x328] ss:$16 sps:$4 sm:$0xff]  }
 0x418   :  { %6759 = vmatprep.subr.bf16.mxu0 %v8598_v49 }
 0x419   :  { %6711 = vmatpush1.bf16.msra.mxu1 %v8593_v52  ;;  %v8658_v52 = vld [vmem:[#allocation11 + $0x30c] ss:$16 sps:$4 sm:$0xff]  }
 0x41a   :  { %6712 = vmatprep.subr.bf16.mxu1 %v8601_v43 }
 0x41b   :  { %6760 = vmatpush1.bf16.msra.mxu0 %v8596_v14  ;;  %v8713_v14 = vld [vmem:[#allocation14 + $0x50] ss:$8 sps:$4 sm:$0xff]  }
 0x41c   :  { %6761 = vmatprep.subr.bf16.mxu0 %v8604_v9 }
 0x41d   :  { %6713 = vmatpush1.bf16.msra.mxu1 %v8599_v18  ;;  %v8718_v18 = vld [vmem:[#allocation14 + $0x44] ss:$8 sps:$4 sm:$0xff]  }
 0x41e   :  { %6714 = vmatprep.subr.bf16.mxu1 %v8607_v19 }
 0x41f   :  { %6762 = vmatpush2.bf16.msra.mxu0 %v8602_v24  ;;  %v8656_v24 = vld [vmem:[#allocation11 + $0x308] ss:$16 sps:$4 sm:$0xff]  }
 0x420   :  { %6763 = vmatprep.subr.bf16.mxu0 %v8610_v20  ;;  %v8661_v20 = vld [vmem:[#allocation11 + $0x6ec] ss:$16 sps:$4 sm:$0xff]  }
 0x421   :  { %6715 = vmatpush1.bf16.msra.mxu1 %v8605_v21  ;;  %v8716_v21 = vld [vmem:[#allocation14 + $0x40] ss:$8 sps:$4 sm:$0xff]  }
 0x422   :  { %6716 = vmatprep.subr.bf16.mxu1 %v8613_v58  ;;  %v8721_v58 = vld [vmem:[#allocation14 + $0x34] ss:$8 sps:$4 sm:$0xff]  }
 0x423   :  { %6764 = vmatpush2.bf16.msra.mxu0 %v8608_v28  ;;  %v8659_v28 = vld [vmem:[#allocation11 + $0x6e8] ss:$16 sps:$4 sm:$0xff]  }
 0x424   :  { %6765 = vmatprep.subr.bf16.mxu0 %v8616_v62  ;;  %v8664_v62 = vld [vmem:[#allocation11 + $0x6cc] ss:$16 sps:$4 sm:$0xff]  }
 0x425   :  { %6717 = vmatpush1.bf16.msra.mxu1 %v8611_v29  ;;  %v8719_v29 = vld [vmem:[#allocation14 + $0x30] ss:$8 sps:$4 sm:$0xff]  }
 0x426   :  { %6718 = vmatprep.subr.bf16.mxu1 %v8619_v31  ;;  %v8724_v31 = vld [vmem:[#allocation14 + $0x24] ss:$8 sps:$4 sm:$0xff]  }
 0x427   :  { %6766 = vmatpush2.bf16.msra.mxu0 %v8614_v32  ;;  %v8662_v32 = vld [vmem:[#allocation11 + $0x6c8] ss:$16 sps:$4 sm:$0xff]  }
 0x428   :  { %6767 = vmatprep.subr.bf16.mxu0 %v8622_v33  ;;  %v8667_v33 = vld [vmem:[#allocation11 + $0x6ac] ss:$16 sps:$4 sm:$0xff]  }
 0x429   :  { %6719 = vmatpush1.bf16.msra.mxu1 %v8617_v34  ;;  %v8722_v34 = vld [vmem:[#allocation14 + $0x20] ss:$8 sps:$4 sm:$0xff]  }
 0x42a   :  { %6720 = vmatprep.subr.bf16.mxu1 %v8625_v46  ;;  %v8727_v46 = vld [vmem:[#allocation14 + $0x14] ss:$8 sps:$4 sm:$0xff]  }
 0x42b   :  { %6768 = vmatpush2.bf16.msra.mxu0 %v8620_v63  ;;  %v8665_v63 = vld [vmem:[#allocation11 + $0x6a8] ss:$16 sps:$4 sm:$0xff]  }
 0x42c   :  { %6769 = vmatprep.subr.bf16.mxu0 %v8628_v36  ;;  %v8670_v36 = vld [vmem:[#allocation11 + $0x68c] ss:$16 sps:$4 sm:$0xff]  }
 0x42d   :  { %6721 = vmatpush2.bf16.msra.mxu1 %v8623_v8  ;;  %v8725_v8 = vld [vmem:[#allocation14 + $0x10] ss:$8 sps:$4 sm:$0xff]  }
 0x42e   :  { %6722 = vmatprep.subr.bf16.mxu1 %v8631_v37  ;;  %v8668_v37 = vld [vmem:[#allocation11 + $0x688] ss:$16 sps:$4 sm:$0xff]  }
 0x42f   :  { %6770 = vmatpush2.bf16.msra.mxu0 %v8626_v22  ;;  %v8673_v22 = vld [vmem:[#allocation11 + $0x66c] ss:$16 sps:$4 sm:$0xff]  }
 0x430   :  { %6771 = vmatprep.subr.bf16.mxu0 %v8634_v47  ;;  %v8733_v47 = vld [vmem:[#allocation14 + $0xf4] ss:$8 sps:$4 sm:$0xff]  }
 0x431   :  { %6723 = vmatpush2.bf16.msra.mxu1 %v8629_v55  ;;  %v8671_v55 = vld [vmem:[#allocation11 + $0x668] ss:$16 sps:$4 sm:$0xff]  }
 0x432   :  { %6724 = vmatprep.subr.bf16.mxu1 %v8637_v30  ;;  %v8676_v30 = vld [vmem:[#allocation11 + $0x64c] ss:$16 sps:$4 sm:$0xff]  }
 0x433   :  { %6772 = vmatpush2.bf16.msra.mxu0 %v8632_v59  ;;  %v8731_v59 = vld [vmem:[#allocation14 + $0xf0] ss:$8 sps:$4 sm:$0xff]  }
 0x434   :  { %6773 = vmatprep.subr.bf16.mxu0 %v8640_v42  ;;  %v8736_v42 = vld [vmem:[#allocation14 + $0xe4] ss:$8 sps:$4 sm:$0xff]  }
 0x435   :  { %6725 = vmatpush2.bf16.msra.mxu1 %v8635_v41  ;;  %v8674_v41 = vld [vmem:[#allocation11 + $0x648] ss:$16 sps:$4 sm:$0xff]  }
 0x436   :  { %6726 = vmatprep.subr.bf16.mxu1 %v8643_v45  ;;  %v8679_v45 = vld [vmem:[#allocation11 + $0x62c] ss:$16 sps:$4 sm:$0xff]  }
 0x437   :  { %6774 = vmatpush2.bf16.msra.mxu0 %v8638_v56  ;;  %v8734_v56 = vld [vmem:[#allocation14 + $0xe0] ss:$8 sps:$4 sm:$0xff]  }
 0x438   :  { %6775 = vmatprep.subr.bf16.mxu0 %v8646_v0  ;;  %v8739_v0 = vld [vmem:[#allocation14 + $0xd4] ss:$8 sps:$4 sm:$0xff]  }
 0x439   :  { %6727 = vmatpush2.bf16.msra.mxu1 %v8641_v3  ;;  %v8677_v3 = vld [vmem:[#allocation11 + $0x628] ss:$16 sps:$4 sm:$0xff]  }
 0x43a   :  { %6728 = vmatprep.subr.bf16.mxu1 %v8649_v2  ;;  %v8682_v2 = vld [vmem:[#allocation11 + $0x60c] ss:$16 sps:$4 sm:$0xff]  }
 0x43b   :  { %6776 = vmatpush2.bf16.msra.mxu0 %v8644_v4  ;;  %v8737_v4 = vld [vmem:[#allocation14 + $0xd0] ss:$8 sps:$4 sm:$0xff]  }
 0x43c   :  { %7235 = vmatprep.subr.bf16.mxu0 %v8709_v38  ;;  %v8742_v38 = vld [vmem:[#allocation14 + $0xc4] ss:$8 sps:$4 sm:$0xff]  }
 0x43d   :  { %6729 = vmatpush2.bf16.msra.mxu1 %v8647_v5  ;;  %v8680_v5 = vld [vmem:[#allocation11 + $0x608] ss:$16 sps:$4 sm:$0xff]  }
 0x43e   :  { %v6533_v60 = vpop.f32.mrf.mxu0  ;;  %6778 = vmatmul.mubr.bf16.vlgmr.msra.gmra.mxu0 %v9311_v53  ;;  %6730 = vmatprep.subr.bf16.mxu1 %v8652_v57  ;;  %v8685_v57 = vld [vmem:[#allocation11 + $0x7ec] ss:$16 sps:$4 sm:$0xff]  }
 0x43f   :  { %v6534_v15 = vadd.f32 %v6533_v60, %v5202_v6  ;;  %v6574_v16 = vpop.f32.mrf.mxu1  ;;  %7236 = vmatpush1.bf16.msra.mxu0 %v8707_v10  ;;  %v8740_v6 = vld [vmem:[#allocation14 + $0xc0] ss:$8 sps:$4 sm:$0xff]   ;;  %v8745_v10 = vld [vmem:[#allocation14 + $0xb4] ss:$8 sps:$4 sm:$0xff]   ;;  %v8748_v60 = vld [vmem:[#allocation14 + $0xa4] ss:$8 sps:$4 sm:$0xff]  }
 0x440   :  { %v6535_v61 = vpop.f32.mrf.mxu0  ;;  %7237 = vmatprep.subr.bf16.mxu0 %v8712_v39  ;;  %v8683_v39 = vld [vmem:[#allocation11 + $0x7e8] ss:$16 sps:$4 sm:$0xff]  }
 0x441   :  { %v9349_v17 = vadd.f32 %v6574_v16, %v6534_v15  ;;  %v6536_v54 = vadd.f32 %v6535_v61, %v5206_v7  ;;  %v6576_v12 = vpop.f32.mrf.mxu1  ;;  %6731 = vmatpush2.bf16.msra.mxu1 %v8650_v11  ;;  %v8688_v11 = vld [vmem:[#allocation11 + $0x7cc] ss:$16 sps:$4 sm:$0xff]   ;;  %v8689_v61 = vld [vmem:[#allocation11 + $0x7a8] ss:$16 sps:$4 sm:$0xff]  }
 0x442   :  { %v6537_v49 = vpop.f32.mrf.mxu0  ;;  %6732 = vmatprep.subr.bf16.mxu1 %v8655_v35  ;;  %v8743_v7 = vld [vmem:[#allocation14 + $0xb0] ss:$8 sps:$4 sm:$0xff]   ;;  %v8686_v35 = vld [vmem:[#allocation11 + $0x7c8] ss:$16 sps:$4 sm:$0xff]   ;;  %v8746_v16 = vld [vmem:[#allocation14 + $0xa0] ss:$8 sps:$4 sm:$0xff]  }
 0x443   :  { %v9351_v43 = vadd.f32 %v6576_v12, %v6536_v54  ;;  %v6578_v53 = vpop.f32.mrf.mxu1  ;;  %7238 = vmatpush1.bf16.msra.mxu0 %v8710_v48  ;;  %v8691_v15 = vld [vmem:[#allocation11 + $0x7ac] ss:$16 sps:$4 sm:$0xff]   ;;  %v8751_v48 = vld [vmem:[#allocation14 + $0x94] ss:$8 sps:$4 sm:$0xff]   ;;  %v8754_v12 = vld [vmem:[#allocation14 + $0x84] ss:$8 sps:$4 sm:$0xff]  }
 0x444   :  { %v6538_v9 = vpop.f32.mrf.mxu0  ;;  %7239 = vmatprep.subr.bf16.mxu0 %v8715_v50  ;;  %v8694_v50 = vld [vmem:[#allocation11 + $0x78c] ss:$16 sps:$4 sm:$0xff]   ;;  %v8695_v53 = vld [vmem:[#allocation11 + $0x768] ss:$16 sps:$4 sm:$0xff]  }
 0x445   :  { %v6579_v19 = vpop.f32.mrf.mxu1  ;;  %6733 = vmatpush2.bf16.msra.mxu1 %v8653_v40  ;;  %v8749_v54 = vld [vmem:[#allocation14 + $0x90] ss:$8 sps:$4 sm:$0xff]   ;;  %v8692_v40 = vld [vmem:[#allocation11 + $0x788] ss:$16 sps:$4 sm:$0xff]  }
 0x446   :  { %6734 = vmatprep.subr.bf16.mxu1 %v8658_v52  ;;  %v8697_v49 = vld [vmem:[#allocation11 + $0x76c] ss:$16 sps:$4 sm:$0xff]   ;;  %v8698_v9 = vld [vmem:[#allocation11 + $0x748] ss:$16 sps:$4 sm:$0xff]  }
 0x447   :  { %7240 = vmatpush1.bf16.msra.mxu0 %v8713_v14  ;;  %v8752_v52 = vld [vmem:[#allocation14 + $0x80] ss:$8 sps:$4 sm:$0xff]  }
 0x448   :  { %7241 = vmatprep.subr.bf16.mxu0 %v8718_v18  ;;  %v8700_v14 = vld [vmem:[#allocation11 + $0x74c] ss:$16 sps:$4 sm:$0xff]  }
 0x449   :  { %6735 = vmatpush2.bf16.msra.mxu1 %v8656_v24  ;;  %v8703_v19 = vld [vmem:[#allocation11 + $0x72c] ss:$16 sps:$4 sm:$0xff]  }
 0x44a   :  { %6786 = vmatprep.subr.bf16.mxu1 %v8661_v20 }
 0x44b   :  { %7242 = vmatpush1.bf16.msra.mxu0 %v8716_v21 }
 0x44c   :  { %6737 = vmatmul.mubr.bf16.vlgmr.msra.gmra.mxu1 %v9296_v44  ;;  %7243 = vmatprep.subr.bf16.mxu0 %v8721_v58  ;;  %v8730_v44 = vld [vmem:[#allocation14 + $0x4] ss:$8 sps:$4 sm:$0xff]  }
 0x44d   :  { %6787 = vmatpush1.bf16.msra.mxu1 %v8659_v28  ;;  %6818 = vmatprep.mubr.bf16.mxu1 %v9335_v13  ;;  %v8728_v13 = vld [vmem:[#allocation14] ss:$8 sps:$4 sm:$0xff]   ;;  %v8701_v58 = vld [vmem:[#allocation11 + $0x728] ss:$16 sps:$4 sm:$0xff]  }
 0x44e   :  { %6788 = vmatprep.subr.bf16.mxu1 %v8664_v62  ;;  %v8706_v62 = vld [vmem:[#allocation11 + $0x70c] ss:$16 sps:$4 sm:$0xff]  }
 0x44f   :  { %7244 = vmatpush1.bf16.msra.mxu0 %v8719_v29 }
 0x450   :  { %7245 = vmatprep.subr.bf16.mxu0 %v8724_v31  ;;  %v8704_v31 = vld [vmem:[#allocation11 + $0x708] ss:$16 sps:$4 sm:$0xff]  }
 0x451   :  { %6789 = vmatpush1.bf16.msra.mxu1 %v8662_v32  ;;  %v8755_v32 = vld [vmem:[#allocation14 + $0x170] ss:$8 sps:$4 sm:$0xff]  }
 0x452   :  { %6790 = vmatprep.subr.bf16.mxu1 %v8667_v33  ;;  %v8757_v33 = vld [vmem:[#allocation14 + $0x174] ss:$8 sps:$4 sm:$0xff]  }
 0x453   :  { %7246 = vmatpush1.bf16.msra.mxu0 %v8722_v34  ;;  %v8758_v34 = vld [vmem:[#allocation14 + $0x160] ss:$8 sps:$4 sm:$0xff]  }
 0x454   :  { %7247 = vmatprep.subr.bf16.mxu0 %v8727_v46  ;;  %v8761_v46 = vld [vmem:[#allocation14 + $0x150] ss:$8 sps:$4 sm:$0xff]  }
 0x455   :  { %6791 = vmatpush1.bf16.msra.mxu1 %v8665_v63  ;;  %v8766_v63 = vld [vmem:[#allocation14 + $0x144] ss:$8 sps:$4 sm:$0xff]  }
 0x456   :  { %6792 = vmatprep.subr.bf16.mxu1 %v8670_v36  ;;  %v8764_v36 = vld [vmem:[#allocation14 + $0x140] ss:$8 sps:$4 sm:$0xff]  }
 0x457   :  { %7248 = vmatpush1.bf16.msra.mxu0 %v8725_v8  ;;  %v8769_v8 = vld [vmem:[#allocation14 + $0x134] ss:$8 sps:$4 sm:$0xff]  }
 0x458   :  { %7249 = vmatprep.subr.bf16.mxu0 %v8730_v44  ;;  %v8767_v44 = vld [vmem:[#allocation14 + $0x130] ss:$8 sps:$4 sm:$0xff]  }
 0x459   :  { %6793 = vmatpush1.bf16.msra.mxu1 %v8668_v37  ;;  %v8770_v37 = vld [vmem:[#allocation14 + $0x120] ss:$8 sps:$4 sm:$0xff]  }
 0x45a   :  { %6794 = vmatprep.subr.bf16.mxu1 %v8673_v22  ;;  %v8775_v22 = vld [vmem:[#allocation14 + $0x114] ss:$8 sps:$4 sm:$0xff]  }
 0x45b   :  { %7250 = vmatpush1.bf16.msra.mxu0 %v8728_v13  ;;  %v8773_v13 = vld [vmem:[#allocation14 + $0x110] ss:$8 sps:$4 sm:$0xff]  }
 0x45c   :  { %7251 = vmatprep.subr.bf16.mxu0 %v8733_v47  ;;  %v8778_v47 = vld [vmem:[#allocation14 + $0x104] ss:$8 sps:$4 sm:$0xff]  }
 0x45d   :  { %6795 = vmatpush1.bf16.msra.mxu1 %v8671_v55  ;;  %v8776_v55 = vld [vmem:[#allocation14 + $0x100] ss:$8 sps:$4 sm:$0xff]  }
 0x45e   :  { %6796 = vmatprep.subr.bf16.mxu1 %v8676_v30  ;;  %v8781_v30 = vld [vmem:[#allocation14 + $0x1f4] ss:$8 sps:$4 sm:$0xff]  }
 0x45f   :  { %7252 = vmatpush2.bf16.msra.mxu0 %v8731_v59  ;;  %v8779_v59 = vld [vmem:[#allocation14 + $0x1f0] ss:$8 sps:$4 sm:$0xff]  }
 0x460   :  { %7253 = vmatprep.subr.bf16.mxu0 %v8736_v42  ;;  %v8784_v42 = vld [vmem:[#allocation14 + $0x1e4] ss:$8 sps:$4 sm:$0xff]  }
 0x461   :  { %6797 = vmatpush1.bf16.msra.mxu1 %v8674_v41  ;;  %v8782_v41 = vld [vmem:[#allocation14 + $0x1e0] ss:$8 sps:$4 sm:$0xff]  }
 0x462   :  { %6798 = vmatprep.subr.bf16.mxu1 %v8679_v45  ;;  %v8787_v45 = vld [vmem:[#allocation14 + $0x1d4] ss:$8 sps:$4 sm:$0xff]  }
 0x463   :  { %7254 = vmatpush2.bf16.msra.mxu0 %v8734_v56  ;;  %v8785_v56 = vld [vmem:[#allocation14 + $0x1d0] ss:$8 sps:$4 sm:$0xff]  }
 0x464   :  { %7255 = vmatprep.subr.bf16.mxu0 %v8739_v0  ;;  %v8790_v0 = vld [vmem:[#allocation14 + $0x1c4] ss:$8 sps:$4 sm:$0xff]  }
 0x465   :  { %6799 = vmatpush1.bf16.msra.mxu1 %v8677_v3  ;;  %v8788_v3 = vld [vmem:[#allocation14 + $0x1c0] ss:$8 sps:$4 sm:$0xff]  }
 0x466   :  { %6800 = vmatprep.subr.bf16.mxu1 %v8682_v2 }
 0x467   :  { %7256 = vmatpush2.bf16.msra.mxu0 %v8737_v4  ;;  %v8793_v4 = vld [vmem:[#allocation14 + $0x1b4] ss:$8 sps:$4 sm:$0xff]  }
 0x468   :  { %7257 = vmatprep.subr.bf16.mxu0 %v8742_v38 }
 0x469   :  { %6801 = vmatpush1.bf16.msra.mxu1 %v8680_v5  ;;  %v8791_v5 = vld [vmem:[#allocation14 + $0x1b0] ss:$8 sps:$4 sm:$0xff]  }
 0x46a   :  { %6802 = vmatprep.subr.bf16.mxu1 %v8685_v57 }
 0x46b   :  { %7258 = vmatpush2.bf16.msra.mxu0 %v8740_v6 }
 0x46c   :  { %7259 = vmatprep.subr.bf16.mxu0 %v8745_v10  ;;  %v8796_v10 = vld [vmem:[#allocation14 + $0x1a4] ss:$8 sps:$4 sm:$0xff]  }
 0x46d   :  { %6803 = vmatpush2.bf16.msra.mxu1 %v8683_v39 }
 0x46e   :  { %6804 = vmatprep.subr.bf16.mxu1 %v8688_v11  ;;  %v8794_v11 = vld [vmem:[#allocation14 + $0x1a0] ss:$8 sps:$4 sm:$0xff]  }
 0x46f   :  { %7260 = vmatpush2.bf16.msra.mxu0 %v8743_v7 }
 0x470   :  { %7261 = vmatprep.subr.bf16.mxu0 %v8748_v60 }
 0x471   :  { %6805 = vmatpush2.bf16.msra.mxu1 %v8686_v35 }
 0x472   :  { %6806 = vmatprep.subr.bf16.mxu1 %v8691_v15 }
 0x473   :  { %7262 = vmatpush2.bf16.msra.mxu0 %v8746_v16  ;;  %v8799_v16 = vld [vmem:[#allocation14 + $0x194] ss:$8 sps:$4 sm:$0xff]  }
 0x474   :  { %7263 = vmatprep.subr.bf16.mxu0 %v8751_v48 }
 0x475   :  { %6807 = vmatpush2.bf16.msra.mxu1 %v8689_v61  ;;  %v8797_v61 = vld [vmem:[#allocation14 + $0x190] ss:$8 sps:$4 sm:$0xff]  }
 0x476   :  { %6808 = vmatprep.subr.bf16.mxu1 %v8694_v50 }
 0x477   :  { %7264 = vmatpush2.bf16.msra.mxu0 %v8749_v54 }
 0x478   :  { %7265 = vmatprep.subr.bf16.mxu0 %v8754_v12 }
 0x479   :  { %6809 = vmatpush2.bf16.msra.mxu1 %v8692_v40 }
 0x47a   :  { %6810 = vmatprep.subr.bf16.mxu1 %v8697_v49  ;;  %v8802_v49 = vld [vmem:[#allocation14 + $0x184] ss:$8 sps:$4 sm:$0xff]  }
 0x47b   :  { %7266 = vmatpush2.bf16.msra.mxu0 %v8752_v52  ;;  %v8800_v52 = vld [vmem:[#allocation14 + $0x180] ss:$8 sps:$4 sm:$0xff]  }
 0x47d   :  { %6811 = vmatpush2.bf16.msra.mxu1 %v8695_v53 }
 0x47e   :  { %v6615_v18 = vpop.f32.mrf.mxu0  ;;  %6812 = vmatprep.subr.bf16.mxu1 %v8700_v14 }
 0x47f   :  { %v9356_v24 = vadd.f32 %v6615_v18, %v9349_v17  ;;  %v8760_v17 = vld [vmem:[#allocation14 + $0x164] ss:$8 sps:$4 sm:$0xff]  }
 0x480   :  { %v6617_v20 = vpop.f32.mrf.mxu0 }
 0x481   :  { %v9359_v21 = vadd.f32 %v6617_v20, %v9351_v43  ;;  %6813 = vmatpush2.bf16.msra.mxu1 %v8698_v9  ;;  %v8763_v43 = vld [vmem:[#allocation14 + $0x154] ss:$8 sps:$4 sm:$0xff]   ;;  %v5210_v20 = vrot.slane %v9342_v51, %v9147_v25 }
 0x482   :  { %v6619_v28 = vpop.f32.mrf.mxu0  ;;  %6814 = vmatprep.subr.bf16.mxu1 %v8703_v19 }
 0x484   :  { %v6620_v29 = vpop.f32.mrf.mxu0 }
 0x485   :  { %6815 = vmatpush2.bf16.msra.mxu1 %v8701_v58 }
 0x486   :  { %6816 = vmatprep.subr.bf16.mxu1 %v8706_v62 }
 0x489   :  { %6817 = vmatpush2.bf16.msra.mxu1 %v8704_v31 }
 0x48a   :  { %7276 = vmatprep.subr.bf16.mxu1 %v8757_v33 }
 0x48c   :  { %6819 = vmatmul.mubr.bf16.vlgmr.msra.gmra.mxu1 %v9337_v1  ;;  %v8772_v1 = vld [vmem:[#allocation14 + $0x124] ss:$8 sps:$4 sm:$0xff]  }
 0x48d   :  { %7277 = vmatpush1.bf16.msra.mxu1 %v8755_v32 }
 0x48e   :  { %7278 = vmatprep.subr.bf16.mxu1 %v8760_v17 }
 0x491   :  { %7279 = vmatpush1.bf16.msra.mxu1 %v8758_v34 }
 0x492   :  { %7280 = vmatprep.subr.bf16.mxu1 %v8763_v43 }
 0x495   :  { %7281 = vmatpush1.bf16.msra.mxu1 %v8761_v46 }
 0x496   :  { %7282 = vmatprep.subr.bf16.mxu1 %v8766_v63 }
 0x499   :  { %7283 = vmatpush1.bf16.msra.mxu1 %v8764_v36 }
 0x49a   :  { %7284 = vmatprep.subr.bf16.mxu1 %v8769_v8 }
 0x49d   :  { %7285 = vmatpush1.bf16.msra.mxu1 %v8767_v44 }
 0x49e   :  { %7286 = vmatprep.subr.bf16.mxu1 %v8772_v1 }
 0x4a1   :  { %7287 = vmatpush1.bf16.msra.mxu1 %v8770_v37 }
 0x4a2   :  { %7288 = vmatprep.subr.bf16.mxu1 %v8775_v22 }
 0x4a5   :  { %7289 = vmatpush1.bf16.msra.mxu1 %v8773_v13 }
 0x4a6   :  { %7290 = vmatprep.subr.bf16.mxu1 %v8778_v47 }
 0x4a9   :  { %7291 = vmatpush1.bf16.msra.mxu1 %v8776_v55 }
 0x4aa   :  { %7292 = vmatprep.subr.bf16.mxu1 %v8781_v30 }
 0x4ad   :  { %7293 = vmatpush2.bf16.msra.mxu1 %v8779_v59 }
 0x4ae   :  { %7294 = vmatprep.subr.bf16.mxu1 %v8784_v42  ;;  %v6903_v42 = vld [vmem:[#allocation16] sm:$0x3] }
 0x4b1   :  { %7295 = vmatpush2.bf16.msra.mxu1 %v8782_v41  ;;  %v6908_v41 = vrot.slane %v6903_v42, %v9142_v23 }
 0x4b2   :  { %7296 = vmatprep.subr.bf16.mxu1 %v8787_v45  ;;  %v6912_v45 = vrot.slane %v6903_v42, %v9150_v26 }
 0x4b5   :  { %7297 = vmatpush2.bf16.msra.mxu1 %v8785_v56 }
 0x4b6   :  { %7298 = vmatprep.subr.bf16.mxu1 %v8790_v0 }
 0x4b9   :  { %7299 = vmatpush2.bf16.msra.mxu1 %v8788_v3 }
 0x4ba   :  { %7300 = vmatprep.subr.bf16.mxu1 %v8793_v4 }
 0x4bd   :  { %7301 = vmatpush2.bf16.msra.mxu1 %v8791_v5 }
 0x4be   :  { %v6697_v2 = vpop.f32.mrf.mxu0  ;;  %7302 = vmatprep.subr.bf16.mxu1 %v8796_v10 }
 0x4bf   :  { %v6698_v58 = vadd.f32 %v6697_v2, %v5210_v20 }
 0x4c0   :  { %v6699_v38 = vpop.f32.mrf.mxu0 }
 0x4c1   :  { %7303 = vmatpush2.bf16.msra.mxu1 %v8794_v11 }
 0x4c2   :  { %v6701_v57 = vpop.f32.mrf.mxu0  ;;  %7304 = vmatprep.subr.bf16.mxu1 %v8799_v16 }
 0x4c4   :  { %v6702_v6 = vpop.f32.mrf.mxu0 }
 0x4c5   :  { %7305 = vmatpush2.bf16.msra.mxu1 %v8797_v61 }
 0x4c6   :  { %7306 = vmatprep.subr.bf16.mxu1 %v8802_v49 }
 0x4c9   :  { %7307 = vmatpush2.bf16.msra.mxu1 %v8800_v52 }
 0x4cc   :  { %v6656_v39 = vpop.f32.mrf.mxu1 }
 0x4cd   :  { %v6657_v7 = vadd.f32 %v6656_v39, %v9356_v24 }
 0x4ce   :  { %v6658_v60 = vpop.f32.mrf.mxu1 }
 0x4cf   :  { %v6827_v35 = vmul.f32 0.2, %v6657_v7  ;;  %v6659_v15 = vadd.f32 %v6658_v60, %v9359_v21  ;;  %v5214_v21 = vrot.slane %v9342_v51, %v9153_v27 }
 0x4d0   :  { %v6660_v48 = vpop.f32.mrf.mxu1 }
 0x4d1   :  { %v6828_v50 = vmul.f32 0.2, %v6659_v15  ;;  %v6831_v54 = vmax.f32 %v6657_v7, %v6827_v35  ;;  %v6700_v62 = vadd.f32 %v6699_v38, %v5214_v21 }
 0x4d2   :  { %v6661_v12 = vpop.f32.mrf.mxu1 }
 0x4d3   :  { %v6832_v40 = vmax.f32 %v6659_v15, %v6828_v50  ;;  %v6835_v14 = vpack.c.bf16 %v6831_v54, %v6831_v54 }
 0x4d5   :  { %v6836_v53 = vpack.c.bf16 %v6832_v40, %v6832_v40 }
 0x4d7   :  { %7267 = vmatprep.mubr.bf16.mxu0 %v6836_v53 }
 0x4d8   :  { %7268 = vmatmul.mubr.bf16.vlgmr.msra.gmra.mxu0 %v6835_v14 }
 0x4fe   :  { %v6779_v9 = vpop.f32.mrf.mxu0 }
 0x500   :  { %v6781_v18 = vpop.f32.mrf.mxu0 }
 0x502   :  { %v6783_v19 = vpop.f32.mrf.mxu0 }
 0x504   :  { %v6784_v24 = vpop.f32.mrf.mxu0 }
 0x50c   :  { %v6738_v28 = vpop.f32.mrf.mxu1 }
 0x50d   :  { %v6739_v29 = vadd.f32 %v6738_v28, %v6698_v58 }
 0x50e   :  { %v6740_v31 = vpop.f32.mrf.mxu1 }
 0x50f   :  { %v6741_v32 = vadd.f32 %v6740_v31, %v6700_v62  ;;  %v6780_v33 = vadd.f32 %v6779_v9, %v6739_v29 }
 0x510   :  { %v6742_v17 = vpop.f32.mrf.mxu1 }
 0x511   :  { %v6782_v34 = vadd.f32 %v6781_v18, %v6741_v32 }
 0x512   :  { %v6743_v43 = vpop.f32.mrf.mxu1 }
 0x54c   :  { %v6820_v46 = vpop.f32.mrf.mxu1 }
 0x54d   :  { %v6821_v63 = vadd.f32 %v6820_v46, %v6780_v33 }
 0x54e   :  { %v6822_v36 = vpop.f32.mrf.mxu1 }
 0x54f   :  { %v6829_v8 = vmul.f32 0.2, %v6821_v63  ;;  %v6823_v44 = vadd.f32 %v6822_v36, %v6782_v34 }
 0x550   :  { %v6824_v1 = vpop.f32.mrf.mxu1 }
 0x551   :  { %v6830_v25 = vmul.f32 0.2, %v6823_v44  ;;  %v6833_v37 = vmax.f32 %v6821_v63, %v6829_v8 }
 0x552   :  { %v6825_v22 = vpop.f32.mrf.mxu1 }
 0x553   :  { %v6834_v27 = vmax.f32 %v6823_v44, %v6830_v25  ;;  %v6837_v13 = vpack.c.bf16 %v6833_v37, %v6833_v37 }
 0x555   :  { %v6838_v51 = vpack.c.bf16 %v6834_v27, %v6834_v27 }
 0x557   :  { %7308 = vmatprep.mubr.bf16.mxu1 %v6838_v51 }
 0x558   :  { %7309 = vmatmul.mubr.bf16.vlgmr.msra.gmra.mxu1 %v6837_v13 }
 0x598   :  { %v7269_v47 = vpop.f32.mrf.mxu0 }
 0x599   :  { %v7270_v56 = vadd.f32 %v7269_v47, %v6908_v41 }
 0x59a   :  { %v7271_v55 = vpop.f32.mrf.mxu0 }
 0x59b   :  { %v7272_v3 = vadd.f32 %v7271_v55, %v6912_v45 }
 0x59c   :  { %v7273_v30 = vpop.f32.mrf.mxu0 }
 0x59e   :  { %v7274_v59 = vpop.f32.mrf.mxu0 }
 0x618   :  { %v7310_v0 = vpop.f32.mrf.mxu1 }
 0x619   :  { %v7311_v2 = vadd.f32 %v7310_v0, %v7270_v56 }
 0x61a   :  { %v7312_v4 = vpop.f32.mrf.mxu1 }
 0x61b   :  { %v7313_v38 = vadd.f32 %v7312_v4, %v7272_v3  ;;  %v7317_v57 = vmul.f32 %v7311_v2, %v7311_v2 }
 0x61c   :  { %v7314_v5 = vpop.f32.mrf.mxu1 }
 0x61d   :  { %v7318_v6 = vmul.f32 %v7313_v38, %v7313_v38 }
 0x61e   :  { %v7315_v10 = vpop.f32.mrf.mxu1 }
 0x61f   :  { %v7319_v39 = vadd.f32 %v7318_v6, %v7317_v57 }
 0x621   :  { %7320 = vadd.xlane.f32.xlu0 %v7319_v39 }
 0x6aa   :  { %v7321_v11 = vpop.xlane.xlu0 %7320 }
 0x6ab   :  { %v7322_v7 = vmax.f32 %v7321_v11, 1e-24 }
 0x6ad   :  { %8803 = vrsqrt.f32 %v7322_v7 }
 0x6ba   :  { %v8804_v23 = vpop.eup %8803 }
 0x6bb   :  { %v7324_v60 = vmul.f32 %v8804_v23, %v7311_v2  ;;  %v7325_v26 = vmul.f32 %v8804_v23, %v7313_v38 }
 0x6bd   :  { %7326 = vst [vmem:[#allocation17] sm:$0xff] %v7324_v60  ;;  %7327 = vst [vmem:[#allocation17 + $0x8] sm:$0xff] %v7325_v26 }
 0x6be   :  { %8997 = shalt.err (!%p8994_p7)
}
 0x6bf   :  { %7337 = dma.vmem_to_hbm [thread:$0]  %s7335_s8, 256, %s9382_s9, [#allocation4]  }
 0x6c0   :  { %9016 = dma.done.wait [#allocation4], 256  }
 0x6c1   :  { %9017 = vsyncadd [#allocation4], 4294967040 }
 0x6c2   :  { %7341 = vsyncpa [#allocation3], 1 }
 0x6c3   :  { %7342 = vsyncpa [#allocation6], 1 }
 0x6c4   :  { %7343 = vsyncpa [#allocation9], 1 }
 0x6c5   :  { %7344 = vsyncpa [#allocation12], 1 }
 0x6c6   :  { %7345 = vsyncpa [#allocation15], 1 }
 0x6c7   :  { %7346 = vsyncpa [#allocation4], 1 }

</bundles_post_ra>
